<compile_context>
chip_gen: v7x
topology: tpu7x:2x2x1
jax: 0.10.0
libtpu: 0.0.40
codegen_flags: <defaults>
</compile_context>

<pallas_src>
import math
import numpy as np
import jax
import jax.numpy as jnp
from jax.experimental import pallas as pl
from jax.experimental.pallas import tpu as pltpu


# --------------------------------------------------------------------------- kernel
def block_kernel(
    x_ref,                                                         # (T, Bb, C) bf16
    ln0w_ref, ln0b_ref, ln1w_ref, ln1b_ref, ln2w_ref, ln2b_ref,    # (1, C) f32
    a_tmk_ref, a_tmv_ref, a_tmr_ref,                               # (1, C) f32
    a_decay_ref, a_first_ref,                                      # (1, C) f32
    wk_ref, wv_ref, wr_ref, wo_ref,                                # (C, C) bf16 (in, out)
    f_tmk_ref, f_tmr_ref,                                          # (1, C) f32
    wkf_ref, wrf_ref, wvf_ref,                                     # (C,4C),(C,C),(4C,C) bf16
    out_ref,                                                       # (T, Bb, C) bf16
    k_scr, v_scr, sry_scr,                                         # (T*Bb, C) f32 VMEM
):
    eps = 1e-5
    T, Bb, C = x_ref.shape
    rows = T * Bb
    H = wkf_ref.shape[1]

    # time-major rows: row r = t*Bb + b ;  Bb % 8 == 0 so this reshape is tile-aligned.
    x = x_ref[...].astype(jnp.float32).reshape(rows, C)

    def layer_norm(h, w_ref, b_ref):
        mu = jnp.mean(h, axis=-1, keepdims=True)
        var = jnp.mean(jnp.square(h - mu), axis=-1, keepdims=True)
        return (h - mu) * jax.lax.rsqrt(var + eps) * w_ref[...] + b_ref[...]

    def time_shift(h):
        # hh[t, b] = h[t-1, b], hh[0, b] = 0  (== nn.ZeroPad2d((0,0,1,-1)))
        # Aligned (multiple-of-8) slab shift on values, no scratch round-trip.
        # TODO(synk): pltpu.roll(h, Bb, 0) + first-Bb-row mask to run on the XLU slot.
        return jnp.concatenate(
            [jnp.zeros((Bb, C), jnp.float32), h[: rows - Bb, :]], axis=0)

    def mxu(a, w):
        # flattened (rows, C_in) @ (C_in, C_out) MXU matmul: bf16 operands, f32 accumulate
        return jnp.dot(a.astype(jnp.bfloat16), w, preferred_element_type=jnp.float32)

    # ---- ln0 (layer_id == 0) ---------------------------------------------------------
    x = layer_norm(x, ln0w_ref, ln0b_ref)

    # ---- attention branch: x = x + att(ln1(x)) -----------------------------------------
    h = layer_norm(x, ln1w_ref, ln1b_ref)
    hh = time_shift(h)
    tmk, tmv, tmr = a_tmk_ref[...], a_tmv_ref[...], a_tmr_ref[...]
    xk = h * tmk + hh * (1.0 - tmk)
    xv = h * tmv + hh * (1.0 - tmv)
    xr = h * tmr + hh * (1.0 - tmr)

    k_scr[...] = mxu(xk, wk_ref[...])                              # (rows, C) f32
    v_scr[...] = mxu(xv, wv_ref[...])                              # (rows, C) f32
    sry_scr[...] = jax.nn.sigmoid(mxu(xr, wr_ref[...]))            # sr; later sr*wkv

    w_dec = -jnp.exp(a_decay_ref[...])                             # (1, C)
    u = a_first_ref[...]                                           # (1, C)

    p0 = jnp.zeros((Bb, C), jnp.float32)
    q0 = jnp.zeros((Bb, C), jnp.float32)
    o0 = jnp.full((Bb, C), -1e38, jnp.float32)

    def wkv_step(t, carry):
        p, q, o = carry
        r0 = pl.multiple_of(t * Bb, 8)                             # aligned (Bb, C) slab
        kt = k_scr[pl.ds(r0, Bb), :]
        vt = v_scr[pl.ds(r0, Bb), :]
        srt = sry_scr[pl.ds(r0, Bb), :]
        no = jnp.maximum(o, u + kt)
        A = jnp.exp(o - no)
        Bx = jnp.exp(u + kt - no)
        den = A * q + Bx
        inv = pl.reciprocal(den, approx=True)
        inv = inv * (2.0 - den * inv)                              # one Newton step
        y = (A * p + Bx * vt) * inv
        sry_scr[pl.ds(r0, Bb), :] = srt * y                        # rwkv = sigmoid(r)*wkv
        no2 = jnp.maximum(w_dec + o, kt)
        A2 = jnp.exp(w_dec + o - no2)
        B2 = jnp.exp(kt - no2)
        return (A2 * p + B2 * vt, A2 * q + B2, no2)

    jax.lax.fori_loop(0, T, wkv_step, (p0, q0, o0), unroll=min(8, T))

    x = x + mxu(sry_scr[...], wo_ref[...])

    # ---- channel-mix branch: x = x + ffn(ln2(x)) ---------------------------------------
    h = layer_norm(x, ln2w_ref, ln2b_ref)
    hh = time_shift(h)
    ftmk, ftmr = f_tmk_ref[...], f_tmr_ref[...]
    xk = h * ftmk + hh * (1.0 - ftmk)
    xr = h * ftmr + hh * (1.0 - ftmr)

    # Hidden-dim chunking: never materialize the (rows, 4C) f32 intermediate.
    # TODO(synk): at very large C, stream wkf/wvf chunks from HBM via an extra grid axis.
    hc = min(H, 512)
    xk_bf = xk.astype(jnp.bfloat16)
    kv = jnp.zeros((rows, C), jnp.float32)
    for ci in range(H // hc):
        c0 = ci * hc
        kc = jnp.dot(xk_bf, wkf_ref[:, c0:c0 + hc],
                     preferred_element_type=jnp.float32)
        kc = jnp.square(jnp.maximum(kc, 0.0))                      # relu(k)^2 chunk
        kv = kv + jnp.dot(kc.astype(jnp.bfloat16), wvf_ref[c0:c0 + hc, :],
                          preferred_element_type=jnp.float32)

    rr = jax.nn.sigmoid(mxu(xr, wrf_ref[...]))
    out = x + rr * kv
    out_ref[...] = out.reshape(T, Bb, C).astype(out_ref.dtype)


# --------------------------------------------------------------------------- wrapper
def block_forward(x_btc, params, block_b=None):
    """x_btc: (B, T, C) float32, returns (B, T, C) float32 (same as Block.forward)."""
    B, T, C = x_btc.shape
    assert C % 128 == 0, "C must be lane-dense (multiple of 128)"

    # Pad batch to a multiple of 8: per-timestep (Bb, C) slabs become full sublane tiles
    # and the (T, Bb, C) <-> (T*Bb, C) reshapes inside the kernel are free.
    B_pad = ((B + 7) // 8) * 8

    if block_b is None:
        block_b = 8
        for bb in range(8, B_pad + 1, 8):       # grow until >= 256 MXU rows per grid step
            if B_pad % bb == 0:
                block_b = bb
                if bb * T >= 256:
                    break
    assert block_b % 8 == 0 and B_pad % block_b == 0
    nb = B_pad // block_b
    rows = T * block_b

    x_pad = x_btc if B_pad == B else jnp.pad(x_btc, ((0, B_pad - B), (0, 0), (0, 0)))
    x_tbc = jnp.transpose(x_pad, (1, 0, 2)).astype(jnp.bfloat16)   # time-major, bf16 boundary

    # Constant-index blocks (weights / per-channel params): single-buffer them when the
    # grid iterates (their block index never changes; double-buffering only doubles the
    # VMEM-resident weight footprint).
    def _const_spec(shape):
        imap = lambda b: (0,) * len(shape)
        if nb > 1:
            try:
                return pl.BlockSpec(shape, imap, pipeline_mode=pl.Buffered(1))
            except TypeError:
                pass
        return pl.BlockSpec(shape, imap)

    in_specs = [pl.BlockSpec((T, block_b, C), lambda b: (0, b, 0))]
    in_specs += [_const_spec(p.shape) for p in params]

    # VMEM budget from the real footprint (floor 32 MiB, cap 96 MiB).
    # TODO(synk): cap nearer 48 MiB on v7x (64 MiB physical per TensorCore).
    weight_bytes = sum(int(np.prod(p.shape)) * p.dtype.itemsize for p in params)
    act_bytes = 2 * 2 * (rows * C * 2)          # in + out blocks, double-buffered, bf16
    scratch_bytes = 3 * rows * C * 4
    footprint = (1 if nb > 1 else 2) * weight_bytes + act_bytes + scratch_bytes
    vmem_limit = int(min(96 << 20, max(32 << 20, 2 * footprint)))

    out = pl.pallas_call(
        block_kernel,
        out_shape=jax.ShapeDtypeStruct((T, B_pad, C), jnp.bfloat16),
        grid=(nb,),
        in_specs=in_specs,
        out_specs=pl.BlockSpec((T, block_b, C), lambda b: (0, b, 0)),
        scratch_shapes=[
            pltpu.VMEM((rows, C), jnp.float32),   # k
            pltpu.VMEM((rows, C), jnp.float32),   # v
            pltpu.VMEM((rows, C), jnp.float32),   # sigmoid(r), then sigmoid(r)*wkv
        ],
        compiler_params=pltpu.CompilerParams(
            dimension_semantics=("parallel",),    # batch blocks -> both TensorCores on v7x
            vmem_limit_bytes=vmem_limit,
        ),
    )(x_tbc, *params)

    out = jnp.transpose(out, (1, 0, 2))[:B]
    return out.astype(x_btc.dtype)


# --------------------------------------------------------------------------- params
def make_params(C, n_layer=2, layer_id=0, key=None):
    assert layer_id == 0, "this synthetic setup instantiates layer 0 (ln0 path exercised)"
    ratio_0_to_1 = 0.0 if n_layer == 1 else layer_id / (n_layer - 1)
    ratio_1_to_almost0 = 1.0 - layer_id / n_layer

    i = np.arange(C, dtype=np.float64) / C
    att_tmk = (i ** ratio_1_to_almost0).astype(np.float32)
    att_tmv = (i ** ratio_1_to_almost0 + 0.3 * ratio_0_to_1).astype(np.float32)
    att_tmr = (i ** (0.5 * ratio_1_to_almost0)).astype(np.float32)
    ffn_tmk = (i ** ratio_1_to_almost0).astype(np.float32)
    ffn_tmr = (i ** ratio_1_to_almost0).astype(np.float32)

    h = np.arange(C, dtype=np.float64)
    decay_speed = (-5.0 + 8.0 * (h / (C - 1)) ** (0.7 + 1.3 * ratio_0_to_1)).astype(np.float32)
    zigzag = np.array([((j + 1) % 3 - 1) * 0.5 for j in range(C)], dtype=np.float32)
    time_first = (math.log(0.3) + zigzag).astype(np.float32)

    keys = jax.random.split(key, 13)
    H = 4 * C

    ln0w = 1.0 + 0.1 * jax.random.normal(keys[7], (C,), jnp.float32)
    ln0b = 0.05 * jax.random.normal(keys[8], (C,), jnp.float32)
    ln1w = 1.0 + 0.1 * jax.random.normal(keys[9], (C,), jnp.float32)
    ln1b = 0.05 * jax.random.normal(keys[10], (C,), jnp.float32)
    ln2w = 1.0 + 0.1 * jax.random.normal(keys[11], (C,), jnp.float32)
    ln2b = 0.05 * jax.random.normal(keys[12], (C,), jnp.float32)

    # weights stored already transposed (in, out) so the kernel computes x @ W; bf16 for MXU
    Wk = (0.1 * jax.random.normal(keys[0], (C, C), jnp.float32)).astype(jnp.bfloat16)
    Wv = (0.1 * jax.random.normal(keys[1], (C, C), jnp.float32)).astype(jnp.bfloat16)
    Wr = (0.1 * jax.random.normal(keys[2], (C, C), jnp.float32)).astype(jnp.bfloat16)
    Wo = (0.1 * jax.random.normal(keys[3], (C, C), jnp.float32)).astype(jnp.bfloat16)
    Wkf = (0.1 * jax.random.normal(keys[4], (C, H), jnp.float32)).astype(jnp.bfloat16)
    Wrf = (0.1 * jax.random.normal(keys[5], (C, C), jnp.float32)).astype(jnp.bfloat16)
    Wvf = (0.1 * jax.random.normal(keys[6], (H, C), jnp.float32)).astype(jnp.bfloat16)

    def r2(a):  # (1, C) f32
        return jnp.asarray(a, jnp.float32).reshape(1, C)

    return (
        r2(ln0w), r2(ln0b), r2(ln1w), r2(ln1b), r2(ln2w), r2(ln2b),
        r2(att_tmk), r2(att_tmv), r2(att_tmr),
        r2(decay_speed), r2(time_first),
        Wk, Wv, Wr, Wo,
        r2(ffn_tmk), r2(ffn_tmr),
        Wkf, Wrf, Wvf,
    )


# --------------------------------------------------------------------------- reference
def ref_block(x, params):
    (ln0w, ln0b, ln1w, ln1b, ln2w, ln2b,
     a_tmk, a_tmv, a_tmr, a_decay, a_first,
     Wk, Wv, Wr, Wo,
     f_tmk, f_tmr, Wkf, Wrf, Wvf) = params

    def ln(h, w, b):
        mu = h.mean(-1, keepdims=True)
        var = ((h - mu) ** 2).mean(-1, keepdims=True)
        return (h - mu) / jnp.sqrt(var + 1e-5) * w + b

    def tshift(h):  # (B, T, C)
        return jnp.concatenate([jnp.zeros_like(h[:, :1]), h[:, :-1]], axis=1)

    def mm(a, w):   # mirrors the kernel's MXU precision: bf16 operands, f32 accumulate
        return jnp.dot(a.astype(jnp.bfloat16), w, preferred_element_type=jnp.float32)

    def wkv(w, u, k, v):  # exact f32 recurrence; k, v: (B,T,C); w, u broadcast (1,C)
        B, T, C = k.shape
        def step(carry, kv_t):
            p, q, o = carry
            kt, vt = kv_t
            no = jnp.maximum(o, u + kt)
            A = jnp.exp(o - no); Bx = jnp.exp(u + kt - no)
            y = (A * p + Bx * vt) / (A * q + Bx)
            no2 = jnp.maximum(w + o, kt)
            A2 = jnp.exp(w + o - no2); B2 = jnp.exp(kt - no2)
            return (A2 * p + B2 * vt, A2 * q + B2, no2), y
        init = (jnp.zeros((B, C)), jnp.zeros((B, C)), jnp.full((B, C), -1e38))
        _, ys = jax.lax.scan(step, init,
                             (jnp.transpose(k, (1, 0, 2)), jnp.transpose(v, (1, 0, 2))))
        return jnp.transpose(ys, (1, 0, 2))

    x = ln(x, ln0w, ln0b)
    # attention
    h = ln(x, ln1w, ln1b)
    hh = tshift(h)
    xk = h * a_tmk + hh * (1 - a_tmk)
    xv = h * a_tmv + hh * (1 - a_tmv)
    xr = h * a_tmr + hh * (1 - a_tmr)
    k = mm(xk, Wk); v = mm(xv, Wv); r = mm(xr, Wr)
    y = wkv(-jnp.exp(a_decay), a_first, k, v)
    x = x + mm(jax.nn.sigmoid(r) * y, Wo)
    # channel mix
    h = ln(x, ln2w, ln2b)
    hh = tshift(h)
    xk = h * f_tmk + hh * (1 - f_tmk)
    xr = h * f_tmr + hh * (1 - f_tmr)
    kf = jnp.square(jnp.maximum(mm(xk, Wkf), 0.0))
    kv = mm(kf, Wvf)
    return x + jax.nn.sigmoid(mm(xr, Wrf)) * kv


# --------------------------------------------------------------------------- main
if __name__ == "__main__":
    # batch=2, seq=8, n_embd=128 (lane-dense C); batch is padded to 8 inside the wrapper
    B, T, C = 2, 8, 128
    key = jax.random.PRNGKey(0)
    kx, kp = jax.random.split(key)

    x = jax.random.normal(kx, (B, T, C), jnp.float32)
    params = make_params(C, n_layer=2, layer_id=0, key=kp)

    out = jax.block_until_ready(block_forward(x, params))

    # reference sees the same bf16-rounded input the kernel receives at its boundary
    x_q = x.astype(jnp.bfloat16).astype(jnp.float32)
    ref = jax.block_until_ready(ref_block(x_q, params))

    err = float(jnp.max(jnp.abs(out - ref) / (1.0 + jnp.abs(ref))))
    if not bool(jnp.all(jnp.isfinite(out))) or not (err < 1e-2):
        raise AssertionError(f"Pallas kernel mismatch vs reference, max rel err = {err}")

    print("KERNEL_OK")
</pallas_src>

<mosaic_0001>
module attributes {stable_mosaic.version = 11 : i64} {
  func.func @block_kernel(%arg0: i32, %arg1: memref<8x8x128xbf16, #tpu.memory_space<vmem>>, %arg2: memref<1x128xf32, #tpu.memory_space<vmem>>, %arg3: memref<1x128xf32, #tpu.memory_space<vmem>>, %arg4: memref<1x128xf32, #tpu.memory_space<vmem>>, %arg5: memref<1x128xf32, #tpu.memory_space<vmem>>, %arg6: memref<1x128xf32, #tpu.memory_space<vmem>>, %arg7: memref<1x128xf32, #tpu.memory_space<vmem>>, %arg8: memref<1x128xf32, #tpu.memory_space<vmem>>, %arg9: memref<1x128xf32, #tpu.memory_space<vmem>>, %arg10: memref<1x128xf32, #tpu.memory_space<vmem>>, %arg11: memref<1x128xf32, #tpu.memory_space<vmem>>, %arg12: memref<1x128xf32, #tpu.memory_space<vmem>>, %arg13: memref<128x128xbf16, #tpu.memory_space<vmem>>, %arg14: memref<128x128xbf16, #tpu.memory_space<vmem>>, %arg15: memref<128x128xbf16, #tpu.memory_space<vmem>>, %arg16: memref<128x128xbf16, #tpu.memory_space<vmem>>, %arg17: memref<1x128xf32, #tpu.memory_space<vmem>>, %arg18: memref<1x128xf32, #tpu.memory_space<vmem>>, %arg19: memref<128x512xbf16, #tpu.memory_space<vmem>>, %arg20: memref<128x128xbf16, #tpu.memory_space<vmem>>, %arg21: memref<512x128xbf16, #tpu.memory_space<vmem>>, %arg22: memref<8x8x128xbf16, #tpu.memory_space<vmem>>, %arg23: memref<64x128xf32, #tpu.memory_space<vmem>>, %arg24: memref<64x128xf32, #tpu.memory_space<vmem>>, %arg25: memref<64x128xf32, #tpu.memory_space<vmem>>) attributes {dimension_semantics = [#tpu.dimension_semantics<parallel>], iteration_bounds = array<i64: 1>, scalar_prefetch = 0 : i64, scratch_operands = 3 : i64, tpu.core_type = #tpu.core_type<tc>, window_params = [{transform_indices = @transform_0, window_bounds = array<i64: 8, 8, 128>}, {pipeline_mode = #tpu.pipeline_mode<synchronous>, transform_indices = @transform_1, window_bounds = array<i64: 1, 128>}, {pipeline_mode = #tpu.pipeline_mode<synchronous>, transform_indices = @transform_2, window_bounds = array<i64: 1, 128>}, {pipeline_mode = #tpu.pipeline_mode<synchronous>, transform_indices = @transform_3, window_bounds = array<i64: 1, 128>}, {pipeline_mode = #tpu.pipeline_mode<synchronous>, transform_indices = @transform_4, window_bounds = array<i64: 1, 128>}, {pipeline_mode = #tpu.pipeline_mode<synchronous>, transform_indices = @transform_5, window_bounds = array<i64: 1, 128>}, {pipeline_mode = #tpu.pipeline_mode<synchronous>, transform_indices = @transform_6, window_bounds = array<i64: 1, 128>}, {pipeline_mode = #tpu.pipeline_mode<synchronous>, transform_indices = @transform_7, window_bounds = array<i64: 1, 128>}, {pipeline_mode = #tpu.pipeline_mode<synchronous>, transform_indices = @transform_8, window_bounds = array<i64: 1, 128>}, {pipeline_mode = #tpu.pipeline_mode<synchronous>, transform_indices = @transform_9, window_bounds = array<i64: 1, 128>}, {pipeline_mode = #tpu.pipeline_mode<synchronous>, transform_indices = @transform_10, window_bounds = array<i64: 1, 128>}, {pipeline_mode = #tpu.pipeline_mode<synchronous>, transform_indices = @transform_11, window_bounds = array<i64: 1, 128>}, {pipeline_mode = #tpu.pipeline_mode<synchronous>, transform_indices = @transform_12, window_bounds = array<i64: 128, 128>}, {pipeline_mode = #tpu.pipeline_mode<synchronous>, transform_indices = @transform_13, window_bounds = array<i64: 128, 128>}, {pipeline_mode = #tpu.pipeline_mode<synchronous>, transform_indices = @transform_14, window_bounds = array<i64: 128, 128>}, {pipeline_mode = #tpu.pipeline_mode<synchronous>, transform_indices = @transform_15, window_bounds = array<i64: 128, 128>}, {pipeline_mode = #tpu.pipeline_mode<synchronous>, transform_indices = @transform_16, window_bounds = array<i64: 1, 128>}, {pipeline_mode = #tpu.pipeline_mode<synchronous>, transform_indices = @transform_17, window_bounds = array<i64: 1, 128>}, {pipeline_mode = #tpu.pipeline_mode<synchronous>, transform_indices = @transform_18, window_bounds = array<i64: 128, 512>}, {pipeline_mode = #tpu.pipeline_mode<synchronous>, transform_indices = @transform_19, window_bounds = array<i64: 128, 128>}, {pipeline_mode = #tpu.pipeline_mode<synchronous>, transform_indices = @transform_20, window_bounds = array<i64: 512, 128>}, {transform_indices = @transform_21, window_bounds = array<i64: 8, 8, 128>}]} {
    %c0 = arith.constant 0 : index
    %c0_0 = arith.constant 0 : index
    %c0_1 = arith.constant 0 : index
    %0 = vector.load %arg1[%c0, %c0_0, %c0_1] : memref<8x8x128xbf16, #tpu.memory_space<vmem>>, vector<8x8x128xbf16>
    %1 = arith.extf %0 : vector<8x8x128xbf16> to vector<8x8x128xf32>
    %2 = vector.shape_cast %1 : vector<8x8x128xf32> to vector<64x128xf32>
    %cst = arith.constant dense<0.000000e+00> : vector<64xf32>
    %3 = vector.multi_reduction <add>, %2, %cst [1] : vector<64x128xf32> to vector<64xf32>
    %4 = vector.shape_cast %3 : vector<64xf32> to vector<64x1xf32>
    %cst_2 = arith.constant 1.280000e+02 : f32
    %5 = vector.broadcast %cst_2 : f32 to vector<64x1xf32>
    %6 = arith.divf %4, %5 : vector<64x1xf32>
    %7 = vector.broadcast %6 : vector<64x1xf32> to vector<64x128xf32>
    %8 = arith.subf %2, %7 : vector<64x128xf32>
    %9 = arith.mulf %8, %8 : vector<64x128xf32>
    %cst_3 = arith.constant dense<0.000000e+00> : vector<64xf32>
    %10 = vector.multi_reduction <add>, %9, %cst_3 [1] : vector<64x128xf32> to vector<64xf32>
    %11 = vector.shape_cast %10 : vector<64xf32> to vector<64x1xf32>
    %cst_4 = arith.constant 1.280000e+02 : f32
    %12 = vector.broadcast %cst_4 : f32 to vector<64x1xf32>
    %13 = arith.divf %11, %12 : vector<64x1xf32>
    %14 = vector.broadcast %6 : vector<64x1xf32> to vector<64x128xf32>
    %15 = arith.subf %2, %14 : vector<64x128xf32>
    %cst_5 = arith.constant 9.99999974E-6 : f32
    %16 = vector.broadcast %cst_5 : f32 to vector<64x1xf32>
    %17 = arith.addf %13, %16 : vector<64x1xf32>
    %18 = math.rsqrt %17 : vector<64x1xf32>
    %19 = vector.broadcast %18 : vector<64x1xf32> to vector<64x128xf32>
    %20 = arith.mulf %15, %19 : vector<64x128xf32>
    %c0_6 = arith.constant 0 : index
    %c0_7 = arith.constant 0 : index
    %21 = vector.load %arg2[%c0_6, %c0_7] : memref<1x128xf32, #tpu.memory_space<vmem>>, vector<1x128xf32>
    %22 = vector.broadcast %21 : vector<1x128xf32> to vector<64x128xf32>
    %23 = arith.mulf %20, %22 : vector<64x128xf32>
    %c0_8 = arith.constant 0 : index
    %c0_9 = arith.constant 0 : index
    %24 = vector.load %arg3[%c0_8, %c0_9] : memref<1x128xf32, #tpu.memory_space<vmem>>, vector<1x128xf32>
    %25 = vector.broadcast %24 : vector<1x128xf32> to vector<64x128xf32>
    %26 = arith.addf %23, %25 : vector<64x128xf32>
    %cst_10 = arith.constant dense<0.000000e+00> : vector<64xf32>
    %27 = vector.multi_reduction <add>, %26, %cst_10 [1] : vector<64x128xf32> to vector<64xf32>
    %28 = vector.shape_cast %27 : vector<64xf32> to vector<64x1xf32>
    %cst_11 = arith.constant 1.280000e+02 : f32
    %29 = vector.broadcast %cst_11 : f32 to vector<64x1xf32>
    %30 = arith.divf %28, %29 : vector<64x1xf32>
    %31 = vector.broadcast %30 : vector<64x1xf32> to vector<64x128xf32>
    %32 = arith.subf %26, %31 : vector<64x128xf32>
    %33 = arith.mulf %32, %32 : vector<64x128xf32>
    %cst_12 = arith.constant dense<0.000000e+00> : vector<64xf32>
    %34 = vector.multi_reduction <add>, %33, %cst_12 [1] : vector<64x128xf32> to vector<64xf32>
    %35 = vector.shape_cast %34 : vector<64xf32> to vector<64x1xf32>
    %cst_13 = arith.constant 1.280000e+02 : f32
    %36 = vector.broadcast %cst_13 : f32 to vector<64x1xf32>
    %37 = arith.divf %35, %36 : vector<64x1xf32>
    %38 = vector.broadcast %30 : vector<64x1xf32> to vector<64x128xf32>
    %39 = arith.subf %26, %38 : vector<64x128xf32>
    %cst_14 = arith.constant 9.99999974E-6 : f32
    %40 = vector.broadcast %cst_14 : f32 to vector<64x1xf32>
    %41 = arith.addf %37, %40 : vector<64x1xf32>
    %42 = math.rsqrt %41 : vector<64x1xf32>
    %43 = vector.broadcast %42 : vector<64x1xf32> to vector<64x128xf32>
    %44 = arith.mulf %39, %43 : vector<64x128xf32>
    %c0_15 = arith.constant 0 : index
    %c0_16 = arith.constant 0 : index
    %45 = vector.load %arg4[%c0_15, %c0_16] : memref<1x128xf32, #tpu.memory_space<vmem>>, vector<1x128xf32>
    %46 = vector.broadcast %45 : vector<1x128xf32> to vector<64x128xf32>
    %47 = arith.mulf %44, %46 : vector<64x128xf32>
    %c0_17 = arith.constant 0 : index
    %c0_18 = arith.constant 0 : index
    %48 = vector.load %arg5[%c0_17, %c0_18] : memref<1x128xf32, #tpu.memory_space<vmem>>, vector<1x128xf32>
    %49 = vector.broadcast %48 : vector<1x128xf32> to vector<64x128xf32>
    %50 = arith.addf %47, %49 : vector<64x128xf32>
    %cst_19 = arith.constant 0.000000e+00 : f32
    %51 = vector.broadcast %cst_19 : f32 to vector<8x128xf32>
    %52 = vector.extract_strided_slice %50 {offsets = [0, 0], sizes = [56, 128], strides = [1, 1]} : vector<64x128xf32> to vector<56x128xf32>
    %53 = tpu.concatenate %51, %52 in 0 : vector<8x128xf32>, vector<56x128xf32> -> vector<64x128xf32>
    %c0_20 = arith.constant 0 : index
    %c0_21 = arith.constant 0 : index
    %54 = vector.load %arg8[%c0_20, %c0_21] : memref<1x128xf32, #tpu.memory_space<vmem>>, vector<1x128xf32>
    %c0_22 = arith.constant 0 : index
    %c0_23 = arith.constant 0 : index
    %55 = vector.load %arg9[%c0_22, %c0_23] : memref<1x128xf32, #tpu.memory_space<vmem>>, vector<1x128xf32>
    %c0_24 = arith.constant 0 : index
    %c0_25 = arith.constant 0 : index
    %56 = vector.load %arg10[%c0_24, %c0_25] : memref<1x128xf32, #tpu.memory_space<vmem>>, vector<1x128xf32>
    %57 = vector.broadcast %54 : vector<1x128xf32> to vector<64x128xf32>
    %58 = arith.mulf %50, %57 : vector<64x128xf32>
    %cst_26 = arith.constant 1.000000e+00 : f32
    %59 = vector.broadcast %cst_26 : f32 to vector<1x128xf32>
    %60 = arith.subf %59, %54 : vector<1x128xf32>
    %61 = vector.broadcast %60 : vector<1x128xf32> to vector<64x128xf32>
    %62 = arith.mulf %53, %61 : vector<64x128xf32>
    %63 = arith.addf %58, %62 : vector<64x128xf32>
    %64 = vector.broadcast %55 : vector<1x128xf32> to vector<64x128xf32>
    %65 = arith.mulf %50, %64 : vector<64x128xf32>
    %cst_27 = arith.constant 1.000000e+00 : f32
    %66 = vector.broadcast %cst_27 : f32 to vector<1x128xf32>
    %67 = arith.subf %66, %55 : vector<1x128xf32>
    %68 = vector.broadcast %67 : vector<1x128xf32> to vector<64x128xf32>
    %69 = arith.mulf %53, %68 : vector<64x128xf32>
    %70 = arith.addf %65, %69 : vector<64x128xf32>
    %71 = vector.broadcast %56 : vector<1x128xf32> to vector<64x128xf32>
    %72 = arith.mulf %50, %71 : vector<64x128xf32>
    %cst_28 = arith.constant 1.000000e+00 : f32
    %73 = vector.broadcast %cst_28 : f32 to vector<1x128xf32>
    %74 = arith.subf %73, %56 : vector<1x128xf32>
    %75 = vector.broadcast %74 : vector<1x128xf32> to vector<64x128xf32>
    %76 = arith.mulf %53, %75 : vector<64x128xf32>
    %77 = arith.addf %72, %76 : vector<64x128xf32>
    %c0_29 = arith.constant 0 : index
    %c0_30 = arith.constant 0 : index
    %78 = vector.load %arg13[%c0_29, %c0_30] : memref<128x128xbf16, #tpu.memory_space<vmem>>, vector<128x128xbf16>
    %79 = arith.truncf %63 : vector<64x128xf32> to vector<64x128xbf16>
    %cst_31 = arith.constant dense<0.000000e+00> : vector<64x128xf32>
    %80 = tpu.matmul %79, %78, %cst_31 {dimension_numbers = #tpu.dot_dimension_numbers<[1], [0], [0], [1], [0, 0, 1, 1], [], []>} : vector<64x128xbf16>, vector<128x128xbf16>, vector<64x128xf32> -> vector<64x128xf32>
    %c0_32 = arith.constant 0 : index
    %c0_33 = arith.constant 0 : index
    %81 = vector.load %arg23[%c0_32, %c0_33] : memref<64x128xf32, #tpu.memory_space<vmem>>, vector<64x128xf32>
    tpu.vector_store %arg23[%c0_32, %c0_33], %80 {strides = array<i32>} : memref<64x128xf32, #tpu.memory_space<vmem>>, vector<64x128xf32>,
    %c0_34 = arith.constant 0 : index
    %c0_35 = arith.constant 0 : index
    %82 = vector.load %arg14[%c0_34, %c0_35] : memref<128x128xbf16, #tpu.memory_space<vmem>>, vector<128x128xbf16>
    %83 = arith.truncf %70 : vector<64x128xf32> to vector<64x128xbf16>
    %cst_36 = arith.constant dense<0.000000e+00> : vector<64x128xf32>
    %84 = tpu.matmul %83, %82, %cst_36 {dimension_numbers = #tpu.dot_dimension_numbers<[1], [0], [0], [1], [0, 0, 1, 1], [], []>} : vector<64x128xbf16>, vector<128x128xbf16>, vector<64x128xf32> -> vector<64x128xf32>
    %c0_37 = arith.constant 0 : index
    %c0_38 = arith.constant 0 : index
    %85 = vector.load %arg24[%c0_37, %c0_38] : memref<64x128xf32, #tpu.memory_space<vmem>>, vector<64x128xf32>
    tpu.vector_store %arg24[%c0_37, %c0_38], %84 {strides = array<i32>} : memref<64x128xf32, #tpu.memory_space<vmem>>, vector<64x128xf32>,
    %c0_39 = arith.constant 0 : index
    %c0_40 = arith.constant 0 : index
    %86 = vector.load %arg15[%c0_39, %c0_40] : memref<128x128xbf16, #tpu.memory_space<vmem>>, vector<128x128xbf16>
    %87 = arith.truncf %77 : vector<64x128xf32> to vector<64x128xbf16>
    %cst_41 = arith.constant dense<0.000000e+00> : vector<64x128xf32>
    %88 = tpu.matmul %87, %86, %cst_41 {dimension_numbers = #tpu.dot_dimension_numbers<[1], [0], [0], [1], [0, 0, 1, 1], [], []>} : vector<64x128xbf16>, vector<128x128xbf16>, vector<64x128xf32> -> vector<64x128xf32>
    %89 = arith.negf %88 : vector<64x128xf32>
    %90 = math.exp %89 : vector<64x128xf32>
    %cst_42 = arith.constant 1.000000e+00 : f32
    %91 = vector.broadcast %cst_42 : f32 to vector<64x128xf32>
    %92 = arith.addf %91, %90 : vector<64x128xf32>
    %93 = arith.divf %91, %92 : vector<64x128xf32>
    %c0_43 = arith.constant 0 : index
    %c0_44 = arith.constant 0 : index
    %94 = vector.load %arg25[%c0_43, %c0_44] : memref<64x128xf32, #tpu.memory_space<vmem>>, vector<64x128xf32>
    tpu.vector_store %arg25[%c0_43, %c0_44], %93 {strides = array<i32>} : memref<64x128xf32, #tpu.memory_space<vmem>>, vector<64x128xf32>,
    %c0_45 = arith.constant 0 : index
    %c0_46 = arith.constant 0 : index
    %95 = vector.load %arg11[%c0_45, %c0_46] : memref<1x128xf32, #tpu.memory_space<vmem>>, vector<1x128xf32>
    %96 = math.exp %95 : vector<1x128xf32>
    %cst_47 = arith.constant 0.000000e+00 : f32
    %97 = vector.broadcast %cst_47 : f32 to vector<1x128xf32>
    %98 = arith.subf %97, %96 : vector<1x128xf32>
    %c0_48 = arith.constant 0 : index
    %c0_49 = arith.constant 0 : index
    %99 = vector.load %arg12[%c0_48, %c0_49] : memref<1x128xf32, #tpu.memory_space<vmem>>, vector<1x128xf32>
    %cst_50 = arith.constant 0.000000e+00 : f32
    %100 = vector.broadcast %cst_50 : f32 to vector<8x128xf32>
    %cst_51 = arith.constant 0.000000e+00 : f32
    %101 = vector.broadcast %cst_51 : f32 to vector<8x128xf32>
    %cst_52 = arith.constant -9.99999968E+37 : f32
    %102 = vector.broadcast %cst_52 : f32 to vector<8x128xf32>
    %c0_i32 = arith.constant 0 : i32
    %c8_i32 = arith.constant 8 : i32
    %103 = arith.muli %c0_i32, %c8_i32 : i32
    %104 = tpu.assume_multiple %103, 8 : i32
    %105 = arith.index_cast %104 : i32 to index
    %c0_53 = arith.constant 0 : index
    %106 = vector.load %arg23[%105, %c0_53] : memref<64x128xf32, #tpu.memory_space<vmem>>, vector<8x128xf32>
    %107 = arith.index_cast %104 : i32 to index
    %c0_54 = arith.constant 0 : index
    %108 = vector.load %arg24[%107, %c0_54] : memref<64x128xf32, #tpu.memory_space<vmem>>, vector<8x128xf32>
    %109 = arith.index_cast %104 : i32 to index
    %c0_55 = arith.constant 0 : index
    %110 = vector.load %arg25[%109, %c0_55] : memref<64x128xf32, #tpu.memory_space<vmem>>, vector<8x128xf32>
    %111 = vector.broadcast %99 : vector<1x128xf32> to vector<8x128xf32>
    %112 = arith.addf %111, %106 : vector<8x128xf32>
    %113 = arith.maximumf %102, %112 : vector<8x128xf32>
    %114 = arith.subf %102, %113 : vector<8x128xf32>
    %115 = math.exp %114 : vector<8x128xf32>
    %116 = vector.broadcast %99 : vector<1x128xf32> to vector<8x128xf32>
    %117 = arith.addf %116, %106 : vector<8x128xf32>
    %118 = arith.subf %117, %113 : vector<8x128xf32>
    %119 = math.exp %118 : vector<8x128xf32>
    %120 = arith.mulf %115, %101 : vector<8x128xf32>
    %121 = arith.addf %120, %119 : vector<8x128xf32>
    %122 = tpu.reciprocal %121 {approx = true} : vector<8x128xf32> -> vector<8x128xf32>
    %123 = arith.mulf %121, %122 : vector<8x128xf32>
    %cst_56 = arith.constant 2.000000e+00 : f32
    %124 = vector.broadcast %cst_56 : f32 to vector<8x128xf32>
    %125 = arith.subf %124, %123 : vector<8x128xf32>
    %126 = arith.mulf %122, %125 : vector<8x128xf32>
    %127 = arith.mulf %115, %100 : vector<8x128xf32>
    %128 = arith.mulf %119, %108 : vector<8x128xf32>
    %129 = arith.addf %127, %128 : vector<8x128xf32>
    %130 = arith.mulf %129, %126 : vector<8x128xf32>
    %131 = arith.mulf %110, %130 : vector<8x128xf32>
    %132 = arith.index_cast %104 : i32 to index
    %c0_57 = arith.constant 0 : index
    %133 = vector.load %arg25[%132, %c0_57] : memref<64x128xf32, #tpu.memory_space<vmem>>, vector<8x128xf32>
    tpu.vector_store %arg25[%132, %c0_57], %131 {strides = array<i32>} : memref<64x128xf32, #tpu.memory_space<vmem>>, vector<8x128xf32>,
    %134 = vector.broadcast %98 : vector<1x128xf32> to vector<8x128xf32>
    %135 = arith.addf %134, %102 : vector<8x128xf32>
    %136 = arith.maximumf %135, %106 : vector<8x128xf32>
    %137 = vector.broadcast %98 : vector<1x128xf32> to vector<8x128xf32>
    %138 = arith.addf %137, %102 : vector<8x128xf32>
    %139 = arith.subf %138, %136 : vector<8x128xf32>
    %140 = math.exp %139 : vector<8x128xf32>
    %141 = arith.subf %106, %136 : vector<8x128xf32>
    %142 = math.exp %141 : vector<8x128xf32>
    %143 = arith.mulf %140, %100 : vector<8x128xf32>
    %144 = arith.mulf %142, %108 : vector<8x128xf32>
    %145 = arith.addf %143, %144 : vector<8x128xf32>
    %146 = arith.mulf %140, %101 : vector<8x128xf32>
    %147 = arith.addf %146, %142 : vector<8x128xf32>
    %c1_i32 = arith.constant 1 : i32
    %c8_i32_58 = arith.constant 8 : i32
    %148 = arith.muli %c1_i32, %c8_i32_58 : i32
    %149 = tpu.assume_multiple %148, 8 : i32
    %150 = arith.index_cast %149 : i32 to index
    %c0_59 = arith.constant 0 : index
    %151 = vector.load %arg23[%150, %c0_59] : memref<64x128xf32, #tpu.memory_space<vmem>>, vector<8x128xf32>
    %152 = arith.index_cast %149 : i32 to index
    %c0_60 = arith.constant 0 : index
    %153 = vector.load %arg24[%152, %c0_60] : memref<64x128xf32, #tpu.memory_space<vmem>>, vector<8x128xf32>
    %154 = arith.index_cast %149 : i32 to index
    %c0_61 = arith.constant 0 : index
    %155 = vector.load %arg25[%154, %c0_61] : memref<64x128xf32, #tpu.memory_space<vmem>>, vector<8x128xf32>
    %156 = vector.broadcast %99 : vector<1x128xf32> to vector<8x128xf32>
    %157 = arith.addf %156, %151 : vector<8x128xf32>
    %158 = arith.maximumf %136, %157 : vector<8x128xf32>
    %159 = arith.subf %136, %158 : vector<8x128xf32>
    %160 = math.exp %159 : vector<8x128xf32>
    %161 = vector.broadcast %99 : vector<1x128xf32> to vector<8x128xf32>
    %162 = arith.addf %161, %151 : vector<8x128xf32>
    %163 = arith.subf %162, %158 : vector<8x128xf32>
    %164 = math.exp %163 : vector<8x128xf32>
    %165 = arith.mulf %160, %147 : vector<8x128xf32>
    %166 = arith.addf %165, %164 : vector<8x128xf32>
    %167 = tpu.reciprocal %166 {approx = true} : vector<8x128xf32> -> vector<8x128xf32>
    %168 = arith.mulf %166, %167 : vector<8x128xf32>
    %cst_62 = arith.constant 2.000000e+00 : f32
    %169 = vector.broadcast %cst_62 : f32 to vector<8x128xf32>
    %170 = arith.subf %169, %168 : vector<8x128xf32>
    %171 = arith.mulf %167, %170 : vector<8x128xf32>
    %172 = arith.mulf %160, %145 : vector<8x128xf32>
    %173 = arith.mulf %164, %153 : vector<8x128xf32>
    %174 = arith.addf %172, %173 : vector<8x128xf32>
    %175 = arith.mulf %174, %171 : vector<8x128xf32>
    %176 = arith.mulf %155, %175 : vector<8x128xf32>
    %177 = arith.index_cast %149 : i32 to index
    %c0_63 = arith.constant 0 : index
    %178 = vector.load %arg25[%177, %c0_63] : memref<64x128xf32, #tpu.memory_space<vmem>>, vector<8x128xf32>
    tpu.vector_store %arg25[%177, %c0_63], %176 {strides = array<i32>} : memref<64x128xf32, #tpu.memory_space<vmem>>, vector<8x128xf32>,
    %179 = vector.broadcast %98 : vector<1x128xf32> to vector<8x128xf32>
    %180 = arith.addf %179, %136 : vector<8x128xf32>
    %181 = arith.maximumf %180, %151 : vector<8x128xf32>
    %182 = vector.broadcast %98 : vector<1x128xf32> to vector<8x128xf32>
    %183 = arith.addf %182, %136 : vector<8x128xf32>
    %184 = arith.subf %183, %181 : vector<8x128xf32>
    %185 = math.exp %184 : vector<8x128xf32>
    %186 = arith.subf %151, %181 : vector<8x128xf32>
    %187 = math.exp %186 : vector<8x128xf32>
    %188 = arith.mulf %185, %145 : vector<8x128xf32>
    %189 = arith.mulf %187, %153 : vector<8x128xf32>
    %190 = arith.addf %188, %189 : vector<8x128xf32>
    %191 = arith.mulf %185, %147 : vector<8x128xf32>
    %192 = arith.addf %191, %187 : vector<8x128xf32>
    %c2_i32 = arith.constant 2 : i32
    %c8_i32_64 = arith.constant 8 : i32
    %193 = arith.muli %c2_i32, %c8_i32_64 : i32
    %194 = tpu.assume_multiple %193, 8 : i32
    %195 = arith.index_cast %194 : i32 to index
    %c0_65 = arith.constant 0 : index
    %196 = vector.load %arg23[%195, %c0_65] : memref<64x128xf32, #tpu.memory_space<vmem>>, vector<8x128xf32>
    %197 = arith.index_cast %194 : i32 to index
    %c0_66 = arith.constant 0 : index
    %198 = vector.load %arg24[%197, %c0_66] : memref<64x128xf32, #tpu.memory_space<vmem>>, vector<8x128xf32>
    %199 = arith.index_cast %194 : i32 to index
    %c0_67 = arith.constant 0 : index
    %200 = vector.load %arg25[%199, %c0_67] : memref<64x128xf32, #tpu.memory_space<vmem>>, vector<8x128xf32>
    %201 = vector.broadcast %99 : vector<1x128xf32> to vector<8x128xf32>
    %202 = arith.addf %201, %196 : vector<8x128xf32>
    %203 = arith.maximumf %181, %202 : vector<8x128xf32>
    %204 = arith.subf %181, %203 : vector<8x128xf32>
    %205 = math.exp %204 : vector<8x128xf32>
    %206 = vector.broadcast %99 : vector<1x128xf32> to vector<8x128xf32>
    %207 = arith.addf %206, %196 : vector<8x128xf32>
    %208 = arith.subf %207, %203 : vector<8x128xf32>
    %209 = math.exp %208 : vector<8x128xf32>
    %210 = arith.mulf %205, %192 : vector<8x128xf32>
    %211 = arith.addf %210, %209 : vector<8x128xf32>
    %212 = tpu.reciprocal %211 {approx = true} : vector<8x128xf32> -> vector<8x128xf32>
    %213 = arith.mulf %211, %212 : vector<8x128xf32>
    %cst_68 = arith.constant 2.000000e+00 : f32
    %214 = vector.broadcast %cst_68 : f32 to vector<8x128xf32>
    %215 = arith.subf %214, %213 : vector<8x128xf32>
    %216 = arith.mulf %212, %215 : vector<8x128xf32>
    %217 = arith.mulf %205, %190 : vector<8x128xf32>
    %218 = arith.mulf %209, %198 : vector<8x128xf32>
    %219 = arith.addf %217, %218 : vector<8x128xf32>
    %220 = arith.mulf %219, %216 : vector<8x128xf32>
    %221 = arith.mulf %200, %220 : vector<8x128xf32>
    %222 = arith.index_cast %194 : i32 to index
    %c0_69 = arith.constant 0 : index
    %223 = vector.load %arg25[%222, %c0_69] : memref<64x128xf32, #tpu.memory_space<vmem>>, vector<8x128xf32>
    tpu.vector_store %arg25[%222, %c0_69], %221 {strides = array<i32>} : memref<64x128xf32, #tpu.memory_space<vmem>>, vector<8x128xf32>,
    %224 = vector.broadcast %98 : vector<1x128xf32> to vector<8x128xf32>
    %225 = arith.addf %224, %181 : vector<8x128xf32>
    %226 = arith.maximumf %225, %196 : vector<8x128xf32>
    %227 = vector.broadcast %98 : vector<1x128xf32> to vector<8x128xf32>
    %228 = arith.addf %227, %181 : vector<8x128xf32>
    %229 = arith.subf %228, %226 : vector<8x128xf32>
    %230 = math.exp %229 : vector<8x128xf32>
    %231 = arith.subf %196, %226 : vector<8x128xf32>
    %232 = math.exp %231 : vector<8x128xf32>
    %233 = arith.mulf %230, %190 : vector<8x128xf32>
    %234 = arith.mulf %232, %198 : vector<8x128xf32>
    %235 = arith.addf %233, %234 : vector<8x128xf32>
    %236 = arith.mulf %230, %192 : vector<8x128xf32>
    %237 = arith.addf %236, %232 : vector<8x128xf32>
    %c3_i32 = arith.constant 3 : i32
    %c8_i32_70 = arith.constant 8 : i32
    %238 = arith.muli %c3_i32, %c8_i32_70 : i32
    %239 = tpu.assume_multiple %238, 8 : i32
    %240 = arith.index_cast %239 : i32 to index
    %c0_71 = arith.constant 0 : index
    %241 = vector.load %arg23[%240, %c0_71] : memref<64x128xf32, #tpu.memory_space<vmem>>, vector<8x128xf32>
    %242 = arith.index_cast %239 : i32 to index
    %c0_72 = arith.constant 0 : index
    %243 = vector.load %arg24[%242, %c0_72] : memref<64x128xf32, #tpu.memory_space<vmem>>, vector<8x128xf32>
    %244 = arith.index_cast %239 : i32 to index
    %c0_73 = arith.constant 0 : index
    %245 = vector.load %arg25[%244, %c0_73] : memref<64x128xf32, #tpu.memory_space<vmem>>, vector<8x128xf32>
    %246 = vector.broadcast %99 : vector<1x128xf32> to vector<8x128xf32>
    %247 = arith.addf %246, %241 : vector<8x128xf32>
    %248 = arith.maximumf %226, %247 : vector<8x128xf32>
    %249 = arith.subf %226, %248 : vector<8x128xf32>
    %250 = math.exp %249 : vector<8x128xf32>
    %251 = vector.broadcast %99 : vector<1x128xf32> to vector<8x128xf32>
    %252 = arith.addf %251, %241 : vector<8x128xf32>
    %253 = arith.subf %252, %248 : vector<8x128xf32>
    %254 = math.exp %253 : vector<8x128xf32>
    %255 = arith.mulf %250, %237 : vector<8x128xf32>
    %256 = arith.addf %255, %254 : vector<8x128xf32>
    %257 = tpu.reciprocal %256 {approx = true} : vector<8x128xf32> -> vector<8x128xf32>
    %258 = arith.mulf %256, %257 : vector<8x128xf32>
    %cst_74 = arith.constant 2.000000e+00 : f32
    %259 = vector.broadcast %cst_74 : f32 to vector<8x128xf32>
    %260 = arith.subf %259, %258 : vector<8x128xf32>
    %261 = arith.mulf %257, %260 : vector<8x128xf32>
    %262 = arith.mulf %250, %235 : vector<8x128xf32>
    %263 = arith.mulf %254, %243 : vector<8x128xf32>
    %264 = arith.addf %262, %263 : vector<8x128xf32>
    %265 = arith.mulf %264, %261 : vector<8x128xf32>
    %266 = arith.mulf %245, %265 : vector<8x128xf32>
    %267 = arith.index_cast %239 : i32 to index
    %c0_75 = arith.constant 0 : index
    %268 = vector.load %arg25[%267, %c0_75] : memref<64x128xf32, #tpu.memory_space<vmem>>, vector<8x128xf32>
    tpu.vector_store %arg25[%267, %c0_75], %266 {strides = array<i32>} : memref<64x128xf32, #tpu.memory_space<vmem>>, vector<8x128xf32>,
    %269 = vector.broadcast %98 : vector<1x128xf32> to vector<8x128xf32>
    %270 = arith.addf %269, %226 : vector<8x128xf32>
    %271 = arith.maximumf %270, %241 : vector<8x128xf32>
    %272 = vector.broadcast %98 : vector<1x128xf32> to vector<8x128xf32>
    %273 = arith.addf %272, %226 : vector<8x128xf32>
    %274 = arith.subf %273, %271 : vector<8x128xf32>
    %275 = math.exp %274 : vector<8x128xf32>
    %276 = arith.subf %241, %271 : vector<8x128xf32>
    %277 = math.exp %276 : vector<8x128xf32>
    %278 = arith.mulf %275, %235 : vector<8x128xf32>
    %279 = arith.mulf %277, %243 : vector<8x128xf32>
    %280 = arith.addf %278, %279 : vector<8x128xf32>
    %281 = arith.mulf %275, %237 : vector<8x128xf32>
    %282 = arith.addf %281, %277 : vector<8x128xf32>
    %c4_i32 = arith.constant 4 : i32
    %c8_i32_76 = arith.constant 8 : i32
    %283 = arith.muli %c4_i32, %c8_i32_76 : i32
    %284 = tpu.assume_multiple %283, 8 : i32
    %285 = arith.index_cast %284 : i32 to index
    %c0_77 = arith.constant 0 : index
    %286 = vector.load %arg23[%285, %c0_77] : memref<64x128xf32, #tpu.memory_space<vmem>>, vector<8x128xf32>
    %287 = arith.index_cast %284 : i32 to index
    %c0_78 = arith.constant 0 : index
    %288 = vector.load %arg24[%287, %c0_78] : memref<64x128xf32, #tpu.memory_space<vmem>>, vector<8x128xf32>
    %289 = arith.index_cast %284 : i32 to index
    %c0_79 = arith.constant 0 : index
    %290 = vector.load %arg25[%289, %c0_79] : memref<64x128xf32, #tpu.memory_space<vmem>>, vector<8x128xf32>
    %291 = vector.broadcast %99 : vector<1x128xf32> to vector<8x128xf32>
    %292 = arith.addf %291, %286 : vector<8x128xf32>
    %293 = arith.maximumf %271, %292 : vector<8x128xf32>
    %294 = arith.subf %271, %293 : vector<8x128xf32>
    %295 = math.exp %294 : vector<8x128xf32>
    %296 = vector.broadcast %99 : vector<1x128xf32> to vector<8x128xf32>
    %297 = arith.addf %296, %286 : vector<8x128xf32>
    %298 = arith.subf %297, %293 : vector<8x128xf32>
    %299 = math.exp %298 : vector<8x128xf32>
    %300 = arith.mulf %295, %282 : vector<8x128xf32>
    %301 = arith.addf %300, %299 : vector<8x128xf32>
    %302 = tpu.reciprocal %301 {approx = true} : vector<8x128xf32> -> vector<8x128xf32>
    %303 = arith.mulf %301, %302 : vector<8x128xf32>
    %cst_80 = arith.constant 2.000000e+00 : f32
    %304 = vector.broadcast %cst_80 : f32 to vector<8x128xf32>
    %305 = arith.subf %304, %303 : vector<8x128xf32>
    %306 = arith.mulf %302, %305 : vector<8x128xf32>
    %307 = arith.mulf %295, %280 : vector<8x128xf32>
    %308 = arith.mulf %299, %288 : vector<8x128xf32>
    %309 = arith.addf %307, %308 : vector<8x128xf32>
    %310 = arith.mulf %309, %306 : vector<8x128xf32>
    %311 = arith.mulf %290, %310 : vector<8x128xf32>
    %312 = arith.index_cast %284 : i32 to index
    %c0_81 = arith.constant 0 : index
    %313 = vector.load %arg25[%312, %c0_81] : memref<64x128xf32, #tpu.memory_space<vmem>>, vector<8x128xf32>
    tpu.vector_store %arg25[%312, %c0_81], %311 {strides = array<i32>} : memref<64x128xf32, #tpu.memory_space<vmem>>, vector<8x128xf32>,
    %314 = vector.broadcast %98 : vector<1x128xf32> to vector<8x128xf32>
    %315 = arith.addf %314, %271 : vector<8x128xf32>
    %316 = arith.maximumf %315, %286 : vector<8x128xf32>
    %317 = vector.broadcast %98 : vector<1x128xf32> to vector<8x128xf32>
    %318 = arith.addf %317, %271 : vector<8x128xf32>
    %319 = arith.subf %318, %316 : vector<8x128xf32>
    %320 = math.exp %319 : vector<8x128xf32>
    %321 = arith.subf %286, %316 : vector<8x128xf32>
    %322 = math.exp %321 : vector<8x128xf32>
    %323 = arith.mulf %320, %280 : vector<8x128xf32>
    %324 = arith.mulf %322, %288 : vector<8x128xf32>
    %325 = arith.addf %323, %324 : vector<8x128xf32>
    %326 = arith.mulf %320, %282 : vector<8x128xf32>
    %327 = arith.addf %326, %322 : vector<8x128xf32>
    %c5_i32 = arith.constant 5 : i32
    %c8_i32_82 = arith.constant 8 : i32
    %328 = arith.muli %c5_i32, %c8_i32_82 : i32
    %329 = tpu.assume_multiple %328, 8 : i32
    %330 = arith.index_cast %329 : i32 to index
    %c0_83 = arith.constant 0 : index
    %331 = vector.load %arg23[%330, %c0_83] : memref<64x128xf32, #tpu.memory_space<vmem>>, vector<8x128xf32>
    %332 = arith.index_cast %329 : i32 to index
    %c0_84 = arith.constant 0 : index
    %333 = vector.load %arg24[%332, %c0_84] : memref<64x128xf32, #tpu.memory_space<vmem>>, vector<8x128xf32>
    %334 = arith.index_cast %329 : i32 to index
    %c0_85 = arith.constant 0 : index
    %335 = vector.load %arg25[%334, %c0_85] : memref<64x128xf32, #tpu.memory_space<vmem>>, vector<8x128xf32>
    %336 = vector.broadcast %99 : vector<1x128xf32> to vector<8x128xf32>
    %337 = arith.addf %336, %331 : vector<8x128xf32>
    %338 = arith.maximumf %316, %337 : vector<8x128xf32>
    %339 = arith.subf %316, %338 : vector<8x128xf32>
    %340 = math.exp %339 : vector<8x128xf32>
    %341 = vector.broadcast %99 : vector<1x128xf32> to vector<8x128xf32>
    %342 = arith.addf %341, %331 : vector<8x128xf32>
    %343 = arith.subf %342, %338 : vector<8x128xf32>
    %344 = math.exp %343 : vector<8x128xf32>
    %345 = arith.mulf %340, %327 : vector<8x128xf32>
    %346 = arith.addf %345, %344 : vector<8x128xf32>
    %347 = tpu.reciprocal %346 {approx = true} : vector<8x128xf32> -> vector<8x128xf32>
    %348 = arith.mulf %346, %347 : vector<8x128xf32>
    %cst_86 = arith.constant 2.000000e+00 : f32
    %349 = vector.broadcast %cst_86 : f32 to vector<8x128xf32>
    %350 = arith.subf %349, %348 : vector<8x128xf32>
    %351 = arith.mulf %347, %350 : vector<8x128xf32>
    %352 = arith.mulf %340, %325 : vector<8x128xf32>
    %353 = arith.mulf %344, %333 : vector<8x128xf32>
    %354 = arith.addf %352, %353 : vector<8x128xf32>
    %355 = arith.mulf %354, %351 : vector<8x128xf32>
    %356 = arith.mulf %335, %355 : vector<8x128xf32>
    %357 = arith.index_cast %329 : i32 to index
    %c0_87 = arith.constant 0 : index
    %358 = vector.load %arg25[%357, %c0_87] : memref<64x128xf32, #tpu.memory_space<vmem>>, vector<8x128xf32>
    tpu.vector_store %arg25[%357, %c0_87], %356 {strides = array<i32>} : memref<64x128xf32, #tpu.memory_space<vmem>>, vector<8x128xf32>,
    %359 = vector.broadcast %98 : vector<1x128xf32> to vector<8x128xf32>
    %360 = arith.addf %359, %316 : vector<8x128xf32>
    %361 = arith.maximumf %360, %331 : vector<8x128xf32>
    %362 = vector.broadcast %98 : vector<1x128xf32> to vector<8x128xf32>
    %363 = arith.addf %362, %316 : vector<8x128xf32>
    %364 = arith.subf %363, %361 : vector<8x128xf32>
    %365 = math.exp %364 : vector<8x128xf32>
    %366 = arith.subf %331, %361 : vector<8x128xf32>
    %367 = math.exp %366 : vector<8x128xf32>
    %368 = arith.mulf %365, %325 : vector<8x128xf32>
    %369 = arith.mulf %367, %333 : vector<8x128xf32>
    %370 = arith.addf %368, %369 : vector<8x128xf32>
    %371 = arith.mulf %365, %327 : vector<8x128xf32>
    %372 = arith.addf %371, %367 : vector<8x128xf32>
    %c6_i32 = arith.constant 6 : i32
    %c8_i32_88 = arith.constant 8 : i32
    %373 = arith.muli %c6_i32, %c8_i32_88 : i32
    %374 = tpu.assume_multiple %373, 8 : i32
    %375 = arith.index_cast %374 : i32 to index
    %c0_89 = arith.constant 0 : index
    %376 = vector.load %arg23[%375, %c0_89] : memref<64x128xf32, #tpu.memory_space<vmem>>, vector<8x128xf32>
    %377 = arith.index_cast %374 : i32 to index
    %c0_90 = arith.constant 0 : index
    %378 = vector.load %arg24[%377, %c0_90] : memref<64x128xf32, #tpu.memory_space<vmem>>, vector<8x128xf32>
    %379 = arith.index_cast %374 : i32 to index
    %c0_91 = arith.constant 0 : index
    %380 = vector.load %arg25[%379, %c0_91] : memref<64x128xf32, #tpu.memory_space<vmem>>, vector<8x128xf32>
    %381 = vector.broadcast %99 : vector<1x128xf32> to vector<8x128xf32>
    %382 = arith.addf %381, %376 : vector<8x128xf32>
    %383 = arith.maximumf %361, %382 : vector<8x128xf32>
    %384 = arith.subf %361, %383 : vector<8x128xf32>
    %385 = math.exp %384 : vector<8x128xf32>
    %386 = vector.broadcast %99 : vector<1x128xf32> to vector<8x128xf32>
    %387 = arith.addf %386, %376 : vector<8x128xf32>
    %388 = arith.subf %387, %383 : vector<8x128xf32>
    %389 = math.exp %388 : vector<8x128xf32>
    %390 = arith.mulf %385, %372 : vector<8x128xf32>
    %391 = arith.addf %390, %389 : vector<8x128xf32>
    %392 = tpu.reciprocal %391 {approx = true} : vector<8x128xf32> -> vector<8x128xf32>
    %393 = arith.mulf %391, %392 : vector<8x128xf32>
    %cst_92 = arith.constant 2.000000e+00 : f32
    %394 = vector.broadcast %cst_92 : f32 to vector<8x128xf32>
    %395 = arith.subf %394, %393 : vector<8x128xf32>
    %396 = arith.mulf %392, %395 : vector<8x128xf32>
    %397 = arith.mulf %385, %370 : vector<8x128xf32>
    %398 = arith.mulf %389, %378 : vector<8x128xf32>
    %399 = arith.addf %397, %398 : vector<8x128xf32>
    %400 = arith.mulf %399, %396 : vector<8x128xf32>
    %401 = arith.mulf %380, %400 : vector<8x128xf32>
    %402 = arith.index_cast %374 : i32 to index
    %c0_93 = arith.constant 0 : index
    %403 = vector.load %arg25[%402, %c0_93] : memref<64x128xf32, #tpu.memory_space<vmem>>, vector<8x128xf32>
    tpu.vector_store %arg25[%402, %c0_93], %401 {strides = array<i32>} : memref<64x128xf32, #tpu.memory_space<vmem>>, vector<8x128xf32>,
    %404 = vector.broadcast %98 : vector<1x128xf32> to vector<8x128xf32>
    %405 = arith.addf %404, %361 : vector<8x128xf32>
    %406 = arith.maximumf %405, %376 : vector<8x128xf32>
    %407 = vector.broadcast %98 : vector<1x128xf32> to vector<8x128xf32>
    %408 = arith.addf %407, %361 : vector<8x128xf32>
    %409 = arith.subf %408, %406 : vector<8x128xf32>
    %410 = math.exp %409 : vector<8x128xf32>
    %411 = arith.subf %376, %406 : vector<8x128xf32>
    %412 = math.exp %411 : vector<8x128xf32>
    %413 = arith.mulf %410, %370 : vector<8x128xf32>
    %414 = arith.mulf %412, %378 : vector<8x128xf32>
    %415 = arith.addf %413, %414 : vector<8x128xf32>
    %416 = arith.mulf %410, %372 : vector<8x128xf32>
    %417 = arith.addf %416, %412 : vector<8x128xf32>
    %c7_i32 = arith.constant 7 : i32
    %c8_i32_94 = arith.constant 8 : i32
    %418 = arith.muli %c7_i32, %c8_i32_94 : i32
    %419 = tpu.assume_multiple %418, 8 : i32
    %420 = arith.index_cast %419 : i32 to index
    %c0_95 = arith.constant 0 : index
    %421 = vector.load %arg23[%420, %c0_95] : memref<64x128xf32, #tpu.memory_space<vmem>>, vector<8x128xf32>
    %422 = arith.index_cast %419 : i32 to index
    %c0_96 = arith.constant 0 : index
    %423 = vector.load %arg24[%422, %c0_96] : memref<64x128xf32, #tpu.memory_space<vmem>>, vector<8x128xf32>
    %424 = arith.index_cast %419 : i32 to index
    %c0_97 = arith.constant 0 : index
    %425 = vector.load %arg25[%424, %c0_97] : memref<64x128xf32, #tpu.memory_space<vmem>>, vector<8x128xf32>
    %426 = vector.broadcast %99 : vector<1x128xf32> to vector<8x128xf32>
    %427 = arith.addf %426, %421 : vector<8x128xf32>
    %428 = arith.maximumf %406, %427 : vector<8x128xf32>
    %429 = arith.subf %406, %428 : vector<8x128xf32>
    %430 = math.exp %429 : vector<8x128xf32>
    %431 = vector.broadcast %99 : vector<1x128xf32> to vector<8x128xf32>
    %432 = arith.addf %431, %421 : vector<8x128xf32>
    %433 = arith.subf %432, %428 : vector<8x128xf32>
    %434 = math.exp %433 : vector<8x128xf32>
    %435 = arith.mulf %430, %417 : vector<8x128xf32>
    %436 = arith.addf %435, %434 : vector<8x128xf32>
    %437 = tpu.reciprocal %436 {approx = true} : vector<8x128xf32> -> vector<8x128xf32>
    %438 = arith.mulf %436, %437 : vector<8x128xf32>
    %cst_98 = arith.constant 2.000000e+00 : f32
    %439 = vector.broadcast %cst_98 : f32 to vector<8x128xf32>
    %440 = arith.subf %439, %438 : vector<8x128xf32>
    %441 = arith.mulf %437, %440 : vector<8x128xf32>
    %442 = arith.mulf %430, %415 : vector<8x128xf32>
    %443 = arith.mulf %434, %423 : vector<8x128xf32>
    %444 = arith.addf %442, %443 : vector<8x128xf32>
    %445 = arith.mulf %444, %441 : vector<8x128xf32>
    %446 = arith.mulf %425, %445 : vector<8x128xf32>
    %447 = arith.index_cast %419 : i32 to index
    %c0_99 = arith.constant 0 : index
    %448 = vector.load %arg25[%447, %c0_99] : memref<64x128xf32, #tpu.memory_space<vmem>>, vector<8x128xf32>
    tpu.vector_store %arg25[%447, %c0_99], %446 {strides = array<i32>} : memref<64x128xf32, #tpu.memory_space<vmem>>, vector<8x128xf32>,
    %449 = vector.broadcast %98 : vector<1x128xf32> to vector<8x128xf32>
    %450 = arith.addf %449, %406 : vector<8x128xf32>
    %451 = arith.maximumf %450, %421 : vector<8x128xf32>
    %452 = vector.broadcast %98 : vector<1x128xf32> to vector<8x128xf32>
    %453 = arith.addf %452, %406 : vector<8x128xf32>
    %454 = arith.subf %453, %451 : vector<8x128xf32>
    %455 = math.exp %454 : vector<8x128xf32>
    %456 = arith.subf %421, %451 : vector<8x128xf32>
    %457 = math.exp %456 : vector<8x128xf32>
    %458 = arith.mulf %455, %415 : vector<8x128xf32>
    %459 = arith.mulf %457, %423 : vector<8x128xf32>
    %460 = arith.addf %458, %459 : vector<8x128xf32>
    %461 = arith.mulf %455, %417 : vector<8x128xf32>
    %462 = arith.addf %461, %457 : vector<8x128xf32>
    %c8_i32_100 = arith.constant 8 : i32
    %c0_101 = arith.constant 0 : index
    %c0_102 = arith.constant 0 : index
    %463 = vector.load %arg25[%c0_101, %c0_102] : memref<64x128xf32, #tpu.memory_space<vmem>>, vector<64x128xf32>
    %c0_103 = arith.constant 0 : index
    %c0_104 = arith.constant 0 : index
    %464 = vector.load %arg16[%c0_103, %c0_104] : memref<128x128xbf16, #tpu.memory_space<vmem>>, vector<128x128xbf16>
    %465 = arith.truncf %463 : vector<64x128xf32> to vector<64x128xbf16>
    %cst_105 = arith.constant dense<0.000000e+00> : vector<64x128xf32>
    %466 = tpu.matmul %465, %464, %cst_105 {dimension_numbers = #tpu.dot_dimension_numbers<[1], [0], [0], [1], [0, 0, 1, 1], [], []>} : vector<64x128xbf16>, vector<128x128xbf16>, vector<64x128xf32> -> vector<64x128xf32>
    %467 = arith.addf %26, %466 : vector<64x128xf32>
    %cst_106 = arith.constant dense<0.000000e+00> : vector<64xf32>
    %468 = vector.multi_reduction <add>, %467, %cst_106 [1] : vector<64x128xf32> to vector<64xf32>
    %469 = vector.shape_cast %468 : vector<64xf32> to vector<64x1xf32>
    %cst_107 = arith.constant 1.280000e+02 : f32
    %470 = vector.broadcast %cst_107 : f32 to vector<64x1xf32>
    %471 = arith.divf %469, %470 : vector<64x1xf32>
    %472 = vector.broadcast %471 : vector<64x1xf32> to vector<64x128xf32>
    %473 = arith.subf %467, %472 : vector<64x128xf32>
    %474 = arith.mulf %473, %473 : vector<64x128xf32>
    %cst_108 = arith.constant dense<0.000000e+00> : vector<64xf32>
    %475 = vector.multi_reduction <add>, %474, %cst_108 [1] : vector<64x128xf32> to vector<64xf32>
    %476 = vector.shape_cast %475 : vector<64xf32> to vector<64x1xf32>
    %cst_109 = arith.constant 1.280000e+02 : f32
    %477 = vector.broadcast %cst_109 : f32 to vector<64x1xf32>
    %478 = arith.divf %476, %477 : vector<64x1xf32>
    %479 = vector.broadcast %471 : vector<64x1xf32> to vector<64x128xf32>
    %480 = arith.subf %467, %479 : vector<64x128xf32>
    %cst_110 = arith.constant 9.99999974E-6 : f32
    %481 = vector.broadcast %cst_110 : f32 to vector<64x1xf32>
    %482 = arith.addf %478, %481 : vector<64x1xf32>
    %483 = math.rsqrt %482 : vector<64x1xf32>
    %484 = vector.broadcast %483 : vector<64x1xf32> to vector<64x128xf32>
    %485 = arith.mulf %480, %484 : vector<64x128xf32>
    %c0_111 = arith.constant 0 : index
    %c0_112 = arith.constant 0 : index
    %486 = vector.load %arg6[%c0_111, %c0_112] : memref<1x128xf32, #tpu.memory_space<vmem>>, vector<1x128xf32>
    %487 = vector.broadcast %486 : vector<1x128xf32> to vector<64x128xf32>
    %488 = arith.mulf %485, %487 : vector<64x128xf32>
    %c0_113 = arith.constant 0 : index
    %c0_114 = arith.constant 0 : index
    %489 = vector.load %arg7[%c0_113, %c0_114] : memref<1x128xf32, #tpu.memory_space<vmem>>, vector<1x128xf32>
    %490 = vector.broadcast %489 : vector<1x128xf32> to vector<64x128xf32>
    %491 = arith.addf %488, %490 : vector<64x128xf32>
    %cst_115 = arith.constant 0.000000e+00 : f32
    %492 = vector.broadcast %cst_115 : f32 to vector<8x128xf32>
    %493 = vector.extract_strided_slice %491 {offsets = [0, 0], sizes = [56, 128], strides = [1, 1]} : vector<64x128xf32> to vector<56x128xf32>
    %494 = tpu.concatenate %492, %493 in 0 : vector<8x128xf32>, vector<56x128xf32> -> vector<64x128xf32>
    %c0_116 = arith.constant 0 : index
    %c0_117 = arith.constant 0 : index
    %495 = vector.load %arg17[%c0_116, %c0_117] : memref<1x128xf32, #tpu.memory_space<vmem>>, vector<1x128xf32>
    %c0_118 = arith.constant 0 : index
    %c0_119 = arith.constant 0 : index
    %496 = vector.load %arg18[%c0_118, %c0_119] : memref<1x128xf32, #tpu.memory_space<vmem>>, vector<1x128xf32>
    %497 = vector.broadcast %495 : vector<1x128xf32> to vector<64x128xf32>
    %498 = arith.mulf %491, %497 : vector<64x128xf32>
    %cst_120 = arith.constant 1.000000e+00 : f32
    %499 = vector.broadcast %cst_120 : f32 to vector<1x128xf32>
    %500 = arith.subf %499, %495 : vector<1x128xf32>
    %501 = vector.broadcast %500 : vector<1x128xf32> to vector<64x128xf32>
    %502 = arith.mulf %494, %501 : vector<64x128xf32>
    %503 = arith.addf %498, %502 : vector<64x128xf32>
    %504 = vector.broadcast %496 : vector<1x128xf32> to vector<64x128xf32>
    %505 = arith.mulf %491, %504 : vector<64x128xf32>
    %cst_121 = arith.constant 1.000000e+00 : f32
    %506 = vector.broadcast %cst_121 : f32 to vector<1x128xf32>
    %507 = arith.subf %506, %496 : vector<1x128xf32>
    %508 = vector.broadcast %507 : vector<1x128xf32> to vector<64x128xf32>
    %509 = arith.mulf %494, %508 : vector<64x128xf32>
    %510 = arith.addf %505, %509 : vector<64x128xf32>
    %511 = arith.truncf %503 : vector<64x128xf32> to vector<64x128xbf16>
    %cst_122 = arith.constant 0.000000e+00 : f32
    %512 = vector.broadcast %cst_122 : f32 to vector<64x128xf32>
    %c0_123 = arith.constant 0 : index
    %c0_124 = arith.constant 0 : index
    %513 = vector.load %arg19[%c0_123, %c0_124] : memref<128x512xbf16, #tpu.memory_space<vmem>>, vector<128x512xbf16>
    %cst_125 = arith.constant dense<0.000000e+00> : vector<64x512xf32>
    %514 = tpu.matmul %511, %513, %cst_125 {dimension_numbers = #tpu.dot_dimension_numbers<[1], [0], [0], [1], [0, 0, 1, 1], [], []>} : vector<64x128xbf16>, vector<128x512xbf16>, vector<64x512xf32> -> vector<64x512xf32>
    %cst_126 = arith.constant 0.000000e+00 : f32
    %515 = vector.broadcast %cst_126 : f32 to vector<64x512xf32>
    %516 = arith.maximumf %514, %515 : vector<64x512xf32>
    %517 = arith.mulf %516, %516 : vector<64x512xf32>
    %518 = arith.truncf %517 : vector<64x512xf32> to vector<64x512xbf16>
    %c0_127 = arith.constant 0 : index
    %c0_128 = arith.constant 0 : index
    %519 = vector.load %arg21[%c0_127, %c0_128] : memref<512x128xbf16, #tpu.memory_space<vmem>>, vector<512x128xbf16>
    %cst_129 = arith.constant dense<0.000000e+00> : vector<64x128xf32>
    %520 = tpu.matmul %518, %519, %cst_129 {dimension_numbers = #tpu.dot_dimension_numbers<[1], [0], [0], [1], [0, 0, 1, 1], [], []>} : vector<64x512xbf16>, vector<512x128xbf16>, vector<64x128xf32> -> vector<64x128xf32>
    %521 = arith.addf %512, %520 : vector<64x128xf32>
    %c0_130 = arith.constant 0 : index
    %c0_131 = arith.constant 0 : index
    %522 = vector.load %arg20[%c0_130, %c0_131] : memref<128x128xbf16, #tpu.memory_space<vmem>>, vector<128x128xbf16>
    %523 = arith.truncf %510 : vector<64x128xf32> to vector<64x128xbf16>
    %cst_132 = arith.constant dense<0.000000e+00> : vector<64x128xf32>
    %524 = tpu.matmul %523, %522, %cst_132 {dimension_numbers = #tpu.dot_dimension_numbers<[1], [0], [0], [1], [0, 0, 1, 1], [], []>} : vector<64x128xbf16>, vector<128x128xbf16>, vector<64x128xf32> -> vector<64x128xf32>
    %525 = arith.negf %524 : vector<64x128xf32>
    %526 = math.exp %525 : vector<64x128xf32>
    %cst_133 = arith.constant 1.000000e+00 : f32
    %527 = vector.broadcast %cst_133 : f32 to vector<64x128xf32>
    %528 = arith.addf %527, %526 : vector<64x128xf32>
    %529 = arith.divf %527, %528 : vector<64x128xf32>
    %530 = arith.mulf %529, %521 : vector<64x128xf32>
    %531 = arith.addf %467, %530 : vector<64x128xf32>
    %532 = vector.shape_cast %531 : vector<64x128xf32> to vector<8x8x128xf32>
    %533 = arith.truncf %532 : vector<8x8x128xf32> to vector<8x8x128xbf16>
    %c0_134 = arith.constant 0 : index
    %c0_135 = arith.constant 0 : index
    %c0_136 = arith.constant 0 : index
    %534 = vector.load %arg22[%c0_134, %c0_135, %c0_136] : memref<8x8x128xbf16, #tpu.memory_space<vmem>>, vector<8x8x128xbf16>
    tpu.vector_store %arg22[%c0_134, %c0_135, %c0_136], %533 {strides = array<i32>} : memref<8x8x128xbf16, #tpu.memory_space<vmem>>, vector<8x8x128xbf16>,
    return
  }
  func.func @transform_0(%arg0: i32) -> (i32, i32, i32) {
    %c0_i32 = arith.constant 0 : i32
    %c0_i32_0 = arith.constant 0 : i32
    %c0_i32_1 = arith.constant 0 : i32
    return %c0_i32, %arg0, %c0_i32_0 : i32, i32, i32
  }
  func.func @transform_1(%arg0: i32) -> (i32, i32) {
    %c0_i32 = arith.constant 0 : i32
    %c0_i32_0 = arith.constant 0 : i32
    %c0_i32_1 = arith.constant 0 : i32
    return %c0_i32, %c0_i32_0 : i32, i32
  }
  func.func @transform_2(%arg0: i32) -> (i32, i32) {
    %c0_i32 = arith.constant 0 : i32
    %c0_i32_0 = arith.constant 0 : i32
    %c0_i32_1 = arith.constant 0 : i32
    return %c0_i32, %c0_i32_0 : i32, i32
  }
  func.func @transform_3(%arg0: i32) -> (i32, i32) {
    %c0_i32 = arith.constant 0 : i32
    %c0_i32_0 = arith.constant 0 : i32
    %c0_i32_1 = arith.constant 0 : i32
    return %c0_i32, %c0_i32_0 : i32, i32
  }
  func.func @transform_4(%arg0: i32) -> (i32, i32) {
    %c0_i32 = arith.constant 0 : i32
    %c0_i32_0 = arith.constant 0 : i32
    %c0_i32_1 = arith.constant 0 : i32
    return %c0_i32, %c0_i32_0 : i32, i32
  }
  func.func @transform_5(%arg0: i32) -> (i32, i32) {
    %c0_i32 = arith.constant 0 : i32
    %c0_i32_0 = arith.constant 0 : i32
    %c0_i32_1 = arith.constant 0 : i32
    return %c0_i32, %c0_i32_0 : i32, i32
  }
  func.func @transform_6(%arg0: i32) -> (i32, i32) {
    %c0_i32 = arith.constant 0 : i32
    %c0_i32_0 = arith.constant 0 : i32
    %c0_i32_1 = arith.constant 0 : i32
    return %c0_i32, %c0_i32_0 : i32, i32
  }
  func.func @transform_7(%arg0: i32) -> (i32, i32) {
    %c0_i32 = arith.constant 0 : i32
    %c0_i32_0 = arith.constant 0 : i32
    %c0_i32_1 = arith.constant 0 : i32
    return %c0_i32, %c0_i32_0 : i32, i32
  }
  func.func @transform_8(%arg0: i32) -> (i32, i32) {
    %c0_i32 = arith.constant 0 : i32
    %c0_i32_0 = arith.constant 0 : i32
    %c0_i32_1 = arith.constant 0 : i32
    return %c0_i32, %c0_i32_0 : i32, i32
  }
  func.func @transform_9(%arg0: i32) -> (i32, i32) {
    %c0_i32 = arith.constant 0 : i32
    %c0_i32_0 = arith.constant 0 : i32
    %c0_i32_1 = arith.constant 0 : i32
    return %c0_i32, %c0_i32_0 : i32, i32
  }
  func.func @transform_10(%arg0: i32) -> (i32, i32) {
    %c0_i32 = arith.constant 0 : i32
    %c0_i32_0 = arith.constant 0 : i32
    %c0_i32_1 = arith.constant 0 : i32
    return %c0_i32, %c0_i32_0 : i32, i32
  }
  func.func @transform_11(%arg0: i32) -> (i32, i32) {
    %c0_i32 = arith.constant 0 : i32
    %c0_i32_0 = arith.constant 0 : i32
    %c0_i32_1 = arith.constant 0 : i32
    return %c0_i32, %c0_i32_0 : i32, i32
  }
  func.func @transform_12(%arg0: i32) -> (i32, i32) {
    %c0_i32 = arith.constant 0 : i32
    %c0_i32_0 = arith.constant 0 : i32
    %c0_i32_1 = arith.constant 0 : i32
    return %c0_i32, %c0_i32_0 : i32, i32
  }
  func.func @transform_13(%arg0: i32) -> (i32, i32) {
    %c0_i32 = arith.constant 0 : i32
    %c0_i32_0 = arith.constant 0 : i32
    %c0_i32_1 = arith.constant 0 : i32
    return %c0_i32, %c0_i32_0 : i32, i32
  }
  func.func @transform_14(%arg0: i32) -> (i32, i32) {
    %c0_i32 = arith.constant 0 : i32
    %c0_i32_0 = arith.constant 0 : i32
    %c0_i32_1 = arith.constant 0 : i32
    return %c0_i32, %c0_i32_0 : i32, i32
  }
  func.func @transform_15(%arg0: i32) -> (i32, i32) {
    %c0_i32 = arith.constant 0 : i32
    %c0_i32_0 = arith.constant 0 : i32
    %c0_i32_1 = arith.constant 0 : i32
    return %c0_i32, %c0_i32_0 : i32, i32
  }
  func.func @transform_16(%arg0: i32) -> (i32, i32) {
    %c0_i32 = arith.constant 0 : i32
    %c0_i32_0 = arith.constant 0 : i32
    %c0_i32_1 = arith.constant 0 : i32
    return %c0_i32, %c0_i32_0 : i32, i32
  }
  func.func @transform_17(%arg0: i32) -> (i32, i32) {
    %c0_i32 = arith.constant 0 : i32
    %c0_i32_0 = arith.constant 0 : i32
    %c0_i32_1 = arith.constant 0 : i32
    return %c0_i32, %c0_i32_0 : i32, i32
  }
  func.func @transform_18(%arg0: i32) -> (i32, i32) {
    %c0_i32 = arith.constant 0 : i32
    %c0_i32_0 = arith.constant 0 : i32
    %c0_i32_1 = arith.constant 0 : i32
    return %c0_i32, %c0_i32_0 : i32, i32
  }
  func.func @transform_19(%arg0: i32) -> (i32, i32) {
    %c0_i32 = arith.constant 0 : i32
    %c0_i32_0 = arith.constant 0 : i32
    %c0_i32_1 = arith.constant 0 : i32
    return %c0_i32, %c0_i32_0 : i32, i32
  }
  func.func @transform_20(%arg0: i32) -> (i32, i32) {
    %c0_i32 = arith.constant 0 : i32
    %c0_i32_0 = arith.constant 0 : i32
    %c0_i32_1 = arith.constant 0 : i32
    return %c0_i32, %c0_i32_0 : i32, i32
  }
  func.func @transform_21(%arg0: i32) -> (i32, i32, i32) {
    %c0_i32 = arith.constant 0 : i32
    %c0_i32_0 = arith.constant 0 : i32
    %c0_i32_1 = arith.constant 0 : i32
    return %c0_i32, %arg0, %c0_i32_0 : i32, i32, i32
  }
}

</mosaic_0001>

<bundles_post_ra>
// kernel: tpu_custom_call.1
= control target key start
LH: loop header
LB: loop body
LE: loop exit
PB: predicated region body
PF: predicated region fallthrough
CT: control target
= control target key end

     0   :  { %s4880_s0 = inlined_call_operand.hbm [shape: bf16[8,8,128], index: 0, kind: input, shape index: {}]   ;;  %s4881_s1 = inlined_call_operand.vmem [shape: f32[1,128], index: 1, kind: input, shape index: {}]   ;;  %s4882_s2 = inlined_call_operand.vmem [shape: f32[1,128], index: 2, kind: input, shape index: {}]   ;;  %s4883_s3 = inlined_call_operand.vmem [shape: f32[1,128], index: 3, kind: input, shape index: {}]   ;;  %s4884_s4 = inlined_call_operand.vmem [shape: f32[1,128], index: 4, kind: input, shape index: {}]   ;;  %s4885_s5 = inlined_call_operand.vmem [shape: f32[1,128], index: 5, kind: input, shape index: {}]   ;;  %s4886_s6 = inlined_call_operand.vmem [shape: f32[1,128], index: 6, kind: input, shape index: {}]   ;;  %s4887_s7 = inlined_call_operand.vmem [shape: f32[1,128], index: 7, kind: input, shape index: {}]   ;;  %s4888_s8 = inlined_call_operand.hbm [shape: f32[1,128], index: 8, kind: input, shape index: {}]   ;;  %s4889_s9 = inlined_call_operand.hbm [shape: f32[1,128], index: 9, kind: input, shape index: {}]   ;;  %s4890_s10 = inlined_call_operand.hbm [shape: f32[1,128], index: 10, kind: input, shape index: {}]   ;;  %s4891_s11 = inlined_call_operand.hbm [shape: f32[1,128], index: 11, kind: input, shape index: {}]   ;;  %s4892_s12 = inlined_call_operand.hbm [shape: bf16[128,128], index: 12, kind: input, shape index: {}]   ;;  %s4893_s13 = inlined_call_operand.hbm [shape: bf16[128,128], index: 13, kind: input, shape index: {}]   ;;  %s4894_s14 = inlined_call_operand.hbm [shape: bf16[128,128], index: 14, kind: input, shape index: {}]   ;;  %s4895_s15 = inlined_call_operand.hbm [shape: bf16[128,128], index: 15, kind: input, shape index: {}]   ;;  %s4896_s16 = inlined_call_operand.hbm [shape: f32[1,128], index: 16, kind: input, shape index: {}]   ;;  %s4897_s17 = inlined_call_operand.hbm [shape: f32[1,128], index: 17, kind: input, shape index: {}]   ;;  %s4898_s18 = inlined_call_operand.hbm [shape: bf16[128,512], index: 18, kind: input, shape index: {}]   ;;  %s4899_s19 = inlined_call_operand.vmem [shape: bf16[128,128], index: 19, kind: input, shape index: {}]   ;;  %s4900_s20 = inlined_call_operand.hbm [shape: bf16[512,128], index: 20, kind: input, shape index: {}]   ;;  %s4901_s21 = inlined_call_operand.hbm [shape: bf16[8,8,128], index: 21, kind: output, shape index: {}]  }
   0x1   :  { %4903 = sst [smem:[#allocation35_spill]] %s4880_s0 }
   0x2   :  { %4904 = sst [smem:[#allocation36_spill]] %s4881_s1 }
   0x3   :  { %4905 = sst [smem:[#allocation37_spill]] %s4882_s2 }
   0x4   :  { %4906 = sst [smem:[#allocation38_spill]] %s4883_s3 }
   0x5   :  { %4907 = sst [smem:[#allocation39_spill]] %s4884_s4 }
   0x6   :  { %4908 = sst [smem:[#allocation40_spill]] %s4885_s5 }
   0x7   :  { %26 = vsyncpa [#allocation6], 0 }
   0x8   :  { %27 = vsyncpa [#allocation9], 0 }
   0x9   :  { %28 = vsyncpa [#allocation12], 0 }
   0xa   :  { %29 = vsyncpa [#allocation15], 0 }
   0xb   :  { %30 = vsyncpa [#allocation18], 0 }
   0xc   :  { %31 = vsyncpa [#allocation21], 0 }
   0xd   :  { %32 = vsyncpa [#allocation24], 0 }
   0xe   :  { %33 = vsyncpa [#allocation7], 0  ;;  %s3868_s2 = smov [#allocation8]   ;;  %s3869_s26 = smov [#allocation11]  }
   0xf   :  { %s66_s25 = sshll.u32 %s3868_s2, 4  ;;  %s86_s27 = sshll.u32 %s3869_s26, 4  ;;  %s67_s25 = int_to_ptr.vmem [resolvable:$true] %s66_s25  ;;  %s87_s27 = int_to_ptr.vmem [resolvable:$true] %s86_s27 }
  0x10   :  { %s3544_s29 = scalar_lea.hbm %s4888_s8, 16 }
  0x11   :  { %p3545_p0 = scmp.ne.s32.totalorder %s4888_s8, %s3544_s29  ;;  %p3548_p1 = scmp.lt.u32.totalorder %s3544_s29, %s4888_s8 }
  0x13   :  { %p3550_p2 = pnand %p3548_p1, %p3545_p0 }
  0x15   :  { %3553 = shalt.err (!%p3550_p2)
}
  0x16   :  { %s3554_s22 = scalar_lea.vmem %s67_s25, 16  ;;  %s3558_s23 = scalar_lea.vmem %s67_s25, 32 }
  0x17   :  { %p3555_p3 = scmp.ne.s32.totalorder %s67_s25, %s3554_s22  ;;  %p3559_p4 = scmp.lt.s32.totalorder %s67_s25, %s67_s25 }
  0x18   :  { %p3560_p5 = scmp.lt.s32.totalorder %s3558_s23, %s3554_s22 }
  0x1a   :  { %p3561_p6 = por %p3560_p5, %p3559_p4 }
  0x1c   :  { %p3562_p7 = pnand %p3561_p6, %p3555_p3 }
  0x1e   :  { %3565 = shalt.err (!%p3562_p7)
}
  0x1f   :  { %69 = dma.hbm_to_vmem [thread:$0]  %s4888_s8, 16, %s67_s25, [#allocation9]  }
  0x20   :  { %s3566_s3 = scalar_lea.hbm %s4890_s10, 16 }
  0x21   :  { %p3567_p8 = scmp.ne.s32.totalorder %s4890_s10, %s3566_s3  ;;  %p3570_p9 = scmp.lt.u32.totalorder %s3566_s3, %s4890_s10 }
  0x23   :  { %p3572_p10 = pnand %p3570_p9, %p3567_p8 }
  0x25   :  { %3575 = shalt.err (!%p3572_p10)
}
  0x26   :  { %s3576_s30 = scalar_lea.vmem %s87_s27, 16  ;;  %s3580_s5 = scalar_lea.vmem %s87_s27, 32 }
  0x27   :  { %p3577_p11 = scmp.ne.s32.totalorder %s87_s27, %s3576_s30  ;;  %p3581_p12 = scmp.lt.s32.totalorder %s87_s27, %s87_s27 }
  0x28   :  { %p3582_p13 = scmp.lt.s32.totalorder %s3580_s5, %s3576_s30 }
  0x2a   :  { %p3583_p0 = por %p3582_p13, %p3581_p12 }
  0x2c   :  { %p3584_p1 = pnand %p3583_p0, %p3577_p11 }
  0x2e   :  { %3587 = shalt.err (!%p3584_p1)
}
  0x2f   :  { %89 = dma.hbm_to_vmem [thread:$0]  %s4890_s10, 16, %s87_s27, [#allocation12]  }
  0x30   :  { %s3870_s22 = smov [#allocation14]   ;;  %s3871_s1 = smov [#allocation17]  }
  0x31   :  { %s105_s23 = sshll.u32 %s3870_s22, 4  ;;  %s129_s24 = sshll.u32 %s3871_s1, 4  ;;  %s106_s23 = int_to_ptr.vmem [resolvable:$true] %s105_s23  ;;  %s4021_s24 = int_to_ptr.vmem [resolvable:$true] %s129_s24 }
  0x32   :  { %s3588_s3 = scalar_lea.hbm %s4892_s12, 1024 }
  0x33   :  { %p3589_p2 = scmp.ne.s32.totalorder %s4892_s12, %s3588_s3  ;;  %p3592_p3 = scmp.lt.u32.totalorder %s3588_s3, %s4892_s12 }
  0x35   :  { %p3594_p4 = pnand %p3592_p3, %p3589_p2 }
  0x37   :  { %3597 = shalt.err (!%p3594_p4)
}
  0x38   :  { %s3598_s10 = scalar_lea.vmem %s106_s23, 1024  ;;  %p3603_p6 = scmp.lt.s32.totalorder %s106_s23, %s106_s23 }
  0x39   :  { %p3599_p5 = scmp.ne.s32.totalorder %s106_s23, %s3598_s10  ;;  %p3604_p7 = scmp.lt.s32.totalorder %s3598_s10, %s3598_s10 }
  0x3b   :  { %p3605_p8 = por %p3604_p7, %p3603_p6 }
  0x3d   :  { %p3606_p9 = pnand %p3605_p8, %p3599_p5 }
  0x3f   :  { %3609 = shalt.err (!%p3606_p9)
}
  0x40   :  { %s3872_s27 = smov 64   ;;  %s3873_s30 = smov 4  }
  0x41   :  { %111 = dma.hbm_to_vmem [thread:$0]  %s4892_s12, 1024, %s106_s23, [#allocation15], %s3872_s27, %s3872_s27, %s3873_s30  }
  0x42   :  { %s3610_s1 = scalar_lea.hbm %s4894_s14, 1024 }
  0x43   :  { %p3611_p10 = scmp.ne.s32.totalorder %s4894_s14, %s3610_s1  ;;  %p3614_p11 = scmp.lt.u32.totalorder %s3610_s1, %s4894_s14 }
  0x45   :  { %p3616_p12 = pnand %p3614_p11, %p3611_p10 }
  0x47   :  { %3619 = shalt.err (!%p3616_p12)
}
  0x48   :  { %s3620_s29 = scalar_lea.vmem %s4021_s24, 1024  ;;  %p3625_p0 = scmp.lt.s32.totalorder %s4021_s24, %s4021_s24 }
  0x49   :  { %p3621_p13 = scmp.ne.s32.totalorder %s4021_s24, %s3620_s29  ;;  %p3626_p1 = scmp.lt.s32.totalorder %s3620_s29, %s3620_s29 }
  0x4b   :  { %p3627_p2 = por %p3626_p1, %p3625_p0 }
  0x4d   :  { %p3628_p3 = pnand %p3627_p2, %p3621_p13 }
  0x4f   :  { %3631 = shalt.err (!%p3628_p3)
}
  0x50   :  { %135 = dma.hbm_to_vmem [thread:$0]  %s4894_s14, 1024, %s4021_s24, [#allocation18], %s3872_s27, %s3872_s27, %s3873_s30  }
  0x51   :  { %s3874_s0 = smov [#allocation20]   ;;  %s3875_s10 = smov [#allocation23]  }
  0x52   :  { %s154_s4 = sshll.u32 %s3874_s0, 4  ;;  %s173_s5 = sshll.u32 %s3875_s10, 4  ;;  %s155_s4 = int_to_ptr.vmem [resolvable:$true] %s154_s4  ;;  %s4058_s5 = int_to_ptr.vmem [resolvable:$true] %s173_s5 }
  0x53   :  { %s3632_s22 = scalar_lea.hbm %s4896_s16, 16 }
  0x54   :  { %p3633_p4 = scmp.ne.s32.totalorder %s4896_s16, %s3632_s22  ;;  %p3636_p5 = scmp.lt.u32.totalorder %s3632_s22, %s4896_s16 }
  0x56   :  { %p3638_p6 = pnand %p3636_p5, %p3633_p4 }
  0x58   :  { %3641 = shalt.err (!%p3638_p6)
}
  0x59   :  { %s3642_s14 = scalar_lea.vmem %s155_s4, 16  ;;  %s3646_s24 = scalar_lea.vmem %s155_s4, 32 }
  0x5a   :  { %p3643_p7 = scmp.ne.s32.totalorder %s155_s4, %s3642_s14  ;;  %p3647_p8 = scmp.lt.s32.totalorder %s155_s4, %s155_s4 }
  0x5b   :  { %p3648_p9 = scmp.lt.s32.totalorder %s3646_s24, %s3642_s14 }
  0x5d   :  { %p3649_p10 = por %p3648_p9, %p3647_p8 }
  0x5f   :  { %p3650_p11 = pnand %p3649_p10, %p3643_p7 }
  0x61   :  { %3653 = shalt.err (!%p3650_p11)
}
  0x62   :  { %157 = dma.hbm_to_vmem [thread:$0]  %s4896_s16, 16, %s155_s4, [#allocation21]  }
  0x63   :  { %s3654_s0 = scalar_lea.hbm %s4898_s18, 4096 }
  0x64   :  { %p3655_p12 = scmp.ne.s32.totalorder %s4898_s18, %s3654_s0  ;;  %p3658_p13 = scmp.lt.u32.totalorder %s3654_s0, %s4898_s18 }
  0x66   :  { %p3660_p0 = pnand %p3658_p13, %p3655_p12 }
  0x68   :  { %3663 = shalt.err (!%p3660_p0)
}
  0x69   :  { %s3664_s1 = scalar_lea.vmem %s4058_s5, 4096  ;;  %p3669_p2 = scmp.lt.s32.totalorder %s4058_s5, %s4058_s5 }
  0x6a   :  { %p3665_p1 = scmp.ne.s32.totalorder %s4058_s5, %s3664_s1  ;;  %p3670_p3 = scmp.lt.s32.totalorder %s3664_s1, %s3664_s1 }
  0x6c   :  { %p3671_p4 = por %p3670_p3, %p3669_p2 }
  0x6e   :  { %p3672_p5 = pnand %p3671_p4, %p3665_p1 }
  0x70   :  { %3675 = shalt.err (!%p3672_p5)
}
  0x71   :  { %s3876_s16 = smov 256   ;;  %s3877_s4 = smov 16  }
  0x72   :  { %179 = dma.hbm_to_vmem [thread:$0]  %s4898_s18, 4096, %s4058_s5, [#allocation24], %s3876_s16, %s3876_s16, %s3877_s4  }
  0x73   :  { %s3878_s3 = smov [#allocation5]   ;;  %s3879_s24 = smov [#allocation10]  }
  0x74   :  { %s39_s14 = sshll.u32 %s3878_s3, 4  ;;  %s76_s28 = sshll.u32 %s3879_s24, 4  ;;  %s40_s14 = int_to_ptr.vmem [resolvable:$true] %s39_s14  ;;  %s77_s28 = int_to_ptr.vmem [resolvable:$true] %s76_s28 }
  0x75   :  { %s4909_s23 = sld [smem:[#allocation35_spill]] }
  0x7b   :  { %s3676_s0 = scalar_lea.hbm %s4909_s23, 512 }
  0x7c   :  { %p3677_p6 = scmp.ne.s32.totalorder %s4909_s23, %s3676_s0  ;;  %p3680_p7 = scmp.lt.u32.totalorder %s3676_s0, %s4909_s23 }
  0x7e   :  { %p3682_p8 = pnand %p3680_p7, %p3677_p6 }
  0x80   :  { %3685 = shalt.err (!%p3682_p8)
}
  0x81   :  { %s3686_s18 = scalar_lea.vmem %s40_s14, 512  ;;  %p3691_p10 = scmp.lt.s32.totalorder %s40_s14, %s40_s14 }
  0x82   :  { %p3687_p9 = scmp.ne.s32.totalorder %s40_s14, %s3686_s18  ;;  %p3692_p11 = scmp.lt.s32.totalorder %s3686_s18, %s3686_s18 }
  0x84   :  { %p3693_p12 = por %p3692_p11, %p3691_p10 }
  0x86   :  { %p3694_p13 = pnand %p3693_p12, %p3687_p9 }
  0x88   :  { %3697 = shalt.err (!%p3694_p13)
}
  0x89   :  { %45 = dma.hbm_to_vmem [thread:$0]  %s4909_s23, 512, %s40_s14, [#allocation6], %s3872_s27, %s3872_s27, %s3873_s30  }
  0x8a   :  { %s3698_s2 = scalar_lea.hbm %s4889_s9, 16 }
  0x8b   :  { %p3699_p0 = scmp.ne.s32.totalorder %s4889_s9, %s3698_s2  ;;  %p3702_p1 = scmp.lt.u32.totalorder %s3698_s2, %s4889_s9 }
  0x8d   :  { %p3704_p2 = pnand %p3702_p1, %p3699_p0 }
  0x8f   :  { %3707 = shalt.err (!%p3704_p2)
}
  0x90   :  { %s3708_s12 = scalar_lea.vmem %s77_s28, 16  ;;  %s3712_s0 = scalar_lea.vmem %s77_s28, 32 }
  0x91   :  { %p3709_p3 = scmp.ne.s32.totalorder %s77_s28, %s3708_s12  ;;  %p3713_p4 = scmp.lt.s32.totalorder %s77_s28, %s77_s28 }
  0x92   :  { %p3714_p5 = scmp.lt.s32.totalorder %s3712_s0, %s3708_s12 }
  0x94   :  { %p3715_p6 = por %p3714_p5, %p3713_p4 }
  0x96   :  { %p3716_p7 = pnand %p3715_p6, %p3709_p3 }
  0x98   :  { %3719 = shalt.err (!%p3716_p7)
}
  0x99   :  { %79 = dma.hbm_to_vmem [thread:$0]  %s4889_s9, 16, %s77_s28, [#allocation9]  }
  0x9a   :  { %s3880_s10 = smov [#allocation13]   ;;  %s3881_s25 = smov [#allocation16]  }
  0x9b   :  { %s96_s8 = sshll.u32 %s3880_s10, 4  ;;  %s117_s22 = sshll.u32 %s3881_s25, 4  ;;  %s97_s8 = int_to_ptr.vmem [resolvable:$true] %s96_s8  ;;  %s4116_s22 = int_to_ptr.vmem [resolvable:$true] %s117_s22 }
  0x9c   :  { %s3720_s1 = scalar_lea.hbm %s4891_s11, 16 }
  0x9d   :  { %p3721_p8 = scmp.ne.s32.totalorder %s4891_s11, %s3720_s1  ;;  %p3724_p9 = scmp.lt.u32.totalorder %s3720_s1, %s4891_s11 }
  0x9f   :  { %p3726_p10 = pnand %p3724_p9, %p3721_p8 }
  0xa1   :  { %3729 = shalt.err (!%p3726_p10)
}
  0xa2   :  { %s3730_s9 = scalar_lea.vmem %s97_s8, 16  ;;  %s3734_s28 = scalar_lea.vmem %s97_s8, 32 }
  0xa3   :  { %p3731_p11 = scmp.ne.s32.totalorder %s97_s8, %s3730_s9  ;;  %p3735_p12 = scmp.lt.s32.totalorder %s97_s8, %s97_s8 }
  0xa4   :  { %p3736_p13 = scmp.lt.s32.totalorder %s3734_s28, %s3730_s9 }
  0xa6   :  { %p3737_p0 = por %p3736_p13, %p3735_p12 }
  0xa8   :  { %p3738_p1 = pnand %p3737_p0, %p3731_p11 }
  0xaa   :  { %3741 = shalt.err (!%p3738_p1)
}
  0xab   :  { %99 = dma.hbm_to_vmem [thread:$0]  %s4891_s11, 16, %s97_s8, [#allocation12]  }
  0xac   :  { %s3742_s0 = scalar_lea.hbm %s4893_s13, 1024 }
  0xad   :  { %p3743_p2 = scmp.ne.s32.totalorder %s4893_s13, %s3742_s0  ;;  %p3746_p3 = scmp.lt.u32.totalorder %s3742_s0, %s4893_s13 }
  0xaf   :  { %p3748_p4 = pnand %p3746_p3, %p3743_p2 }
  0xb1   :  { %3751 = shalt.err (!%p3748_p4)
}
  0xb2   :  { %s3752_s18 = scalar_lea.vmem %s4116_s22, 1024  ;;  %p3757_p6 = scmp.lt.s32.totalorder %s4116_s22, %s4116_s22 }
  0xb3   :  { %p3753_p5 = scmp.ne.s32.totalorder %s4116_s22, %s3752_s18  ;;  %p3758_p7 = scmp.lt.s32.totalorder %s3752_s18, %s3752_s18 }
  0xb5   :  { %p3759_p8 = por %p3758_p7, %p3757_p6 }
  0xb7   :  { %p3760_p9 = pnand %p3759_p8, %p3753_p5 }
  0xb9   :  { %3763 = shalt.err (!%p3760_p9)
}
  0xba   :  { %123 = dma.hbm_to_vmem [thread:$0]  %s4893_s13, 1024, %s4116_s22, [#allocation15], %s3872_s27, %s3872_s27, %s3873_s30  }
  0xbb   :  { %s3882_s5 = smov [#allocation19]   ;;  %s3883_s16 = smov [#allocation22]  }
  0xbc   :  { %s141_s1 = sshll.u32 %s3882_s5, 4  ;;  %s164_s4 = sshll.u32 %s3883_s16, 4  ;;  %s142_s1 = int_to_ptr.vmem [resolvable:$true] %s141_s1  ;;  %s165_s4 = int_to_ptr.vmem [resolvable:$true] %s164_s4 }
  0xbd   :  { %s3764_s9 = scalar_lea.hbm %s4895_s15, 1024 }
  0xbe   :  { %p3765_p10 = scmp.ne.s32.totalorder %s4895_s15, %s3764_s9  ;;  %p3768_p11 = scmp.lt.u32.totalorder %s3764_s9, %s4895_s15 }
  0xc0   :  { %p3770_p12 = pnand %p3768_p11, %p3765_p10 }
  0xc2   :  { %3773 = shalt.err (!%p3770_p12)
}
  0xc3   :  { %s3774_s13 = scalar_lea.vmem %s142_s1, 1024  ;;  %p3779_p0 = scmp.lt.s32.totalorder %s142_s1, %s142_s1 }
  0xc4   :  { %p3775_p13 = scmp.ne.s32.totalorder %s142_s1, %s3774_s13  ;;  %p3780_p1 = scmp.lt.s32.totalorder %s3774_s13, %s3774_s13 }
  0xc6   :  { %p3781_p2 = por %p3780_p1, %p3779_p0 }
  0xc8   :  { %p3782_p3 = pnand %p3781_p2, %p3775_p13 }
  0xca   :  { %3785 = shalt.err (!%p3782_p3)
}
  0xcb   :  { %147 = dma.hbm_to_vmem [thread:$0]  %s4895_s15, 1024, %s142_s1, [#allocation18], %s3872_s27, %s3872_s27, %s3873_s30  }
  0xcc   :  { %s3786_s23 = scalar_lea.hbm %s4897_s17, 16 }
  0xcd   :  { %p3787_p4 = scmp.ne.s32.totalorder %s4897_s17, %s3786_s23  ;;  %p3790_p5 = scmp.lt.u32.totalorder %s3786_s23, %s4897_s17 }
  0xcf   :  { %p3792_p6 = pnand %p3790_p5, %p3787_p4 }
  0xd1   :  { %3795 = shalt.err (!%p3792_p6)
}
  0xd2   :  { %s3796_s8 = scalar_lea.vmem %s165_s4, 16  ;;  %s3800_s5 = scalar_lea.vmem %s165_s4, 32 }
  0xd3   :  { %p3797_p7 = scmp.ne.s32.totalorder %s165_s4, %s3796_s8  ;;  %p3801_p8 = scmp.lt.s32.totalorder %s165_s4, %s165_s4 }
  0xd4   :  { %p3802_p9 = scmp.lt.s32.totalorder %s3800_s5, %s3796_s8 }
  0xd6   :  { %p3803_p10 = por %p3802_p9, %p3801_p8 }
  0xd8   :  { %p3804_p11 = pnand %p3803_p10, %p3797_p7 }
  0xda   :  { %3807 = shalt.err (!%p3804_p11)
}
  0xdb   :  { %167 = dma.hbm_to_vmem [thread:$0]  %s4897_s17, 16, %s165_s4, [#allocation21]  }
  0xdc   :  { %s3884_s16 = smov [#allocation25]   ;;  %s3808_s28 = scalar_lea.hbm %s4900_s20, 4096 }
  0xdd   :  { %s187_s2 = sshll.u32 %s3884_s16, 4  ;;  %p3809_p12 = scmp.ne.s32.totalorder %s4900_s20, %s3808_s28  ;;  %s188_s2 = int_to_ptr.vmem [resolvable:$true] %s187_s2 }
  0xde   :  { %p3812_p13 = scmp.lt.u32.totalorder %s3808_s28, %s4900_s20 }
  0xe0   :  { %p3814_p0 = pnand %p3812_p13, %p3809_p12 }
  0xe2   :  { %3817 = shalt.err (!%p3814_p0)
}
  0xe3   :  { %s3818_s22 = scalar_lea.vmem %s188_s2, 4096  ;;  %p3823_p2 = scmp.lt.s32.totalorder %s188_s2, %s188_s2 }
  0xe4   :  { %p3819_p1 = scmp.ne.s32.totalorder %s188_s2, %s3818_s22  ;;  %p3824_p3 = scmp.lt.s32.totalorder %s3818_s22, %s3818_s22 }
  0xe6   :  { %p3825_p4 = por %p3824_p3, %p3823_p2 }
  0xe8   :  { %p3826_p5 = pnand %p3825_p4, %p3819_p1 }
  0xea   :  { %3829 = shalt.err (!%p3826_p5)
}
  0xeb   :  { %193 = dma.hbm_to_vmem [thread:$0]  %s4900_s20, 4096, %s188_s2, [#allocation24], %s3872_s27, %s3872_s27, %s3873_s30  }
  0xec   :  { %3852 = dma.done.wait [#allocation6], 512  }
  0xed   :  { %3853 = vsyncadd [#allocation6], 4294966784 }
  0xee   :  { %3854 = dma.done.wait [#allocation9], 32  }
  0xef   :  { %3855 = vsyncadd [#allocation9], 4294967264 }
  0xf0   :  { %3856 = dma.done.wait [#allocation12], 32  }
  0xf1   :  { %3857 = vsyncadd [#allocation12], 4294967264 }
  0xf2   :  { %3858 = dma.done.wait [#allocation15], 2048  }
  0xf3   :  { %3859 = vsyncadd [#allocation15], 4294965248 }
  0xf4   :  { %3860 = dma.done.wait [#allocation18], 2048  }
  0xf5   :  { %3861 = vsyncadd [#allocation18], 4294965248 }
  0xf6   :  { %3862 = dma.done.wait [#allocation21], 32  }
  0xf7   :  { %3863 = vsyncadd [#allocation21], 4294967264 }
  0xf8   :  { %3864 = dma.done.wait [#allocation24], 8192  }
  0xf9   :  { %3865 = vsyncadd [#allocation24], 4294959104  ;;  %v2898_v0 = vld [vmem:[#allocation5] sm:$0xff]   ;;  %v2933_v1 = vld [vmem:[#allocation5 + $0x8] sm:$0xff]   ;;  %s4910_s0 = sld [smem:[#allocation36_spill]]  ;;  %s4911_s10 = sld [smem:[#allocation37_spill]] }
  0xfa   :  { %v2899_v2 = vunpack.c.l.bf16 %v2898_v0  ;;  %v2903_v3 = vunpack.c.l.bf16 %v2933_v1  ;;  %v2934_v4 = vld [vmem:[#allocation5 + $0x10] sm:$0xff]   ;;  %v2900_v5 = vunpack.c.h.bf16 %v2898_v0  ;;  %v2904_v6 = vunpack.c.h.bf16 %v2933_v1  ;;  %v2935_v7 = vld [vmem:[#allocation5 + $0x18] sm:$0xff]   ;;  %s4912_s5 = sld [smem:[#allocation38_spill]]  ;;  %s4913_s1 = sld [smem:[#allocation39_spill]] }
  0xfb   :  { %v2907_v8 = vunpack.c.l.bf16 %v2934_v4  ;;  %v2908_v9 = vunpack.c.h.bf16 %v2934_v4  ;;  %v2911_v10 = vunpack.c.l.bf16 %v2935_v7  ;;  %v2912_v11 = vunpack.c.h.bf16 %v2935_v7  ;;  %s4914_s26 = sld [smem:[#allocation40_spill]] }
  0xfc   :  { %250 = vadd.xlane.f32.xlu0 %v2899_v2  ;;  %254 = vadd.xlane.f32.xlu1 %v2903_v3 }
 0x100   :  { %252 = vadd.xlane.f32.xlu0 %v2900_v5  ;;  %256 = vadd.xlane.f32.xlu1 %v2904_v6 }
 0x104   :  { %258 = vadd.xlane.f32.xlu0 %v2907_v8  ;;  %260 = vadd.xlane.f32.xlu1 %v2908_v9 }
 0x108   :  { %262 = vadd.xlane.f32.xlu0 %v2911_v10  ;;  %264 = vadd.xlane.f32.xlu1 %v2912_v11 }
 0x189   :  { %v251_v12 = vpop.xlane.xlu0 %250  ;;  %v255_v13 = vpop.xlane.xlu1 %254 }
 0x18a   :  { %v267_v14 = vmul.f32 0.0078125, %v251_v12  ;;  %v269_v15 = vmul.f32 0.0078125, %v255_v13 }
 0x18c   :  { %v4192_v16 = vsub.f32 %v2899_v2, %v267_v14  ;;  %v4194_v17 = vsub.f32 %v2903_v3, %v269_v15  ;;  %v2770_v2 = vld [vmem:[%s4910_s0] ss:$0 sm:$0xff] }
 0x18d   :  { %v253_v18 = vpop.xlane.xlu0 %252  ;;  %v257_v19 = vpop.xlane.xlu1 %256 }
 0x18e   :  { %v268_v20 = vmul.f32 0.0078125, %v253_v18  ;;  %v283_v21 = vmul.f32 %v4192_v16, %v4192_v16  ;;  %v270_v22 = vmul.f32 0.0078125, %v257_v19  ;;  %v285_v25 = vmul.f32 %v4194_v17, %v4194_v17 }
 0x190   :  { %v4198_v23 = vsub.f32 %v2900_v5, %v268_v20  ;;  %291 = vadd.xlane.f32.xlu0 %v283_v21  ;;  %v4200_v24 = vsub.f32 %v2904_v6, %v270_v22  ;;  %v2771_v6 = vld [vmem:[%s4911_s10] ss:$0 sm:$0xff] }
 0x191   :  { %v259_v26 = vpop.xlane.xlu0 %258  ;;  %v261_v27 = vpop.xlane.xlu1 %260 }
 0x192   :  { %v271_v28 = vmul.f32 0.0078125, %v259_v26  ;;  %v284_v29 = vmul.f32 %v4198_v23, %v4198_v23  ;;  %v272_v30 = vmul.f32 0.0078125, %v261_v27  ;;  %v286_v33 = vmul.f32 %v4200_v24, %v4200_v24 }
 0x194   :  { %v4206_v31 = vsub.f32 %v2907_v8, %v271_v28  ;;  %295 = vadd.xlane.f32.xlu0 %v285_v25  ;;  %293 = vadd.xlane.f32.xlu1 %v284_v29  ;;  %v4208_v32 = vsub.f32 %v2908_v9, %v272_v30 }
 0x195   :  { %v263_v34 = vpop.xlane.xlu0 %262  ;;  %v265_v35 = vpop.xlane.xlu1 %264 }
 0x196   :  { %v273_v36 = vmul.f32 0.0078125, %v263_v34  ;;  %v287_v37 = vmul.f32 %v4206_v31, %v4206_v31  ;;  %v274_v38 = vmul.f32 0.0078125, %v265_v35  ;;  %v288_v41 = vmul.f32 %v4208_v32, %v4208_v32 }
 0x198   :  { %v4214_v39 = vsub.f32 %v2911_v10, %v273_v36  ;;  %297 = vadd.xlane.f32.xlu1 %v286_v33  ;;  %299 = vadd.xlane.f32.xlu0 %v287_v37  ;;  %v4216_v40 = vsub.f32 %v2912_v11, %v274_v38 }
 0x19a   :  { %v289_v42 = vmul.f32 %v4214_v39, %v4214_v39  ;;  %v290_v43 = vmul.f32 %v4216_v40, %v4216_v40 }
 0x19c   :  { %301 = vadd.xlane.f32.xlu1 %v288_v41  ;;  %303 = vadd.xlane.f32.xlu0 %v289_v42 }
 0x1a0   :  { %305 = vadd.xlane.f32.xlu1 %v290_v43 }
 0x21d   :  { %v292_v44 = vpop.xlane.xlu0 %291 }
 0x21e   :  { %v307_v45 = vmul.f32 0.0078125, %v292_v44 }
 0x220   :  { %v315_v46 = vadd.f32 1e-05, %v307_v45 }
 0x221   :  { %v294_v47 = vpop.xlane.xlu1 %293  ;;  %v296_v48 = vpop.xlane.xlu0 %295 }
 0x222   :  { %3354 = vrsqrt.f32 %v315_v46  ;;  %v308_v49 = vmul.f32 0.0078125, %v294_v47  ;;  %v309_v50 = vmul.f32 0.0078125, %v296_v48 }
 0x224   :  { %v316_v51 = vadd.f32 1e-05, %v308_v49  ;;  %v317_v52 = vadd.f32 1e-05, %v309_v50 }
 0x225   :  { %v298_v53 = vpop.xlane.xlu1 %297  ;;  %v300_v54 = vpop.xlane.xlu0 %299 }
 0x226   :  { %3356 = vrsqrt.f32 %v316_v51  ;;  %v310_v55 = vmul.f32 0.0078125, %v298_v53  ;;  %v311_v56 = vmul.f32 0.0078125, %v300_v54 }
 0x227   :  { %3358 = vrsqrt.f32 %v317_v52 }
 0x228   :  { %v318_v57 = vadd.f32 1e-05, %v310_v55  ;;  %v319_v58 = vadd.f32 1e-05, %v311_v56 }
 0x229   :  { %v302_v59 = vpop.xlane.xlu1 %301  ;;  %v304_v60 = vpop.xlane.xlu0 %303 }
 0x22a   :  { %3360 = vrsqrt.f32 %v318_v57  ;;  %v312_v61 = vmul.f32 0.0078125, %v302_v59  ;;  %v313_v62 = vmul.f32 0.0078125, %v304_v60 }
 0x22b   :  { %3362 = vrsqrt.f32 %v319_v58 }
 0x22c   :  { %v3355_v63 = vpop.eup %3354  ;;  %v320_v0 = vadd.f32 1e-05, %v312_v61  ;;  %v321_v1 = vadd.f32 1e-05, %v313_v62 }
 0x22d   :  { %v306_v3 = vpop.xlane.xlu1 %305  ;;  %v331_v4 = vmul.f32 %v3355_v63, %v4192_v16 }
 0x22e   :  { %3364 = vrsqrt.f32 %v320_v0  ;;  %v314_v5 = vmul.f32 0.0078125, %v306_v3 }
 0x22f   :  { %3366 = vrsqrt.f32 %v321_v1  ;;  %v346_v7 = vmul.f32 %v2770_v2, %v331_v4 }
 0x230   :  { %v3357_v8 = vpop.eup %3356  ;;  %v322_v9 = vadd.f32 1e-05, %v314_v5 }
 0x231   :  { %v3359_v10 = vpop.eup %3358  ;;  %v4231_v11 = vadd.f32 %v2771_v6, %v346_v7  ;;  %v332_v12 = vmul.f32 %v3357_v8, %v4198_v23  ;;  %v3235_v7 = vld [vmem:[#allocation16] sm:$0xff]   ;;  %v3236_v8 = vld [vmem:[#allocation14 + $0x8] sm:$0xff]  }
 0x232   :  { %3368 = vrsqrt.f32 %v322_v9  ;;  %v333_v13 = vmul.f32 %v3359_v10, %v4194_v17  ;;  %3103 = vmatprep.subr.bf16.mxu1 %v3235_v7  ;;  %v3237_v9 = vld [vmem:[#allocation16 + $0x8] sm:$0xff]   ;;  %v3238_v10 = vld [vmem:[#allocation14 + $0x10] sm:$0xff]  }
 0x233   :  { %369 = vadd.xlane.f32.xlu0 %v4231_v11  ;;  %v347_v14 = vmul.f32 %v2770_v2, %v332_v12  ;;  %3104 = vmatpush3.bf16.msra.mxu1 %v3235_v7  ;;  %v3239_v12 = vld [vmem:[#allocation16 + $0x10] sm:$0xff]   ;;  %v489_v7 = vld [vmem:[#allocation10] sm:$0x1] }
 0x234   :  { %v3361_v15 = vpop.eup %3360  ;;  %v348_v16 = vmul.f32 %v2770_v2, %v333_v13  ;;  %3105 = vmatprep.subr.bf16.mxu1 %v3237_v9  ;;  %v3240_v13 = vld [vmem:[#allocation14 + $0x18] sm:$0xff]  }
 0x235   :  { %v3363_v18 = vpop.eup %3362  ;;  %v4236_v19 = vadd.f32 %v2771_v6, %v347_v14  ;;  %v334_v20 = vmul.f32 %v3361_v15, %v4200_v24  ;;  %v3241_v14 = vld [vmem:[#allocation16 + $0x18] sm:$0xff]   ;;  %v3242_v15 = vld [vmem:[#allocation14 + $0x20] sm:$0xff]  }
 0x236   :  { %v4239_v21 = vadd.f32 %v2771_v6, %v348_v16  ;;  %v335_v22 = vmul.f32 %v3363_v18, %v4206_v31  ;;  %v3243_v16 = vld [vmem:[#allocation16 + $0x20] sm:$0xff]   ;;  %v3244_v18 = vld [vmem:[#allocation14 + $0x28] sm:$0xff]  }
 0x237   :  { %371 = vadd.xlane.f32.xlu1 %v4236_v19  ;;  %v349_v23 = vmul.f32 %v2770_v2, %v334_v20  ;;  %3106 = vmatpush3.bf16.msra.mxu1 %v3237_v9  ;;  %v3245_v20 = vld [vmem:[#allocation16 + $0x28] sm:$0xff]  }
 0x238   :  { %v3365_v25 = vpop.eup %3364  ;;  %373 = vadd.xlane.f32.xlu0 %v4239_v21  ;;  %v350_v17 = vmul.f32 %v2770_v2, %v335_v22  ;;  %3107 = vmatprep.subr.bf16.mxu1 %v3239_v12  ;;  %v3246_v22 = vld [vmem:[#allocation14 + $0x30] sm:$0xff]  }
 0x239   :  { %v3367_v26 = vpop.eup %3366  ;;  %v4244_v27 = vadd.f32 %v2771_v6, %v349_v23  ;;  %v336_v28 = vmul.f32 %v3365_v25, %v4208_v32  ;;  %v3247_v23 = vld [vmem:[#allocation16 + $0x30] sm:$0xff]   ;;  %v3248_v25 = vld [vmem:[#allocation14 + $0x38] sm:$0xff]  }
 0x23a   :  { %v4247_v29 = vadd.f32 %v2771_v6, %v350_v17  ;;  %v337_v24 = vmul.f32 %v3367_v26, %v4214_v39  ;;  %v3249_v17 = vld [vmem:[#allocation16 + $0x38] sm:$0xff]   ;;  %v4302_v26 = vld [vmem:[#allocation17] sm:$0xff]  }
 0x23b   :  { %375 = vadd.xlane.f32.xlu1 %v4244_v27  ;;  %v351_v30 = vmul.f32 %v2770_v2, %v336_v28  ;;  %3108 = vmatpush3.bf16.msra.mxu1 %v3239_v12 }
 0x23c   :  { %v3369_v31 = vpop.eup %3368  ;;  %377 = vadd.xlane.f32.xlu0 %v4247_v29  ;;  %v352_v33 = vmul.f32 %v2770_v2, %v337_v24  ;;  %3109 = vmatprep.subr.bf16.mxu1 %v3241_v14 }
 0x23d   :  { %v4252_v34 = vadd.f32 %v2771_v6, %v351_v30  ;;  %v338_v35 = vmul.f32 %v3369_v31, %v4216_v40 }
 0x23e   :  { %v4255_v36 = vadd.f32 %v2771_v6, %v352_v33  ;;  %v491_v33 = vlaneseq }
 0x23f   :  { %379 = vadd.xlane.f32.xlu1 %v4252_v34  ;;  %v353_v32 = vmul.f32 %v2770_v2, %v338_v35  ;;  %3110 = vmatpush3.bf16.msra.mxu1 %v3241_v14 }
 0x240   :  { %381 = vadd.xlane.f32.xlu0 %v4255_v36  ;;  %3111 = vmatprep.subr.bf16.mxu1 %v3243_v16 }
 0x241   :  { %v4259_v37 = vadd.f32 %v2771_v6, %v353_v32  ;;  %v3234_v6 = vld [vmem:[#allocation14] sm:$0xff]  }
 0x242   :  { %3079 = vmatprep.subr.bf16.mxu0 %v3234_v6 }
 0x243   :  { %383 = vadd.xlane.f32.xlu1 %v4259_v37  ;;  %3080 = vmatpush3.bf16.msra.mxu0 %v3234_v6 }
 0x244   :  { %3081 = vmatprep.subr.bf16.mxu0 %v3236_v8  ;;  %3112 = vmatpush3.bf16.msra.mxu1 %v3243_v16 }
 0x245   :  { %3113 = vmatprep.subr.bf16.mxu1 %v3245_v20 }
 0x247   :  { %3082 = vmatpush3.bf16.msra.mxu0 %v3236_v8  ;;  %v4319_v8 = vld [vmem:[%s4913_s1] ss:$0 sm:$0xff] }
 0x248   :  { %3083 = vmatprep.subr.bf16.mxu0 %v3238_v10  ;;  %3114 = vmatpush3.bf16.msra.mxu1 %v3245_v20 }
 0x249   :  { %3115 = vmatprep.subr.bf16.mxu1 %v3247_v23 }
 0x24b   :  { %3084 = vmatpush3.bf16.msra.mxu0 %v3238_v10 }
 0x24c   :  { %3085 = vmatprep.subr.bf16.mxu0 %v3240_v13  ;;  %3116 = vmatpush3.bf16.msra.mxu1 %v3247_v23 }
 0x24d   :  { %3117 = vmatprep.subr.bf16.mxu1 %v3249_v17 }
 0x24f   :  { %3086 = vmatpush3.bf16.msra.mxu0 %v3240_v13 }
 0x250   :  { %3087 = vmatprep.subr.bf16.mxu0 %v3242_v15  ;;  %3118 = vmatpush3.bf16.msra.mxu1 %v3249_v17 }
 0x253   :  { %3088 = vmatpush3.bf16.msra.mxu0 %v3242_v15 }
 0x254   :  { %3089 = vmatprep.subr.bf16.mxu0 %v3244_v18 }
 0x257   :  { %3090 = vmatpush3.bf16.msra.mxu0 %v3244_v18  ;;  %v578_v18 = vsub.f32 1.0, %v489_v7 }
 0x258   :  { %3091 = vmatprep.subr.bf16.mxu0 %v3246_v22 }
 0x25b   :  { %3092 = vmatpush3.bf16.msra.mxu0 %v3246_v22 }
 0x25c   :  { %3093 = vmatprep.subr.bf16.mxu0 %v3248_v25 }
 0x25f   :  { %3094 = vmatpush3.bf16.msra.mxu0 %v3248_v25 }
 0x260   :  { %3127 = vmatprep.subr.bf16.mxu0 %v4302_v26 }
 0x2c0   :  { %v370_v38 = vpop.xlane.xlu0 %369 }
 0x2c1   :  { %v385_v39 = vmul.f32 0.0078125, %v370_v38 }
 0x2c3   :  { %v4263_v41 = vsub.f32 %v4231_v11, %v385_v39 }
 0x2c4   :  { %v372_v42 = vpop.xlane.xlu1 %371 }
 0x2c5   :  { %v386_v43 = vmul.f32 0.0078125, %v372_v42  ;;  %v374_v44 = vpop.xlane.xlu0 %373  ;;  %v401_v40 = vmul.f32 %v4263_v41, %v4263_v41 }
 0x2c6   :  { %v387_v45 = vmul.f32 0.0078125, %v374_v44  ;;  %v492_v44 = vshrl.u32 %v491_v33, 7 }
 0x2c7   :  { %v4268_v46 = vsub.f32 %v4236_v19, %v386_v43  ;;  %409 = vadd.xlane.f32.xlu0 %v401_v40 }
 0x2c8   :  { %v4271_v47 = vsub.f32 %v4239_v21, %v387_v45  ;;  %v376_v48 = vpop.xlane.xlu1 %375 }
 0x2c9   :  { %v388_v49 = vmul.f32 0.0078125, %v376_v48  ;;  %v378_v50 = vpop.xlane.xlu0 %377  ;;  %v402_v51 = vmul.f32 %v4268_v46, %v4268_v46 }
 0x2ca   :  { %v389_v52 = vmul.f32 0.0078125, %v378_v50  ;;  %v403_v53 = vmul.f32 %v4271_v47, %v4271_v47  ;;  %v488_v50 = vld [vmem:[#allocation8] sm:$0x1] }
 0x2cb   :  { %v4278_v54 = vsub.f32 %v4244_v27, %v388_v49  ;;  %411 = vadd.xlane.f32.xlu1 %v402_v51  ;;  %v487_v49 = vld [vmem:[%s4887_s7] sm:$0x1] }
 0x2cc   :  { %v4281_v55 = vsub.f32 %v4247_v29, %v389_v52  ;;  %413 = vadd.xlane.f32.xlu0 %v403_v53  ;;  %v380_v56 = vpop.xlane.xlu1 %379 }
 0x2cd   :  { %v390_v57 = vmul.f32 0.0078125, %v380_v56  ;;  %v382_v58 = vpop.xlane.xlu0 %381  ;;  %v404_v59 = vmul.f32 %v4278_v54, %v4278_v54  ;;  %v4308_v56 = vsub.s32 0, %v492_v44 }
 0x2ce   :  { %v391_v60 = vmul.f32 0.0078125, %v382_v58  ;;  %v405_v61 = vmul.f32 %v4281_v55, %v4281_v55 }
 0x2cf   :  { %v4288_v62 = vsub.f32 %v4252_v34, %v390_v57  ;;  %415 = vadd.xlane.f32.xlu1 %v404_v59  ;;  %v504_v59 = vsub.f32 1.0, %v487_v49  ;;  %v4332_v14 = vrot.slane %v488_v50, %v4308_v56 }
 0x2d0   :  { %v4291_v63 = vsub.f32 %v4255_v36, %v391_v60  ;;  %417 = vadd.xlane.f32.xlu0 %v405_v61  ;;  %v384_v0 = vpop.xlane.xlu1 %383  ;;  %v541_v60 = vsub.f32 1.0, %v488_v50 }
 0x2d1   :  { %v392_v1 = vmul.f32 0.0078125, %v384_v0  ;;  %v406_v2 = vmul.f32 %v4288_v62, %v4288_v62  ;;  %v4322_v10 = vrot.slane %v504_v59, %v4308_v56 }
 0x2d2   :  { %v407_v3 = vmul.f32 %v4291_v63, %v4291_v63  ;;  %v4325_v12 = vrot.slane %v541_v60, %v4308_v56 }
 0x2d3   :  { %v4298_v4 = vsub.f32 %v4259_v37, %v392_v1  ;;  %419 = vadd.xlane.f32.xlu1 %v406_v2  ;;  %v4313_v1 = vld [vmem:[%s4912_s5] ss:$0 sm:$0xff]  ;;  %v511_v17 = vmul.f32 0.0, %v4322_v10 }
 0x2d4   :  { %421 = vadd.xlane.f32.xlu0 %v407_v3 }
 0x2d5   :  { %v408_v5 = vmul.f32 %v4298_v4, %v4298_v4 }
 0x2d7   :  { %423 = vadd.xlane.f32.xlu1 %v408_v5 }
 0x354   :  { %v410_v28 = vpop.xlane.xlu0 %409 }
 0x355   :  { %v425_v24 = vmul.f32 0.0078125, %v410_v28  ;;  %v548_v28 = vmul.f32 0.0, %v4325_v12 }
 0x357   :  { %v433_v30 = vadd.f32 1e-05, %v425_v24 }
 0x358   :  { %v412_v31 = vpop.xlane.xlu1 %411 }
 0x359   :  { %3370 = vrsqrt.f32 %v433_v30  ;;  %v426_v35 = vmul.f32 0.0078125, %v412_v31  ;;  %v414_v32 = vpop.xlane.xlu0 %413 }
 0x35a   :  { %v427_v38 = vmul.f32 0.0078125, %v414_v32 }
 0x35b   :  { %v434_v39 = vadd.f32 1e-05, %v426_v35 }
 0x35c   :  { %v435_v42 = vadd.f32 1e-05, %v427_v38  ;;  %v416_v43 = vpop.xlane.xlu1 %415 }
 0x35d   :  { %3372 = vrsqrt.f32 %v434_v39  ;;  %v428_v40 = vmul.f32 0.0078125, %v416_v43  ;;  %v418_v45 = vpop.xlane.xlu0 %417 }
 0x35e   :  { %3374 = vrsqrt.f32 %v435_v42  ;;  %v429_v48 = vmul.f32 0.0078125, %v418_v45 }
 0x35f   :  { %v436_v51 = vadd.f32 1e-05, %v428_v40 }
 0x360   :  { %v437_v52 = vadd.f32 1e-05, %v429_v48  ;;  %v420_v53 = vpop.xlane.xlu1 %419 }
 0x361   :  { %3376 = vrsqrt.f32 %v436_v51  ;;  %v430_v57 = vmul.f32 0.0078125, %v420_v53  ;;  %v422_v58 = vpop.xlane.xlu0 %421 }
 0x362   :  { %3378 = vrsqrt.f32 %v437_v52  ;;  %v431_v61 = vmul.f32 0.0078125, %v422_v58 }
 0x363   :  { %v3371_v0 = vpop.eup %3370  ;;  %v438_v2 = vadd.f32 1e-05, %v430_v57 }
 0x364   :  { %v449_v3 = vmul.f32 %v3371_v0, %v4263_v41  ;;  %v439_v5 = vadd.f32 1e-05, %v431_v61  ;;  %v424_v6 = vpop.xlane.xlu1 %423  ;;  %v4329_v41 = vrot.slane %v487_v49, %v4308_v56 }
 0x365   :  { %3380 = vrsqrt.f32 %v438_v2  ;;  %v432_v9 = vmul.f32 0.0078125, %v424_v6 }
 0x366   :  { %v464_v13 = vmul.f32 %v4313_v1, %v449_v3  ;;  %3382 = vrsqrt.f32 %v439_v5 }
 0x367   :  { %v3373_v15 = vpop.eup %3372  ;;  %v440_v16 = vadd.f32 1e-05, %v432_v9 }
 0x368   :  { %v3375_v20 = vpop.eup %3374  ;;  %v4335_v22 = vadd.f32 %v4319_v8, %v464_v13  ;;  %v450_v23 = vmul.f32 %v3373_v15, %v4268_v46  ;;  %v4348_v46 = vrot.slane %v489_v7, %v4308_v56 }
 0x369   :  { %v451_v25 = vmul.f32 %v3375_v20, %v4271_v47  ;;  %3384 = vrsqrt.f32 %v440_v16  ;;  %v4351_v47 = vrot.slane %v578_v18, %v4308_v56 }
 0x36a   :  { %v465_v24 = vmul.f32 %v4313_v1, %v450_v23  ;;  %v496_v30 = vmul.f32 %v4329_v41, %v4335_v22  ;;  %v533_v31 = vmul.f32 %v4332_v14, %v4335_v22  ;;  %v512_v42 = vmul.f32 %v4322_v10, %v4335_v22 }
 0x36b   :  { %v3377_v33 = vpop.eup %3376  ;;  %v466_v35 = vmul.f32 %v4313_v1, %v451_v25  ;;  %v549_v43 = vmul.f32 %v4325_v12, %v4335_v22 }
 0x36c   :  { %v3379_v32 = vpop.eup %3378  ;;  %v4354_v38 = vadd.f32 %v4319_v8, %v465_v24  ;;  %v452_v39 = vmul.f32 %v3377_v33, %v4278_v54  ;;  %v519_v45 = vadd.f32 %v511_v17, %v496_v30  ;;  %v556_v48 = vadd.f32 %v548_v28, %v533_v31 }
 0x36d   :  { %v4362_v44 = vadd.f32 %v4319_v8, %v466_v35  ;;  %v453_v40 = vmul.f32 %v3379_v32, %v4281_v55  ;;  %v3251_v32 = vld [vmem:[#allocation17 + $0x8] sm:$0xff]  }
 0x36e   :  { %v467_v49 = vmul.f32 %v4313_v1, %v452_v39  ;;  %v497_v50 = vmul.f32 %v4329_v41, %v4354_v38  ;;  %v534_v54 = vmul.f32 %v4332_v14, %v4354_v38  ;;  %v513_v51 = vmul.f32 %v4322_v10, %v4354_v38 }
 0x36f   :  { %v3381_v52 = vpop.eup %3380  ;;  %v468_v53 = vmul.f32 %v4313_v1, %v453_v40  ;;  %v498_v57 = vmul.f32 %v4329_v41, %v4362_v44  ;;  %v514_v55 = vmul.f32 %v4322_v10, %v4362_v44  ;;  %v535_v58 = vmul.f32 %v4332_v14, %v4362_v44 }
 0x370   :  { %v3383_v59 = vpop.eup %3382  ;;  %v4380_v60 = vadd.f32 %v4319_v8, %v467_v49  ;;  %v454_v61 = vmul.f32 %v3381_v52, %v4288_v62  ;;  %v520_v0 = vadd.f32 %v512_v42, %v497_v50  ;;  %v557_v2 = vadd.f32 %v549_v43, %v534_v54 }
 0x371   :  { %v4384_v3 = vadd.f32 %v4319_v8, %v468_v53  ;;  %v455_v5 = vmul.f32 %v3383_v59, %v4291_v63  ;;  %v521_v6 = vadd.f32 %v513_v51, %v498_v57  ;;  %v550_v7 = vmul.f32 %v4325_v12, %v4354_v38 }
 0x372   :  { %v469_v9 = vmul.f32 %v4313_v1, %v454_v61  ;;  %v617_v13 = vpack.c.bf16 %v520_v0, %v519_v45  ;;  %v758_v15 = vpack.c.bf16 %v557_v2, %v556_v48  ;;  %v499_v16 = vmul.f32 %v4329_v41, %v4380_v60  ;;  %v3252_v61 = vld [vmem:[#allocation17 + $0x10] sm:$0xff]  }
 0x373   :  { %v3385_v18 = vpop.eup %3384  ;;  %v470_v62 = vmul.f32 %v4313_v1, %v455_v5  ;;  %v536_v20 = vmul.f32 %v4332_v14, %v4380_v60  ;;  %v551_v63 = vmul.f32 %v4325_v12, %v4362_v44  ;;  %v558_v23 = vadd.f32 %v550_v7, %v535_v58 }
 0x374   :  { %v4398_v25 = vadd.f32 %v4319_v8, %v469_v9  ;;  %v456_v17 = vmul.f32 %v3385_v18, %v4298_v4  ;;  %3095 = vmatprep.mubr.bf16.mxu0 %v617_v13  ;;  %3119 = vmatprep.mubr.bf16.mxu1 %v758_v15  ;;  %v522_v28 = vadd.f32 %v514_v55, %v499_v16  ;;  %v585_v55 = vmul.f32 0.0, %v4351_v47 }
 0x375   :  { %v4402_v24 = vadd.f32 %v4319_v8, %v470_v62  ;;  %v559_v30 = vadd.f32 %v551_v63, %v536_v20  ;;  %v500_v31 = vmul.f32 %v4329_v41, %v4384_v3  ;;  %v515_v33 = vmul.f32 %v4322_v10, %v4380_v60  ;;  %v3253_v63 = vld [vmem:[#allocation17 + $0x18] sm:$0xff]  }
 0x376   :  { %v618_v35 = vpack.c.bf16 %v522_v28, %v521_v6  ;;  %v501_v39 = vmul.f32 %v4329_v41, %v4398_v25  ;;  %v516_v4 = vmul.f32 %v4322_v10, %v4384_v3  ;;  %v537_v42 = vmul.f32 %v4332_v14, %v4384_v3  ;;  %v3257_v28 = vld [vmem:[#allocation17 + $0x38] sm:$0xff]  }
 0x377   :  { %v759_v43 = vpack.c.bf16 %v559_v30, %v558_v23  ;;  %v538_v40 = vmul.f32 %v4332_v14, %v4398_v25  ;;  %v552_v45 = vmul.f32 %v4325_v12, %v4380_v60  ;;  %v570_v48 = vmul.f32 %v4348_v46, %v4335_v22 }
 0x378   :  { %3096 = vmatmul.mubr.bf16.vlgmr.msra.gmra.mrb[0].mxu0 %v618_v35  ;;  %v523_v49 = vadd.f32 %v515_v33, %v500_v31  ;;  %v524_v50 = vadd.f32 %v516_v4, %v501_v39  ;;  %v553_v54 = vmul.f32 %v4325_v12, %v4384_v3  ;;  %v471_v51 = vmul.f32 %v4313_v1, %v456_v17 }
 0x379   :  { %3120 = vmatmul.mubr.bf16.vlgmr.msra.gmra.mrb[0].mxu1 %v759_v43  ;;  %3128 = vmatpush3.bf16.msra.mxu0 %v4302_v26  ;;  %v560_v52 = vadd.f32 %v552_v45, %v537_v42  ;;  %v502_v53 = vmul.f32 %v4329_v41, %v4402_v24  ;;  %v517_v57 = vmul.f32 %v4322_v10, %v4398_v25 }
 0x37a   :  { %3129 = vmatprep.subr.bf16.mxu0 %v3251_v32  ;;  %v619_v58 = vpack.c.bf16 %v524_v50, %v523_v49  ;;  %v561_v59 = vadd.f32 %v553_v54, %v538_v40  ;;  %v486_v0 = vadd.f32 %v4319_v8, %v471_v51  ;;  %v539_v1 = vmul.f32 %v4332_v14, %v4402_v24 }
 0x37b   :  { %v518_v26 = vmul.f32 %v4322_v10, %v4402_v24  ;;  %v554_v2 = vmul.f32 %v4325_v12, %v4398_v25  ;;  %v571_v5 = vmul.f32 %v4348_v46, %v4354_v38  ;;  %v586_v6 = vmul.f32 %v4351_v47, %v4335_v22 }
 0x37c   :  { %3099 = vmatprep.mubr.bf16.mxu0 %v619_v58  ;;  %v760_v7 = vpack.c.bf16 %v561_v59, %v560_v52  ;;  %v503_v9 = vmul.f32 %v4329_v41, %v486_v0  ;;  %v540_v8 = vmul.f32 %v4332_v14, %v486_v0  ;;  %v555_v13 = vmul.f32 %v4325_v12, %v4402_v24  ;;  %v3254_v41 = vld [vmem:[#allocation17 + $0x20] sm:$0xff]   ;;  %v3255_v12 = vld [vmem:[#allocation17 + $0x28] sm:$0xff]   ;;  %v3256_v14 = vld [vmem:[#allocation17 + $0x30] sm:$0xff]  }
 0x37d   :  { %3130 = vmatpush3.bf16.msra.mxu0 %v3251_v32  ;;  %v525_v10 = vadd.f32 %v517_v57, %v502_v53  ;;  %v594_v15 = vadd.f32 %v586_v6, %v571_v5  ;;  %v562_v18 = vadd.f32 %v554_v2, %v539_v1  ;;  %v593_v20 = vadd.f32 %v585_v55, %v570_v48  ;;  %v3258_v53 = vld [vmem:[#allocation19] sm:$0xff]   ;;  %v3259_v57 = vld [vmem:[#allocation19 + $0x8] sm:$0xff]   ;;  %v3260_v55 = vld [vmem:[#allocation19 + $0x10] sm:$0xff]  }
 0x37e   :  { %3123 = vmatprep.mubr.bf16.mxu1 %v760_v7  ;;  %3131 = vmatprep.subr.bf16.mxu0 %v3252_v61  ;;  %v526_v16 = vadd.f32 %v518_v26, %v503_v9  ;;  %v563_v62 = vadd.f32 %v555_v13, %v540_v8  ;;  %v573_v30 = vmul.f32 %v4348_v46, %v4380_v60  ;;  %v3265_v58 = vld [vmem:[#allocation19 + $0x38] sm:$0xff]  }
 0x37f   :  { %v899_v17 = vpack.c.bf16 %v594_v15, %v593_v20  ;;  %v575_v31 = vmul.f32 %v4348_v46, %v4398_v25  ;;  %v572_v33 = vmul.f32 %v4348_v46, %v4362_v44  ;;  %v587_v35 = vmul.f32 %v4351_v47, %v4354_v38  ;;  %3151 = vmatprep.subr.bf16.mxu1 %v3258_v53  ;;  %v1072_v59 = vld [vmem:[#allocation11] sm:$0x1]  ;;  %v4471_v5 = vld [vmem:[#allocation13] ss:$0 sm:$0xff] }
 0x380   :  { %v620_v22 = vpack.c.bf16 %v526_v16, %v525_v10  ;;  %v761_v23 = vpack.c.bf16 %v563_v62, %v562_v18  ;;  %v588_v32 = vmul.f32 %v4351_v47, %v4362_v44  ;;  %v574_v39 = vmul.f32 %v4348_v46, %v4384_v3  ;;  %3152 = vmatpush3.bf16.msra.mxu1 %v3258_v53 }
 0x381   :  { %3132 = vmatpush3.bf16.msra.mxu0 %v3252_v61  ;;  %v589_v4 = vmul.f32 %v4351_v47, %v4380_v60  ;;  %v590_v42 = vmul.f32 %v4351_v47, %v4384_v3  ;;  %v595_v45 = vadd.f32 %v587_v35, %v572_v33  ;;  %v577_v49 = vmul.f32 %v4348_v46, %v486_v0 }
 0x382   :  { %3100 = vmatmul.mubr.bf16.gmra.mrb[4].mxu0 %v620_v22  ;;  %3124 = vmatmul.mubr.bf16.gmra.mrb[4].mxu1 %v761_v23  ;;  %v596_v43 = vadd.f32 %v588_v32, %v573_v30  ;;  %v576_v50 = vmul.f32 %v4348_v46, %v4402_v24  ;;  %v591_v60 = vmul.f32 %v4351_v47, %v4398_v25  ;;  %v3261_v46 = vld [vmem:[#allocation19 + $0x18] sm:$0xff]   ;;  %v3262_v25 = vld [vmem:[#allocation19 + $0x20] sm:$0xff]   ;;  %v1073_v61 = vmul.f32 1.442695, %v1072_v59 }
 0x383   :  { %3143 = vmatprep.mubr.bf16.mxu0 %v899_v17  ;;  %3133 = vmatprep.subr.bf16.mxu0 %v3253_v63  ;;  %v598_v40 = vadd.f32 %v590_v42, %v575_v31  ;;  %v597_v48 = vadd.f32 %v589_v4, %v574_v39  ;;  %v592_v3 = vmul.f32 %v4351_v47, %v4402_v24  ;;  %v3263_v47 = vld [vmem:[#allocation19 + $0x28] sm:$0xff]   ;;  %v3264_v24 = vld [vmem:[#allocation19 + $0x30] sm:$0xff]  }
 0x384   :  { %v900_v38 = vpack.c.bf16 %v596_v43, %v595_v45  ;;  %v599_v51 = vadd.f32 %v591_v60, %v576_v50  ;;  %3153 = vmatprep.subr.bf16.mxu1 %v3259_v57  ;;  %3386 = vpow2.f32 %v1073_v61 }
 0x385   :  { %3134 = vmatpush3.bf16.msra.mxu0 %v3253_v63  ;;  %v901_v44 = vpack.c.bf16 %v598_v40, %v597_v48  ;;  %v600_v54 = vadd.f32 %v592_v3, %v577_v49  ;;  %3154 = vmatpush3.bf16.msra.mxu1 %v3259_v57 }
 0x386   :  { %3135 = vmatprep.subr.bf16.mxu0 %v3254_v41  ;;  %3155 = vmatprep.subr.bf16.mxu1 %v3260_v55 }
 0x387   :  { %v902_v52 = vpack.c.bf16 %v600_v54, %v599_v51 }
 0x389   :  { %3136 = vmatpush3.bf16.msra.mxu0 %v3254_v41  ;;  %3156 = vmatpush3.bf16.msra.mxu1 %v3260_v55 }
 0x38a   :  { %3137 = vmatprep.subr.bf16.mxu0 %v3255_v12  ;;  %3157 = vmatprep.subr.bf16.mxu1 %v3261_v46 }
 0x38d   :  { %3138 = vmatpush3.bf16.msra.mxu0 %v3255_v12  ;;  %3158 = vmatpush3.bf16.msra.mxu1 %v3261_v46 }
 0x38e   :  { %3139 = vmatprep.subr.bf16.mxu0 %v3256_v14  ;;  %3159 = vmatprep.subr.bf16.mxu1 %v3262_v25  ;;  %v3387_v0 = vpop.eup %3386 }
 0x38f   :  { %v1075_v1 = vsub.f32 0.0, %v3387_v0 }
 0x391   :  { %3140 = vmatpush3.bf16.msra.mxu0 %v3256_v14  ;;  %3160 = vmatpush3.bf16.msra.mxu1 %v3262_v25  ;;  %v4468_v26 = vrot.slane %v1075_v1, %v4308_v56 }
 0x392   :  { %3141 = vmatprep.subr.bf16.mxu0 %v3257_v28  ;;  %3161 = vmatprep.subr.bf16.mxu1 %v3263_v47 }
 0x393   :  { %v1111_v2 = vadd.f32 -1e+38, %v4468_v26 }
 0x395   :  { %3142 = vmatpush3.bf16.msra.mxu0 %v3257_v28  ;;  %3162 = vmatpush3.bf16.msra.mxu1 %v3263_v47 }
 0x396   :  { %3163 = vmatprep.subr.bf16.mxu1 %v3264_v24 }
 0x398   :  { %3144 = vmatmul.mubr.bf16.vlgmr.msra.gmra.mrb[8].mxu0 %v900_v38 }
 0x399   :  { %3147 = vmatprep.mubr.bf16.mxu0 %v901_v44  ;;  %3164 = vmatpush3.bf16.msra.mxu1 %v3264_v24 }
 0x39a   :  { %3165 = vmatprep.subr.bf16.mxu1 %v3265_v58 }
 0x39d   :  { %3166 = vmatpush3.bf16.msra.mxu1 %v3265_v58 }
 0x3a0   :  { %3148 = vmatmul.mubr.bf16.gmra.mrb[12].mxu0 %v902_v52 }
 0x44b   :  { %v3097_v6 = vpop.f32.mrb[0].mxu0 }
 0x44c   :  { %v4473_v7 = vpop.f32.mrb[0].mxu1  ;;  %v703_v9 = vpop.f32.mrb[1].mxu0  ;;  %v1168_v33 = vadd.f32 %v3097_v6, %v4471_v5 }
 0x44d   :  { %v1086_v8 = vadd.f32 %v4471_v5, %v703_v9  ;;  %v1112_v13 = vmax.f32 %v1111_v2, %v703_v9  ;;  %v4476_v10 = vpop.f32.mrb[1].mxu1  ;;  %v4478_v15 = vpop.f32.mrb[2].mxu0 }
 0x44e   :  { %v4480_v16 = vpop.f32.mrb[2].mxu1  ;;  %v706_v18 = vpop.f32.mrb[3].mxu0  ;;  %v1207_v57 = vadd.f32 %v4478_v15, %v4471_v5 }
 0x44f   :  { %v1087_v62 = vmax.f32 %v1086_v8, -1e+38  ;;  %v1113_v20 = vsub.f32 %v1111_v2, %v1112_v13  ;;  %v1116_v63 = vsub.f32 %v703_v9, %v1112_v13  ;;  %v1129_v22 = vadd.f32 %v4471_v5, %v706_v18  ;;  %v4483_v23 = vpop.f32.mrb[3].mxu1 }
 0x450   :  { %v1149_v17 = vadd.f32 %v1112_v13, %v4468_v26 }
 0x451   :  { %v1088_v41 = vsub.f32 -1e+38, %v1087_v62  ;;  %v1091_v12 = vsub.f32 %v1086_v8, %v1087_v62  ;;  %v1114_v14 = vmul.f32 1.442695, %v1113_v20  ;;  %v1117_v28 = vmul.f32 1.442695, %v1116_v63 }
 0x452   :  { %v1130_v30 = vmax.f32 %v1112_v13, %v1129_v22  ;;  %v1150_v31 = vmax.f32 %v1149_v17, %v706_v18 }
 0x453   :  { %v1089_v35 = vmul.f32 1.442695, %v1088_v41  ;;  %v1092_v32 = vmul.f32 1.442695, %v1091_v12  ;;  %3388 = vpow2.f32 %v1117_v28 }
 0x454   :  { %3390 = vpow2.f32 %v1114_v14  ;;  %v1131_v39 = vsub.f32 %v1112_v13, %v1130_v30  ;;  %v1134_v4 = vsub.f32 %v1129_v22, %v1130_v30  ;;  %v1151_v42 = vsub.f32 %v1149_v17, %v1150_v31 }
 0x455   :  { %3392 = vpow2.f32 %v1092_v32  ;;  %v1154_v43 = vsub.f32 %v706_v18, %v1150_v31  ;;  %v1169_v40 = vmax.f32 %v1150_v31, %v1168_v33  ;;  %v1188_v45 = vadd.f32 %v1150_v31, %v4468_v26  ;;  %v4488_v48 = vpop.f32.mrb[4].mxu0  ;;  %v4490_v38 = vpop.f32.mrb[4].mxu1 }
 0x456   :  { %3394 = vpow2.f32 %v1089_v35  ;;  %v1132_v49 = vmul.f32 1.442695, %v1131_v39  ;;  %v1135_v44 = vmul.f32 1.442695, %v1134_v4  ;;  %v1152_v50 = vmul.f32 1.442695, %v1151_v42 }
 0x457   :  { %v1155_v60 = vmul.f32 1.442695, %v1154_v43  ;;  %v1170_v3 = vsub.f32 %v1150_v31, %v1169_v40  ;;  %v1173_v54 = vsub.f32 %v1168_v33, %v1169_v40  ;;  %v1189_v51 = vmax.f32 %v1188_v45, %v3097_v6  ;;  %v4492_v52 = vpop.f32.mrb[5].mxu0  ;;  %v4494_v53 = vpop.f32.mrb[5].mxu1 }
 0x458   :  { %3396 = vpow2.f32 %v1132_v49  ;;  %v4498_v55 = vpop.f32.mrb[6].mxu0  ;;  %v4500_v46 = vpop.f32.mrb[6].mxu1  ;;  %v1246_v20 = vadd.f32 %v4471_v5, %v4492_v52 }
 0x459   :  { %3398 = vpow2.f32 %v1135_v44  ;;  %v1171_v25 = vmul.f32 1.442695, %v1170_v3  ;;  %v1174_v47 = vmul.f32 1.442695, %v1173_v54  ;;  %v1190_v24 = vsub.f32 %v1188_v45, %v1189_v51  ;;  %v4502_v58 = vpop.f32.mrb[7].mxu0  ;;  %v4504_v59 = vpop.f32.mrb[7].mxu1 }
 0x45a   :  { %3400 = vpow2.f32 %v1152_v50  ;;  %v1193_v61 = vsub.f32 %v3097_v6, %v1189_v51  ;;  %v1208_v0 = vmax.f32 %v1189_v51, %v1207_v57  ;;  %v1227_v1 = vadd.f32 %v1189_v51, %v4468_v26 }
 0x45b   :  { %3402 = vpow2.f32 %v1155_v60  ;;  %v1191_v2 = vmul.f32 1.442695, %v1190_v24 }
 0x45c   :  { %3404 = vpow2.f32 %v1174_v47  ;;  %v1194_v9 = vmul.f32 1.442695, %v1193_v61  ;;  %v1209_v8 = vsub.f32 %v1189_v51, %v1208_v0  ;;  %v1212_v13 = vsub.f32 %v1207_v57, %v1208_v0 }
 0x45d   :  { %v3389_v18 = vpop.eup %3388  ;;  %3406 = vpow2.f32 %v1171_v25  ;;  %v1228_v62 = vmax.f32 %v1227_v1, %v4478_v15 }
 0x45e   :  { %v3391_v63 = vpop.eup %3390  ;;  %v1120_v22 = vmul.f32 %v3389_v18, %v4476_v10  ;;  %3408 = vpow2.f32 %v1191_v2  ;;  %v1210_v6 = vmul.f32 1.442695, %v1209_v8  ;;  %v1213_v17 = vmul.f32 1.442695, %v1212_v13 }
 0x45f   :  { %v3393_v41 = vpop.eup %3392  ;;  %v1119_v12 = vmul.f32 0.0, %v3391_v63  ;;  %3410 = vpow2.f32 %v1194_v9  ;;  %v1229_v14 = vsub.f32 %v1227_v1, %v1228_v62  ;;  %v1232_v28 = vsub.f32 %v4478_v15, %v1228_v62 }
 0x460   :  { %v3395_v30 = vpop.eup %3394  ;;  %v1100_v31 = vmul.f32 %v3393_v41, %v4476_v10  ;;  %3412 = vpow2.f32 %v1210_v6  ;;  %v1247_v33 = vmax.f32 %v1228_v62, %v1246_v20  ;;  %v1266_v35 = vadd.f32 %v1228_v62, %v4468_v26 }
 0x461   :  { %v1094_v32 = vmul.f32 0.0, %v3395_v30  ;;  %v1121_v39 = vadd.f32 %v1120_v22, %v1119_v12  ;;  %v1122_v4 = vadd.f32 %v3389_v18, %v1119_v12  ;;  %3414 = vpow2.f32 %v1213_v17 }
 0x462   :  { %v3397_v42 = vpop.eup %3396  ;;  %v1230_v43 = vmul.f32 1.442695, %v1229_v14  ;;  %v1233_v40 = vmul.f32 1.442695, %v1232_v28  ;;  %v1248_v45 = vsub.f32 %v1228_v62, %v1247_v33  ;;  %v1251_v49 = vsub.f32 %v1246_v20, %v1247_v33 }
 0x463   :  { %v3399_v44 = vpop.eup %3398  ;;  %v4514_v50 = vadd.f32 %v3393_v41, %v1094_v32  ;;  %v4516_v15 = vadd.f32 %v1100_v31, %v1094_v32  ;;  %v1137_v60 = vmul.f32 %v3397_v42, %v1122_v4  ;;  %v1143_v10 = vmul.f32 %v3397_v42, %v1121_v39 }
 0x464   :  { %v3401_v3 = vpop.eup %3400  ;;  %v1144_v54 = vmul.f32 %v3399_v44, %v4483_v23  ;;  %3416 = vpow2.f32 %v1230_v43  ;;  %v1249_v51 = vmul.f32 1.442695, %v1248_v45  ;;  %v1252_v57 = vmul.f32 1.442695, %v1251_v49 }
 0x465   :  { %v3403_v25 = vpop.eup %3402  ;;  %3418 = vrcp.f32 %v4514_v50  ;;  %v1160_v47 = vmul.f32 %v3401_v3, %v1122_v4  ;;  %v4520_v24 = vadd.f32 %v3399_v44, %v1137_v60  ;;  %v1157_v61 = vmul.f32 %v3401_v3, %v1121_v39 }
 0x466   :  { %v3405_v0 = vpop.eup %3404  ;;  %v4522_v1 = vadd.f32 %v1144_v54, %v1143_v10  ;;  %v1158_v2 = vmul.f32 %v3403_v25, %v4483_v23  ;;  %3420 = vpow2.f32 %v1233_v40  ;;  %v1267_v9 = vmax.f32 %v1266_v35, %v4492_v52 }
 0x467   :  { %v3407_v8 = vpop.eup %3406  ;;  %v1161_v13 = vadd.f32 %v3403_v25, %v1160_v47  ;;  %3422 = vrcp.f32 %v4520_v24  ;;  %v1183_v18 = vmul.f32 %v3405_v0, %v4473_v7  ;;  %v1285_v62 = vadd.f32 %v4471_v5, %v4502_v58 }
 0x468   :  { %v3409_v20 = vpop.eup %3408  ;;  %v1159_v63 = vadd.f32 %v1158_v2, %v1157_v61  ;;  %3424 = vpow2.f32 %v1249_v51  ;;  %v1268_v22 = vsub.f32 %v1266_v35, %v1267_v9  ;;  %v1271_v6 = vsub.f32 %v4492_v52, %v1267_v9 }
 0x469   :  { %v3411_v17 = vpop.eup %3410  ;;  %v1176_v23 = vmul.f32 %v3407_v8, %v1161_v13  ;;  %v1199_v41 = vmul.f32 %v3409_v20, %v1161_v13  ;;  %3426 = vpow2.f32 %v1252_v57  ;;  %v1286_v12 = vmax.f32 %v1267_v9, %v1285_v62 }
 0x46a   :  { %v3413_v14 = vpop.eup %3412  ;;  %v1182_v28 = vmul.f32 %v3407_v8, %v1159_v63  ;;  %v1196_v30 = vmul.f32 %v3409_v20, %v1159_v63  ;;  %v1197_v31 = vmul.f32 %v3411_v17, %v4473_v7  ;;  %v1269_v33 = vmul.f32 1.442695, %v1268_v22 }
 0x46b   :  { %v3415_v32 = vpop.eup %3414  ;;  %v4532_v39 = vadd.f32 %v3405_v0, %v1176_v23  ;;  %v1200_v4 = vadd.f32 %v3411_v17, %v1199_v41  ;;  %v1272_v42 = vmul.f32 1.442695, %v1271_v6  ;;  %v1287_v43 = vsub.f32 %v1267_v9, %v1286_v12  ;;  %v3145_v35 = vpop.f32.mrb[8].mxu0 }
 0x46c   :  { %v4534_v40 = vadd.f32 %v1183_v18, %v1182_v28  ;;  %v1198_v52 = vadd.f32 %v1197_v31, %v1196_v30  ;;  %v1222_v45 = vmul.f32 %v3415_v32, %v4480_v16  ;;  %3428 = vpow2.f32 %v1269_v33  ;;  %v4537_v49 = vpop.f32.mrb[9].mxu0 }
 0x46d   :  { %3430 = vrcp.f32 %v4532_v39  ;;  %v1215_v44 = vmul.f32 %v3413_v14, %v1200_v4  ;;  %v1288_v7 = vmul.f32 1.442695, %v1287_v43  ;;  %v1290_v60 = vsub.f32 %v1285_v62, %v1286_v12  ;;  %v4540_v10 = vpop.f32.mrb[10].mxu0 }
 0x46e   :  { %v3417_v3 = vpop.eup %3416  ;;  %v1221_v54 = vmul.f32 %v3413_v14, %v1198_v52  ;;  %v1324_v51 = vadd.f32 %v4488_v48, %v4471_v5  ;;  %3432 = vpow2.f32 %v1272_v42  ;;  %v1305_v57 = vadd.f32 %v1267_v9, %v4468_v26  ;;  %v4545_v25 = vpop.f32.mrb[11].mxu0 }
 0x46f   :  { %v3419_v47 = vpop.eup %3418  ;;  %v4547_v61 = vadd.f32 %v3415_v32, %v1215_v44  ;;  %v1238_v0 = vmul.f32 %v3417_v3, %v1200_v4  ;;  %v1235_v2 = vmul.f32 %v3417_v3, %v1198_v52  ;;  %3434 = vpow2.f32 %v1288_v7 }
 0x470   :  { %v3421_v8 = vpop.eup %3420  ;;  %v1097_v13 = vmul.f32 %v3419_v47, %v4514_v50  ;;  %v4550_v18 = vadd.f32 %v1222_v45, %v1221_v54  ;;  %v1291_v62 = vmul.f32 1.442695, %v1290_v60  ;;  %v1306_v20 = vmax.f32 %v1305_v57, %v4502_v58 }
 0x471   :  { %v3423_v63 = vpop.eup %3422  ;;  %3436 = vrcp.f32 %v4547_v61  ;;  %v1239_v9 = vadd.f32 %v3421_v8, %v1238_v0  ;;  %v1236_v22 = vmul.f32 %v3421_v8, %v4480_v16  ;;  %v2800_v6 = vmul.f32 -1.442695, %v3145_v35 }
 0x472   :  { %v3425_v17 = vpop.eup %3424  ;;  %v1098_v23 = vsub.f32 2.0, %v1097_v13  ;;  %v1140_v41 = vmul.f32 %v3423_v63, %v4520_v24  ;;  %3438 = vpow2.f32 %v1291_v62  ;;  %v1307_v12 = vsub.f32 %v1305_v57, %v1306_v20 }
 0x473   :  { %v3427_v14 = vpop.eup %3426  ;;  %v1237_v50 = vadd.f32 %v1236_v22, %v1235_v2  ;;  %v1254_v28 = vmul.f32 %v3425_v17, %v1239_v9  ;;  %v1310_v30 = vsub.f32 %v4502_v58, %v1306_v20  ;;  %v1325_v31 = vmax.f32 %v1306_v20, %v1324_v51  ;;  %v4557_v33 = vpop.f32.mrb[12].mxu0 }
 0x474   :  { %v1099_v32 = vmul.f32 %v3419_v47, %v1098_v23  ;;  %v1141_v4 = vsub.f32 2.0, %v1140_v41  ;;  %v1261_v42 = vmul.f32 %v3427_v14, %v4494_v53  ;;  %v1308_v16 = vmul.f32 1.442695, %v1307_v12  ;;  %v4560_v43 = vpop.f32.mrb[13].mxu0 }
 0x475   :  { %v4562_v35 = vadd.f32 %v3427_v14, %v1254_v28  ;;  %v1260_v24 = vmul.f32 %v3425_v17, %v1237_v50  ;;  %v1311_v52 = vmul.f32 1.442695, %v1310_v30  ;;  %v1326_v45 = vsub.f32 %v1306_v20, %v1325_v31  ;;  %v4564_v44 = vpop.f32.mrb[14].mxu0 }
 0x476   :  { %v3429_v7 = vpop.eup %3428  ;;  %v4567_v58 = vmul.f32 %v4516_v15, %v1099_v32  ;;  %v1142_v60 = vmul.f32 %v3423_v63, %v1141_v4  ;;  %3440 = vpow2.f32 %v1308_v16  ;;  %v1329_v3 = vsub.f32 %v1324_v51, %v1325_v31  ;;  %v4569_v54 = vpop.f32.mrb[15].mxu0 }
 0x477   :  { %v3431_v57 = vpop.eup %3430  ;;  %v1277_v47 = vmul.f32 %v3429_v7, %v1239_v9  ;;  %3442 = vrcp.f32 %v4562_v35  ;;  %v4572_v0 = vadd.f32 %v1261_v42, %v1260_v24  ;;  %v1274_v2 = vmul.f32 %v3429_v7, %v1237_v50 }
 0x478   :  { %v3433_v8 = vpop.eup %3432  ;;  %v4575_v13 = vmul.f32 %v4522_v1, %v1142_v60  ;;  %v1179_v62 = vmul.f32 %v3431_v57, %v4532_v39  ;;  %3444 = vpow2.f32 %v1311_v52  ;;  %v1327_v15 = vmul.f32 1.442695, %v1326_v45 }
 0x479   :  { %v3435_v63 = vpop.eup %3434  ;;  %v1278_v22 = vadd.f32 %v3433_v8, %v1277_v47  ;;  %v1275_v51 = vmul.f32 %v3433_v8, %v4494_v53  ;;  %v1330_v17 = vmul.f32 1.442695, %v1329_v3  ;;  %v1344_v9 = vadd.f32 %v1306_v20, %v4468_v26 }
 0x47a   :  { %v1180_v23 = vsub.f32 2.0, %v1179_v62  ;;  %v1363_v41 = vadd.f32 %v4498_v55, %v4471_v5  ;;  %3446 = vpow2.f32 %v1327_v15  ;;  %v2798_v12 = vmul.f32 -1.442695, %v4537_v49 }
 0x47b   :  { %v3437_v1 = vpop.eup %3436  ;;  %v1276_v14 = vadd.f32 %v1275_v51, %v1274_v2  ;;  %3448 = vpow2.f32 %v1330_v17  ;;  %v1345_v39 = vmax.f32 %v1344_v9, %v4488_v48  ;;  %v1293_v50 = vmul.f32 %v3435_v63, %v1278_v22 }
 0x47c   :  { %v3439_v28 = vpop.eup %3438  ;;  %v1181_v30 = vmul.f32 %v3431_v57, %v1180_v23  ;;  %v1218_v53 = vmul.f32 %v3437_v1, %v4547_v61  ;;  %3450 = vpow2.f32 %v2800_v6  ;;  %v2801_v26 = vmul.f32 -1.442695, %v4540_v10 }
 0x47d   :  { %v1294_v20 = vadd.f32 %v3439_v28, %v1293_v50  ;;  %v1299_v31 = vmul.f32 %v3435_v63, %v1276_v14  ;;  %v1300_v5 = vmul.f32 %v3439_v28, %v4504_v59  ;;  %v1346_v55 = vsub.f32 %v1344_v9, %v1345_v39 }
 0x47e   :  { %v4588_v49 = vmul.f32 %v4534_v40, %v1181_v30  ;;  %v1219_v32 = vsub.f32 2.0, %v1218_v53  ;;  %v1349_v4 = vsub.f32 %v4488_v48, %v1345_v39  ;;  %v1364_v42 = vmax.f32 %v1345_v39, %v1363_v41 }
 0x47f   :  { %3452 = vrcp.f32 %v1294_v20  ;;  %v4591_v16 = vadd.f32 %v1300_v5, %v1299_v31  ;;  %v1347_v24 = vmul.f32 1.442695, %v1346_v55  ;;  %v2799_v61 = vmul.f32 -1.442695, %v4545_v25 }
 0x480   :  { %v3441_v6 = vpop.eup %3440  ;;  %v1220_v10 = vmul.f32 %v3437_v1, %v1219_v32  ;;  %v1350_v52 = vmul.f32 1.442695, %v1349_v4  ;;  %v1365_v45 = vsub.f32 %v1345_v39, %v1364_v42  ;;  %3454 = vpow2.f32 %v2798_v12 }
 0x481   :  { %v3443_v7 = vpop.eup %3442  ;;  %v1316_v60 = vmul.f32 %v3441_v6, %v1278_v22  ;;  %v1313_v3 = vmul.f32 %v3441_v6, %v1276_v14  ;;  %3456 = vpow2.f32 %v1347_v24  ;;  %v2804_v40 = vmul.f32 -1.442695, %v4557_v33 }
 0x482   :  { %v3445_v57 = vpop.eup %3444  ;;  %v4596_v48 = vmul.f32 %v4550_v18, %v1220_v10  ;;  %v1257_v47 = vmul.f32 %v3443_v7, %v4562_v35  ;;  %3458 = vpow2.f32 %v1350_v52  ;;  %v1366_v2 = vmul.f32 1.442695, %v1365_v45 }
 0x483   :  { %v1317_v25 = vadd.f32 %v3445_v57, %v1316_v60  ;;  %v1314_v8 = vmul.f32 %v3445_v57, %v4504_v59  ;;  %3460 = vpow2.f32 %v2801_v26  ;;  %v2802_v62 = vmul.f32 -1.442695, %v4560_v43 }
 0x484   :  { %v3447_v15 = vpop.eup %3446  ;;  %v1258_v63 = vsub.f32 2.0, %v1257_v47  ;;  %3462 = vpow2.f32 %v1366_v2  ;;  %v1368_v22 = vsub.f32 %v1363_v41, %v1364_v42  ;;  %v2803_v23 = vmul.f32 -1.442695, %v4569_v54 }
 0x485   :  { %v3449_v51 = vpop.eup %3448  ;;  %v1315_v33 = vadd.f32 %v1314_v8, %v1313_v3  ;;  %3464 = vpow2.f32 %v2799_v61  ;;  %v1332_v17 = vmul.f32 %v3447_v15, %v1317_v25  ;;  %v2805_v26 = vmul.f32 -1.442695, %v4564_v44 }
 0x486   :  { %v3451_v18 = vpop.eup %3450  ;;  %v1259_v9 = vmul.f32 %v3443_v7, %v1258_v63  ;;  %v1339_v35 = vmul.f32 %v3449_v51, %v4490_v38  ;;  %3466 = vpow2.f32 %v2804_v40  ;;  %v1369_v14 = vmul.f32 1.442695, %v1368_v22 }
 0x487   :  { %v1338_v12 = vmul.f32 %v3447_v15, %v1315_v33  ;;  %v1042_v59 = vadd.f32 1.0, %v3451_v18  ;;  %3468 = vpow2.f32 %v2802_v62  ;;  %v1333_v1 = vadd.f32 %v3449_v51, %v1332_v17 }
 0x488   :  { %v4604_v43 = vmul.f32 %v4572_v0, %v1259_v9 }
 0x489   :  { %v3453_v41 = vpop.eup %3452  ;;  %v1340_v39 = vadd.f32 %v1339_v35, %v1338_v12  ;;  %3470 = vrcp.f32 %v1042_v59 }
 0x48a   :  { %v3455_v50 = vpop.eup %3454  ;;  %v1296_v28 = vmul.f32 %v3453_v41, %v1294_v20  ;;  %3472 = vpow2.f32 %v2803_v23 }
 0x48b   :  { %v3457_v30 = vpop.eup %3456  ;;  %v1040_v53 = vadd.f32 1.0, %v3455_v50  ;;  %3474 = vrcp.f32 %v1333_v1 }
 0x48c   :  { %v3459_v54 = vpop.eup %3458  ;;  %v1297_v31 = vsub.f32 2.0, %v1296_v28  ;;  %v1352_v5 = vmul.f32 %v3457_v30, %v1315_v33  ;;  %v1355_v55 = vmul.f32 %v3457_v30, %v1317_v25  ;;  %3476 = vpow2.f32 %v1369_v14 }
 0x48d   :  { %v3461_v32 = vpop.eup %3460  ;;  %v1353_v0 = vmul.f32 %v3459_v54, %v4490_v38  ;;  %3478 = vrcp.f32 %v1040_v53 }
 0x48e   :  { %v3463_v4 = vpop.eup %3462  ;;  %v1298_v42 = vmul.f32 %v3453_v41, %v1297_v31  ;;  %v1043_v24 = vadd.f32 1.0, %v3461_v32  ;;  %v1356_v61 = vadd.f32 %v3459_v54, %v1355_v55  ;;  %3480 = vpow2.f32 %v2805_v26 }
 0x48f   :  { %v3465_v20 = vpop.eup %3464  ;;  %v1354_v6 = vadd.f32 %v1353_v0, %v1352_v5 }
 0x490   :  { %v3467_v10 = vpop.eup %3466  ;;  %v1302_v44 = vmul.f32 %v4591_v16, %v1298_v42  ;;  %3482 = vrcp.f32 %v1043_v24  ;;  %v1041_v52 = vadd.f32 1.0, %v3465_v20  ;;  %v1371_v45 = vmul.f32 %v3463_v4, %v1356_v61 }
 0x491   :  { %v3469_v7 = vpop.eup %3468  ;;  %v1377_v60 = vmul.f32 %v3463_v4, %v1354_v6  ;;  %v1046_v3 = vadd.f32 1.0, %v3467_v10 }
 0x492   :  { %3484 = vrcp.f32 %v1041_v52  ;;  %v1044_v40 = vadd.f32 1.0, %v3469_v7  ;;  %v3269_v7 = vld [vmem:[#allocation23 + $0x8] ss:$16 sps:$4 sm:$0xff]  }
 0x493   :  { %v3471_v38 = vpop.eup %3470  ;;  %3486 = vrcp.f32 %v1046_v3 }
 0x494   :  { %v3473_v57 = vpop.eup %3472  ;;  %3488 = vrcp.f32 %v1044_v40  ;;  %v1186_v47 = vmul.f32 %v3471_v38, %v4588_v49 }
 0x495   :  { %v3475_v2 = vpop.eup %3474  ;;  %v1045_v25 = vadd.f32 1.0, %v3473_v57 }
 0x496   :  { %v3477_v8 = vpop.eup %3476  ;;  %v1335_v62 = vmul.f32 %v3475_v2, %v1333_v1 }
 0x497   :  { %v3479_v15 = vpop.eup %3478  ;;  %3490 = vrcp.f32 %v1045_v25  ;;  %v1372_v16 = vadd.f32 %v3477_v8, %v1371_v45  ;;  %v1378_v63 = vmul.f32 %v3477_v8, %v4500_v46  ;;  %v3268_v45 = vld [vmem:[#allocation23 + $0x4] ss:$16 sps:$4 sm:$0xff]  }
 0x498   :  { %v1103_v22 = vmul.f32 %v3479_v15, %v4567_v58  ;;  %v1336_v51 = vsub.f32 2.0, %v1335_v62  ;;  %v3481_v33 = vpop.eup %3480  ;;  %1922 = vmatprep.subr.bf16.mxu0 %v3268_v45  ;;  %v3304_v45 = vld [vmem:[#allocation23 + $0xc4] ss:$16 sps:$4 sm:$0xff]  }
 0x499   :  { %3492 = vrcp.f32 %v1372_v16  ;;  %v1379_v17 = vadd.f32 %v1378_v63, %v1377_v60  ;;  %v1047_v59 = vadd.f32 1.0, %v3481_v33  ;;  %v3271_v60 = vld [vmem:[#allocation23 + $0xc] ss:$16 sps:$4 sm:$0xff]  }
 0x49a   :  { %v3483_v18 = vpop.eup %3482  ;;  %v1337_v9 = vmul.f32 %v3475_v2, %v1336_v51  ;;  %1995 = vmatprep.subr.bf16.mxu1 %v3271_v60  ;;  %v3302_v60 = vld [vmem:[#allocation23 + $0xc0] ss:$16 sps:$4 sm:$0xff]  }
 0x49b   :  { %v1225_v35 = vmul.f32 %v3483_v18, %v4596_v48  ;;  %3494 = vrcp.f32 %v1047_v59 }
 0x49c   :  { %v3485_v49 = vpop.eup %3484  ;;  %v1341_v23 = vmul.f32 %v1340_v39, %v1337_v9 }
 0x49d   :  { %v3487_v12 = vpop.eup %3486  ;;  %v1147_v1 = vmul.f32 %v3485_v49, %v4575_v13  ;;  %v1408_v14 = vpack.c.bf16 %v1225_v35, %v1186_v47 }
 0x49e   :  { %v3489_v41 = vpop.eup %3488  ;;  %v1342_v50 = vmul.f32 %v3487_v12, %v1341_v23 }
 0x49f   :  { %v1407_v46 = vpack.c.bf16 %v1147_v1, %v1103_v22  ;;  %v1264_v58 = vmul.f32 %v3489_v41, %v4604_v43 }
 0x4a1   :  { %v3491_v28 = vpop.eup %3490  ;;  %3167 = vmatprep.mubr.bf16.mxu1 %v1407_v46 }
 0x4a2   :  { %3168 = vmatmul.mubr.bf16.vlgmr.msra.gmra.mrb[8].mxu1 %v1408_v14  ;;  %v1303_v30 = vmul.f32 %v3491_v28, %v1302_v44  ;;  %v3274_v28 = vld [vmem:[#allocation23 + $0x24] ss:$16 sps:$4 sm:$0xff]  }
 0x4a3   :  { %v3493_v53 = vpop.eup %3492  ;;  %1996 = vmatpush1.bf16.msra.mxu1 %v3269_v7  ;;  %v3307_v7 = vld [vmem:[#allocation23 + $0xcc] ss:$16 sps:$4 sm:$0xff]  }
 0x4a4   :  { %v1409_v26 = vpack.c.bf16 %v1303_v30, %v1264_v58  ;;  %v1374_v48 = vmul.f32 %v3493_v53, %v1372_v16  ;;  %v3277_v30 = vld [vmem:[#allocation23 + $0x2c] ss:$16 sps:$4 sm:$0xff]  }
 0x4a5   :  { %v3495_v5 = vpop.eup %3494  ;;  %1997 = vmatprep.subr.bf16.mxu1 %v3277_v30  ;;  %v4692_v30 = vld [vmem:[%s4914_s26] ss:$0 sm:$0xff] }
 0x4a6   :  { %3171 = vmatprep.mubr.bf16.mxu1 %v1409_v26  ;;  %v1375_v39 = vsub.f32 2.0, %v1374_v48  ;;  %v3275_v26 = vld [vmem:[#allocation23 + $0x28] ss:$16 sps:$4 sm:$0xff]   ;;  %v3280_v48 = vld [vmem:[#allocation23 + $0x44] ss:$16 sps:$4 sm:$0xff]  }
 0x4a7   :  { %1998 = vmatpush1.bf16.msra.mxu1 %v3275_v26 }
 0x4a8   :  { %v1376_v54 = vmul.f32 %v3493_v53, %v1375_v39  ;;  %v3272_v53 = vld [vmem:[#allocation23 + $0x20] ss:$16 sps:$4 sm:$0xff]   ;;  %v3283_v39 = vld [vmem:[#allocation23 + $0x4c] ss:$16 sps:$4 sm:$0xff]  }
 0x4a9   :  { %1999 = vmatprep.subr.bf16.mxu1 %v3283_v39 }
 0x4aa   :  { %v1380_v31 = vmul.f32 %v1379_v17, %v1376_v54  ;;  %v3278_v54 = vld [vmem:[#allocation23 + $0x40] ss:$16 sps:$4 sm:$0xff]  }
 0x4ac   :  { %v1381_v13 = vmul.f32 %v3495_v5, %v1380_v31  ;;  %v3281_v31 = vld [vmem:[#allocation23 + $0x48] ss:$16 sps:$4 sm:$0xff]   ;;  %v3286_v5 = vld [vmem:[#allocation23 + $0x64] ss:$16 sps:$4 sm:$0xff]  }
 0x4ad   :  { %2000 = vmatpush1.bf16.msra.mxu1 %v3281_v31  ;;  %v4698_v31 = vld [vmem:[%s4886_s6] ss:$0 sm:$0xff] }
 0x4ae   :  { %v1410_v55 = vpack.c.bf16 %v1381_v13, %v1342_v50  ;;  %v3289_v13 = vld [vmem:[#allocation23 + $0x6c] ss:$16 sps:$4 sm:$0xff]  }
 0x4af   :  { %2001 = vmatprep.subr.bf16.mxu1 %v3289_v13 }
 0x4b0   :  { %3172 = vmatmul.mubr.bf16.gmra.mrb[12].mxu1 %v1410_v55  ;;  %v3284_v55 = vld [vmem:[#allocation23 + $0x60] ss:$16 sps:$4 sm:$0xff]  }
 0x575   :  { %v3169_v32 = vpop.f32.mrb[8].mxu1 }
 0x576   :  { %v1493_v0 = vpop.f32.mrb[9].mxu1  ;;  %v4623_v61 = vadd.f32 %v3169_v32, %v4239_v21  ;;  %v3287_v32 = vld [vmem:[#allocation23 + $0x68] ss:$16 sps:$4 sm:$0xff]  }
 0x577   :  { %v4616_v43 = vadd.f32 %v1493_v0, %v4231_v11  ;;  %v3170_v4 = vpop.f32.mrb[10].mxu1  ;;  %2002 = vmatpush1.bf16.msra.mxu1 %v3287_v32  ;;  %v3292_v0 = vld [vmem:[#allocation23 + $0x84] ss:$16 sps:$4 sm:$0xff]  }
 0x578   :  { %v1496_v42 = vpop.f32.mrb[11].mxu1  ;;  %v4627_v20 = vadd.f32 %v3170_v4, %v4244_v27  ;;  %v3295_v4 = vld [vmem:[#allocation23 + $0x8c] ss:$16 sps:$4 sm:$0xff]  }
 0x579   :  { %v4619_v24 = vadd.f32 %v1496_v42, %v4236_v19  ;;  %1532 = vadd.xlane.f32.xlu0 %v4616_v43  ;;  %v3290_v42 = vld [vmem:[#allocation23 + $0x80] ss:$16 sps:$4 sm:$0xff]   ;;  %2003 = vmatprep.subr.bf16.mxu1 %v3295_v4 }
 0x57b   :  { %1534 = vadd.xlane.f32.xlu1 %v4619_v24 }
 0x57d   :  { %1536 = vadd.xlane.f32.xlu0 %v4623_v61 }
 0x57f   :  { %1538 = vadd.xlane.f32.xlu1 %v4627_v20 }
 0x583   :  { %v3173_v11 = vpop.f32.mrb[12].mxu1 }
 0x584   :  { %v1509_v6 = vpop.f32.mrb[13].mxu1  ;;  %v4639_v21 = vadd.f32 %v3173_v11, %v4255_v36  ;;  %v3293_v11 = vld [vmem:[#allocation23 + $0x88] ss:$16 sps:$4 sm:$0xff]  }
 0x585   :  { %v4632_v10 = vadd.f32 %v1509_v6, %v4247_v29  ;;  %v3174_v19 = vpop.f32.mrb[14].mxu1  ;;  %v3266_v29 = vld [vmem:[#allocation23] ss:$16 sps:$4 sm:$0xff]   ;;  %2004 = vmatpush1.bf16.msra.mxu1 %v3293_v11  ;;  %v3298_v6 = vld [vmem:[#allocation23 + $0xa4] ss:$16 sps:$4 sm:$0xff]  }
 0x586   :  { %v1512_v44 = vpop.f32.mrb[15].mxu1  ;;  %v4643_v27 = vadd.f32 %v3174_v19, %v4259_v37  ;;  %1923 = vmatpush1.bf16.msra.mxu0 %v3266_v29  ;;  %v3301_v19 = vld [vmem:[#allocation23 + $0xac] ss:$16 sps:$4 sm:$0xff]   ;;  %v3299_v29 = vld [vmem:[#allocation23 + $0xa8] ss:$16 sps:$4 sm:$0xff]  }
 0x587   :  { %v4635_v52 = vadd.f32 %v1512_v44, %v4252_v34  ;;  %1540 = vadd.xlane.f32.xlu0 %v4632_v10  ;;  %1924 = vmatprep.subr.bf16.mxu0 %v3274_v28  ;;  %v3296_v44 = vld [vmem:[#allocation23 + $0xa0] ss:$16 sps:$4 sm:$0xff]  }
 0x588   :  { %2005 = vmatprep.subr.bf16.mxu1 %v3301_v19 }
 0x589   :  { %1542 = vadd.xlane.f32.xlu1 %v4635_v52  ;;  %2006 = vmatpush1.bf16.msra.mxu1 %v3299_v29 }
 0x58a   :  { %1925 = vmatpush1.bf16.msra.mxu0 %v3272_v53  ;;  %2007 = vmatprep.subr.bf16.mxu1 %v3307_v7 }
 0x58b   :  { %1544 = vadd.xlane.f32.xlu0 %v4639_v21  ;;  %1926 = vmatprep.subr.bf16.mxu0 %v3280_v48 }
 0x58d   :  { %1546 = vadd.xlane.f32.xlu1 %v4643_v27 }
 0x58e   :  { %1927 = vmatpush1.bf16.msra.mxu0 %v3278_v54 }
 0x58f   :  { %1928 = vmatprep.subr.bf16.mxu0 %v3286_v5 }
 0x592   :  { %1929 = vmatpush1.bf16.msra.mxu0 %v3284_v55 }
 0x593   :  { %1930 = vmatprep.subr.bf16.mxu0 %v3292_v0 }
 0x596   :  { %1931 = vmatpush1.bf16.msra.mxu0 %v3290_v42 }
 0x597   :  { %1932 = vmatprep.subr.bf16.mxu0 %v3298_v6 }
 0x59a   :  { %1933 = vmatpush1.bf16.msra.mxu0 %v3296_v44 }
 0x59b   :  { %1934 = vmatprep.subr.bf16.mxu0 %v3304_v45 }
 0x59e   :  { %1935 = vmatpush1.bf16.msra.mxu0 %v3302_v60 }
 0x606   :  { %v1533_v34 = vpop.xlane.xlu0 %1532 }
 0x607   :  { %v1548_v36 = vmul.f32 0.0078125, %v1533_v34  ;;  %v3305_v34 = vld [vmem:[#allocation23 + $0xc8] ss:$16 sps:$4 sm:$0xff]  }
 0x608   :  { %v1535_v3 = vpop.xlane.xlu1 %1534  ;;  %2008 = vmatpush1.bf16.msra.mxu1 %v3305_v34 }
 0x609   :  { %v4648_v40 = vsub.f32 %v4616_v43, %v1548_v36  ;;  %v1549_v37 = vmul.f32 0.0078125, %v1535_v3  ;;  %v3310_v36 = vld [vmem:[#allocation23 + $0xe4] ss:$16 sps:$4 sm:$0xff]   ;;  %v3313_v3 = vld [vmem:[#allocation23 + $0xec] ss:$16 sps:$4 sm:$0xff]  }
 0x60a   :  { %v1537_v38 = vpop.xlane.xlu0 %1536  ;;  %1936 = vmatprep.subr.bf16.mxu0 %v3310_v36  ;;  %2009 = vmatprep.subr.bf16.mxu1 %v3313_v3 }
 0x60b   :  { %v4651_v57 = vsub.f32 %v4619_v24, %v1549_v37  ;;  %v1550_v47 = vmul.f32 0.0078125, %v1537_v38  ;;  %v1564_v2 = vmul.f32 %v4648_v40, %v4648_v40  ;;  %v3308_v37 = vld [vmem:[#allocation23 + $0xe0] ss:$16 sps:$4 sm:$0xff]   ;;  %v3311_v38 = vld [vmem:[#allocation23 + $0xe8] ss:$16 sps:$4 sm:$0xff]  }
 0x60c   :  { %v1539_v25 = vpop.xlane.xlu1 %1538  ;;  %1937 = vmatpush1.bf16.msra.mxu0 %v3308_v37  ;;  %2010 = vmatpush1.bf16.msra.mxu1 %v3311_v38 }
 0x60d   :  { %v4656_v8 = vsub.f32 %v4623_v61, %v1550_v47  ;;  %v1551_v62 = vmul.f32 0.0078125, %v1539_v25  ;;  %1572 = vadd.xlane.f32.xlu0 %v1564_v2  ;;  %v1565_v15 = vmul.f32 %v4651_v57, %v4651_v57  ;;  %v3885_v47 = vmov 0   ;;  %v3314_v2 = vld [vmem:[#allocation25 + $0x40] sm:$0xff]  }
 0x60e   :  { %1954 = vmatprep.mubr.bf16.mxu0 %v3885_v47  ;;  %2027 = vmatprep.mubr.bf16.mxu1 %v3885_v47  ;;  %v3315_v25 = vld [vmem:[#allocation25 + $0xc0] sm:$0xff]  }
 0x60f   :  { %v4661_v16 = vsub.f32 %v4627_v20, %v1551_v62  ;;  %1574 = vadd.xlane.f32.xlu1 %v1565_v15  ;;  %v1566_v63 = vmul.f32 %v4656_v8, %v4656_v8  ;;  %2987 = vmatprep.subr.bf16.mxu0 %v3314_v2 }
 0x610   :  { %3027 = vmatprep.subr.bf16.mxu1 %v3315_v25 }
 0x611   :  { %1576 = vadd.xlane.f32.xlu0 %v1566_v63  ;;  %v1567_v22 = vmul.f32 %v4661_v16, %v4661_v16 }
 0x613   :  { %1578 = vadd.xlane.f32.xlu1 %v1567_v22 }
 0x614   :  { %v1541_v51 = vpop.xlane.xlu0 %1540 }
 0x615   :  { %v1552_v33 = vmul.f32 0.0078125, %v1541_v51 }
 0x616   :  { %v1543_v17 = vpop.xlane.xlu1 %1542 }
 0x617   :  { %v4668_v18 = vsub.f32 %v4632_v10, %v1552_v33  ;;  %v1553_v9 = vmul.f32 0.0078125, %v1543_v17 }
 0x618   :  { %v1545_v35 = vpop.xlane.xlu0 %1544 }
 0x619   :  { %v4671_v49 = vsub.f32 %v4635_v52, %v1553_v9  ;;  %v1554_v23 = vmul.f32 0.0078125, %v1545_v35  ;;  %v1568_v12 = vmul.f32 %v4668_v18, %v4668_v18 }
 0x61a   :  { %v1547_v59 = vpop.xlane.xlu1 %1546 }
 0x61b   :  { %v4676_v1 = vsub.f32 %v4639_v21, %v1554_v23  ;;  %v1555_v14 = vmul.f32 0.0078125, %v1547_v59  ;;  %1580 = vadd.xlane.f32.xlu0 %v1568_v12  ;;  %v1569_v41 = vmul.f32 %v4671_v49, %v4671_v49 }
 0x61d   :  { %v4681_v50 = vsub.f32 %v4643_v27, %v1555_v14  ;;  %1582 = vadd.xlane.f32.xlu1 %v1569_v41  ;;  %v1570_v46 = vmul.f32 %v4676_v1, %v4676_v1  ;;  %v1650_v14 = vld [vmem:[#allocation20] sm:$0x1]  ;;  %v1651_v41 = vld [vmem:[#allocation22] sm:$0x1] }
 0x61e   :  { %v1703_v26 = vsub.f32 1.0, %v1651_v41  ;;  %v4706_v42 = vrot.slane %v1650_v14, %v4308_v56 }
 0x61f   :  { %1584 = vadd.xlane.f32.xlu0 %v1570_v46  ;;  %v1571_v58 = vmul.f32 %v4681_v50, %v4681_v50  ;;  %v1666_v46 = vsub.f32 1.0, %v1650_v14 }
 0x620   :  { %v4712_v44 = vrot.slane %v1703_v26, %v4308_v56 }
 0x621   :  { %1586 = vadd.xlane.f32.xlu1 %v1571_v58  ;;  %v4701_v55 = vrot.slane %v1666_v46, %v4308_v56  ;;  %v3316_v46 = vld [vmem:[#allocation25] sm:$0xff]  }
 0x623   :  { %v1673_v3 = vmul.f32 0.0, %v4701_v55 }
 0x69a   :  { %v1573_v62 = vpop.xlane.xlu0 %1572 }
 0x69b   :  { %v1588_v15 = vmul.f32 0.0078125, %v1573_v62 }
 0x69c   :  { %v1575_v63 = vpop.xlane.xlu1 %1574 }
 0x69d   :  { %v1596_v22 = vadd.f32 1e-05, %v1588_v15  ;;  %v1589_v51 = vmul.f32 0.0078125, %v1575_v63 }
 0x69e   :  { %v1577_v33 = vpop.xlane.xlu0 %1576 }
 0x69f   :  { %3496 = vrsqrt.f32 %v1596_v22  ;;  %v1597_v17 = vadd.f32 1e-05, %v1589_v51  ;;  %v1590_v9 = vmul.f32 0.0078125, %v1577_v33 }
 0x6a0   :  { %v1579_v35 = vpop.xlane.xlu1 %1578 }
 0x6a1   :  { %3498 = vrsqrt.f32 %v1597_v17  ;;  %v1598_v23 = vadd.f32 1e-05, %v1590_v9  ;;  %v1591_v12 = vmul.f32 0.0078125, %v1579_v35 }
 0x6a3   :  { %3500 = vrsqrt.f32 %v1598_v23  ;;  %v1599_v59 = vadd.f32 1e-05, %v1591_v12 }
 0x6a5   :  { %3502 = vrsqrt.f32 %v1599_v59 }
 0x6a8   :  { %v1581_v58 = vpop.xlane.xlu0 %1580 }
 0x6a9   :  { %v3497_v28 = vpop.eup %3496  ;;  %v1592_v53 = vmul.f32 0.0078125, %v1581_v58  ;;  %v3317_v58 = vld [vmem:[#allocation25 + $0x80] sm:$0xff]  }
 0x6aa   :  { %v1612_v48 = vmul.f32 %v3497_v28, %v4648_v40  ;;  %v1583_v39 = vpop.xlane.xlu1 %1582  ;;  %v4709_v40 = vrot.slane %v1651_v41, %v4308_v56 }
 0x6ab   :  { %v3499_v54 = vpop.eup %3498  ;;  %v1600_v5 = vadd.f32 1e-05, %v1592_v53  ;;  %v1593_v13 = vmul.f32 0.0078125, %v1583_v39  ;;  %v3319_v39 = vld [vmem:[#allocation25 + $0xc8] sm:$0xff]  }
 0x6ac   :  { %v1627_v32 = vmul.f32 %v4692_v30, %v1612_v48  ;;  %v1613_v0 = vmul.f32 %v3499_v54, %v4651_v57  ;;  %v1585_v4 = vpop.xlane.xlu0 %1584  ;;  %v3318_v48 = vld [vmem:[#allocation25 + $0x48] sm:$0xff]  }
 0x6ad   :  { %v3501_v11 = vpop.eup %3500  ;;  %3504 = vrsqrt.f32 %v1600_v5  ;;  %v1601_v6 = vadd.f32 1e-05, %v1593_v13  ;;  %v1594_v19 = vmul.f32 0.0078125, %v1585_v4 }
 0x6ae   :  { %v1642_v29 = vadd.f32 %v4698_v31, %v1627_v32  ;;  %v1628_v45 = vmul.f32 %v4692_v30, %v1613_v0  ;;  %v1614_v57 = vmul.f32 %v3501_v11, %v4656_v8  ;;  %v1587_v7 = vpop.xlane.xlu1 %1586  ;;  %v1710_v8 = vmul.f32 0.0, %v4712_v44 }
 0x6af   :  { %v3503_v60 = vpop.eup %3502  ;;  %3506 = vrsqrt.f32 %v1601_v6  ;;  %v1602_v34 = vadd.f32 1e-05, %v1594_v19  ;;  %v1595_v36 = vmul.f32 0.0078125, %v1587_v7 }
 0x6b0   :  { %v1643_v37 = vadd.f32 %v4698_v31, %v1628_v45  ;;  %v1629_v38 = vmul.f32 %v4692_v30, %v1614_v57  ;;  %v1615_v56 = vmul.f32 %v3503_v60, %v4661_v16  ;;  %v1658_v2 = vmul.f32 %v4706_v42, %v1642_v29  ;;  %v3320_v57 = vld [vmem:[#allocation25 + $0x8] sm:$0xff]  }
 0x6b1   :  { %3508 = vrsqrt.f32 %v1602_v34  ;;  %v1603_v25 = vadd.f32 1e-05, %v1595_v36  ;;  %v1695_v62 = vmul.f32 %v4709_v40, %v1642_v29  ;;  %v1674_v22 = vmul.f32 %v4701_v55, %v1642_v29  ;;  %v3321_v60 = vld [vmem:[#allocation25 + $0x88] sm:$0xff]   ;;  %v3322_v34 = vld [vmem:[#allocation25 + $0x50] sm:$0xff]  }
 0x6b2   :  { %v1630_v15 = vmul.f32 %v4692_v30, %v1615_v56  ;;  %v1659_v63 = vmul.f32 %v4706_v42, %v1643_v37  ;;  %v1644_v51 = vadd.f32 %v4698_v31, %v1629_v38  ;;  %v1696_v33 = vmul.f32 %v4709_v40, %v1643_v37 }
 0x6b3   :  { %3510 = vrsqrt.f32 %v1603_v25  ;;  %v1711_v16 = vmul.f32 %v4712_v44, %v1642_v29  ;;  %v1681_v17 = vadd.f32 %v1673_v3, %v1658_v2  ;;  %v4733_v23 = vadd.f32 %v1710_v8, %v1695_v62 }
 0x6b4   :  { %v1682_v9 = vadd.f32 %v1674_v22, %v1659_v63  ;;  %v4731_v35 = vadd.f32 %v4698_v31, %v1630_v15  ;;  %v1697_v59 = vmul.f32 %v4709_v40, %v1644_v51  ;;  %v1712_v28 = vmul.f32 %v4712_v44, %v1643_v37  ;;  %v3323_v15 = vld [vmem:[#allocation25 + $0xd0] sm:$0xff]  }
 0x6b5   :  { %v4735_v12 = vadd.f32 %v1711_v16, %v1696_v33  ;;  %v1660_v26 = vmul.f32 %v4706_v42, %v1644_v51  ;;  %v1713_v13 = vmul.f32 %v4712_v44, %v1644_v51  ;;  %v1676_v0 = vmul.f32 %v4701_v55, %v1644_v51  ;;  %v3324_v63 = vld [vmem:[#allocation25 + $0x10] sm:$0xff]  }
 0x6b6   :  { %v1726_v14 = vpack.c.bf16 %v1682_v9, %v1681_v17  ;;  %v1661_v41 = vmul.f32 %v4706_v42, %v4731_v35  ;;  %v1698_v5 = vmul.f32 %v4709_v40, %v4731_v35  ;;  %v4749_v4 = vadd.f32 %v1712_v28, %v1697_v59  ;;  %v3325_v51 = vld [vmem:[#allocation25 + $0x90] sm:$0xff]   ;;  %v3327_v59 = vld [vmem:[#allocation25 + $0xd8] sm:$0xff]  }
 0x6b7   :  { %v3505_v53 = vpop.eup %3504  ;;  %v2550_v54 = vpack.c.bf16 %v4735_v12, %v4733_v23  ;;  %v1675_v6 = vmul.f32 %v4701_v55, %v1643_v37  ;;  %v1714_v16 = vmul.f32 %v4712_v44, %v4731_v35 }
 0x6b8   :  { %v1616_v32 = vmul.f32 %v3505_v53, %v4668_v18  ;;  %1955 = vmatmul.mubr.bf16.vlgmr.msra.gmra.mrb[16].mxu0 %v1726_v14  ;;  %2028 = vmatmul.mubr.bf16.vlgmr.msra.gmra.mrb[16].mxu1 %v1726_v14  ;;  %v4754_v19 = vadd.f32 %v1713_v13, %v1698_v5  ;;  %v1684_v18 = vadd.f32 %v1676_v0, %v1661_v41  ;;  %v3328_v53 = vld [vmem:[#allocation25 + $0x18] sm:$0xff]  }
 0x6b9   :  { %v3507_v11 = vpop.eup %3506  ;;  %1964 = vmatprep.mubr.bf16.mxu0 %v3885_v47  ;;  %2037 = vmatprep.mubr.bf16.mxu1 %v3885_v47  ;;  %v1683_v38 = vadd.f32 %v1675_v6, %v1660_v26 }
 0x6ba   :  { %v1631_v29 = vmul.f32 %v4692_v30, %v1616_v32  ;;  %v1617_v45 = vmul.f32 %v3507_v11, %v4671_v49  ;;  %2988 = vmatpush3.bf16.msra.mxu0 %v3316_v46  ;;  %3028 = vmatpush3.bf16.msra.mxu1 %v3317_v58  ;;  %v2551_v36 = vpack.c.bf16 %v4754_v19, %v4749_v4 }
 0x6bb   :  { %v3509_v7 = vpop.eup %3508  ;;  %2989 = vmatprep.subr.bf16.mxu0 %v3318_v48  ;;  %3029 = vmatprep.subr.bf16.mxu1 %v3319_v39  ;;  %v1727_v62 = vpack.c.bf16 %v1684_v18, %v1683_v38  ;;  %v1677_v58 = vmul.f32 %v4701_v55, %v4731_v35  ;;  %v3329_v48 = vld [vmem:[#allocation25 + $0x98] sm:$0xff]   ;;  %v3330_v39 = vld [vmem:[#allocation25 + $0x60] sm:$0xff]  }
 0x6bc   :  { %v1632_v3 = vmul.f32 %v4692_v30, %v1617_v45  ;;  %v1618_v37 = vmul.f32 %v3509_v7, %v4676_v1  ;;  %v1646_v56 = vadd.f32 %v4698_v31, %v1631_v29  ;;  %v3326_v1 = vld [vmem:[#allocation25 + $0x58] sm:$0xff]   ;;  %v3331_v45 = vld [vmem:[#allocation25 + $0xe0] sm:$0xff]  }
 0x6bd   :  { %v3511_v49 = vpop.eup %3510  ;;  %v3332_v18 = vld [vmem:[#allocation25 + $0x20] sm:$0xff]  }
 0x6be   :  { %v1633_v2 = vmul.f32 %v4692_v30, %v1618_v37  ;;  %v1619_v25 = vmul.f32 %v3511_v49, %v4681_v50  ;;  %v1647_v8 = vadd.f32 %v4698_v31, %v1632_v3  ;;  %2990 = vmatpush3.bf16.msra.mxu0 %v3320_v57  ;;  %v1662_v22 = vmul.f32 %v4706_v42, %v1646_v56  ;;  %v3333_v7 = vld [vmem:[#allocation25 + $0xa0] sm:$0xff]   ;;  %v3335_v3 = vld [vmem:[#allocation25 + $0xe8] sm:$0xff]  }
 0x6bf   :  { %3030 = vmatpush3.bf16.msra.mxu1 %v3321_v60  ;;  %2991 = vmatprep.subr.bf16.mxu0 %v3322_v34  ;;  %v1699_v33 = vmul.f32 %v4709_v40, %v1646_v56  ;;  %v1678_v9 = vmul.f32 %v4701_v55, %v1646_v56  ;;  %v1715_v46 = vmul.f32 %v4712_v44, %v1646_v56  ;;  %v3334_v60 = vld [vmem:[#allocation25 + $0x68] sm:$0xff]  }
 0x6c0   :  { %v1648_v17 = vadd.f32 %v4698_v31, %v1633_v2  ;;  %1965 = vmatmul.mubr.bf16.gmra.mrb[20].mxu0 %v1727_v62  ;;  %2038 = vmatmul.mubr.bf16.gmra.mrb[20].mxu1 %v1727_v62  ;;  %v1663_v50 = vmul.f32 %v4706_v42, %v1647_v8  ;;  %v1634_v14 = vmul.f32 %v4692_v30, %v1619_v25  ;;  %v3336_v49 = vld [vmem:[#allocation25 + $0x28] sm:$0xff]   ;;  %v3339_v62 = vld [vmem:[#allocation25 + $0xf0] sm:$0xff]  }
 0x6c1   :  { %1974 = vmatprep.mubr.bf16.mxu0 %v3885_v47  ;;  %2047 = vmatprep.mubr.bf16.mxu1 %v3885_v47  ;;  %v1700_v41 = vmul.f32 %v4709_v40, %v1647_v8  ;;  %v4781_v5 = vadd.f32 %v1714_v16, %v1699_v33  ;;  %v1685_v13 = vadd.f32 %v1677_v58, %v1662_v22  ;;  %v3337_v2 = vld [vmem:[#allocation25 + $0xa8] sm:$0xff]   ;;  %v3342_v22 = vld [vmem:[#allocation25 + $0x78] sm:$0xff]  }
 0x6c2   :  { %v1686_v28 = vadd.f32 %v1678_v9, %v1663_v50  ;;  %3031 = vmatprep.subr.bf16.mxu1 %v3323_v15  ;;  %2992 = vmatpush3.bf16.msra.mxu0 %v3324_v63  ;;  %v1649_v26 = vadd.f32 %v4698_v31, %v1634_v14  ;;  %v1701_v32 = vmul.f32 %v4709_v40, %v1648_v17  ;;  %v3340_v15 = vld [vmem:[#allocation25 + $0x30] sm:$0xff]  }
 0x6c3   :  { %3032 = vmatpush3.bf16.msra.mxu1 %v3325_v51  ;;  %2993 = vmatprep.subr.bf16.mxu0 %v3326_v1  ;;  %v4783_v30 = vadd.f32 %v1715_v46, %v1700_v41  ;;  %v1716_v35 = vmul.f32 %v4712_v44, %v1647_v8  ;;  %v1717_v31 = vmul.f32 %v4712_v44, %v1648_v17  ;;  %v3341_v63 = vld [vmem:[#allocation25 + $0xb0] sm:$0xff]   ;;  %v3345_v51 = vld [vmem:[#allocation25 + $0xb8] sm:$0xff]  }
 0x6c4   :  { %3033 = vmatprep.subr.bf16.mxu1 %v3327_v59  ;;  %v1702_v0 = vmul.f32 %v4709_v40, %v1649_v26  ;;  %v1728_v6 = vpack.c.bf16 %v1686_v28, %v1685_v13  ;;  %v1665_v29 = vmul.f32 %v4706_v42, %v1649_v26  ;;  %v1664_v40 = vmul.f32 %v4706_v42, %v1648_v17  ;;  %v3346_v1 = vld [vmem:[%s4899_s19] sm:$0xff]  }
 0x6c5   :  { %v2552_v11 = vpack.c.bf16 %v4783_v30, %v4781_v5  ;;  %v4792_v57 = vadd.f32 %v1716_v35, %v1701_v32  ;;  %v1680_v44 = vmul.f32 %v4701_v55, %v1648_v17  ;;  %v1679_v38 = vmul.f32 %v4701_v55, %v1647_v8  ;;  %v3343_v55 = vld [vmem:[#allocation25 + $0xf8] sm:$0xff]  }
 0x6c6   :  { %2994 = vmatpush3.bf16.msra.mxu0 %v3328_v53  ;;  %v4794_v34 = vadd.f32 %v1717_v31, %v1702_v0  ;;  %v3344_v8 = vld [vmem:[#allocation25 + $0x38] sm:$0xff]  }
 0x6c7   :  { %3034 = vmatpush3.bf16.msra.mxu1 %v3329_v48  ;;  %2995 = vmatprep.subr.bf16.mxu0 %v3330_v39  ;;  %v1688_v56 = vadd.f32 %v1680_v44, %v1665_v29  ;;  %v1687_v42 = vadd.f32 %v1679_v38, %v1664_v40 }
 0x6c8   :  { %1975 = vmatmul.mubr.bf16.gmra.mrb[24].mxu0 %v1728_v6  ;;  %2048 = vmatmul.mubr.bf16.gmra.mrb[24].mxu1 %v1728_v6  ;;  %v2553_v37 = vpack.c.bf16 %v4794_v34, %v4792_v57 }
 0x6c9   :  { %1984 = vmatprep.mubr.bf16.mxu0 %v3885_v47  ;;  %2057 = vmatprep.mubr.bf16.mxu1 %v3885_v47  ;;  %v1729_v25 = vpack.c.bf16 %v1688_v56, %v1687_v42  ;;  %v3338_v47 = vld [vmem:[#allocation25 + $0x70] sm:$0xff]  }
 0x6ca   :  { %3035 = vmatprep.subr.bf16.mxu1 %v3331_v45  ;;  %2996 = vmatpush3.bf16.msra.mxu0 %v3332_v18 }
 0x6cb   :  { %3036 = vmatpush3.bf16.msra.mxu1 %v3333_v7  ;;  %2997 = vmatprep.subr.bf16.mxu0 %v3334_v60 }
 0x6cc   :  { %3037 = vmatprep.subr.bf16.mxu1 %v3335_v3 }
 0x6ce   :  { %2998 = vmatpush3.bf16.msra.mxu0 %v3336_v49 }
 0x6cf   :  { %3038 = vmatpush3.bf16.msra.mxu1 %v3337_v2  ;;  %2999 = vmatprep.subr.bf16.mxu0 %v3338_v47 }
 0x6d0   :  { %1985 = vmatmul.mubr.bf16.gmra.mrb[28].mxu0 %v1729_v25  ;;  %2058 = vmatmul.mubr.bf16.gmra.mrb[28].mxu1 %v1729_v25  ;;  %v3347_v25 = vld [vmem:[%s4899_s19 + $0x8] sm:$0xff]  }
 0x6d1   :  { %3039 = vmatprep.subr.bf16.mxu1 %v3339_v62 }
 0x6d2   :  { %3000 = vmatpush3.bf16.msra.mxu0 %v3340_v15 }
 0x6d3   :  { %3040 = vmatpush3.bf16.msra.mxu1 %v3341_v63  ;;  %3001 = vmatprep.subr.bf16.mxu0 %v3342_v22 }
 0x6d4   :  { %3041 = vmatprep.subr.bf16.mxu1 %v3343_v55 }
 0x6d6   :  { %3002 = vmatpush3.bf16.msra.mxu0 %v3344_v8 }
 0x6d7   :  { %3042 = vmatpush3.bf16.msra.mxu1 %v3345_v51  ;;  %3175 = vmatprep.subr.bf16.mxu0 %v3346_v1 }
 0x6d8   :  { %3199 = vmatprep.subr.bf16.mxu1 %v3346_v1 }
 0x78b   :  { %v1956_v33 = vpop.f32.mrb[16].mxu0  ;;  %v2029_v16 = vpop.f32.mrb[16].mxu1 }
 0x78c   :  { %v2068_v17 = vmax.f32 %v1956_v33, 0.0  ;;  %v2070_v50 = vmax.f32 %v2029_v16, 0.0  ;;  %v1958_v9 = vpop.f32.mrb[17].mxu0  ;;  %v2031_v59 = vpop.f32.mrb[17].mxu1 }
 0x78d   :  { %v2069_v14 = vmax.f32 %v1958_v9, 0.0  ;;  %v2071_v41 = vmax.f32 %v2031_v59, 0.0  ;;  %v1960_v46 = vpop.f32.mrb[18].mxu0  ;;  %v2033_v58 = vpop.f32.mrb[18].mxu1 }
 0x78e   :  { %v2072_v28 = vmax.f32 %v1960_v46, 0.0  ;;  %v2074_v53 = vmax.f32 %v2033_v58, 0.0  ;;  %v1962_v26 = vpop.f32.mrb[19].mxu0  ;;  %v2035_v48 = vpop.f32.mrb[19].mxu1  ;;  %v2100_v32 = vmul.f32 %v2068_v17, %v2068_v17  ;;  %v2102_v35 = vmul.f32 %v2070_v50, %v2070_v50 }
 0x78f   :  { %v2073_v39 = vmax.f32 %v1962_v26, 0.0  ;;  %v2075_v13 = vmax.f32 %v2035_v48, 0.0  ;;  %v2101_v6 = vmul.f32 %v2069_v14, %v2069_v14  ;;  %v2103_v29 = vmul.f32 %v2071_v41, %v2071_v41  ;;  %v3348_v14 = vld [vmem:[%s4899_s19 + $0x10] sm:$0xff]  }
 0x790   :  { %v2104_v0 = vmul.f32 %v2072_v28, %v2072_v28  ;;  %v2106_v31 = vmul.f32 %v2074_v53, %v2074_v53 }
 0x791   :  { %v2105_v45 = vmul.f32 %v2073_v39, %v2073_v39  ;;  %v2107_v18 = vmul.f32 %v2075_v13, %v2075_v13 }
 0x792   :  { %v2132_v7 = vpack.c.bf16 %v2104_v0, %v2100_v32  ;;  %v2134_v60 = vpack.c.bf16 %v2106_v31, %v2102_v35 }
 0x793   :  { %v2133_v40 = vpack.c.bf16 %v2105_v45, %v2101_v6  ;;  %v2135_v44 = vpack.c.bf16 %v2107_v18, %v2103_v29  ;;  %v1966_v3 = vpop.f32.mrb[20].mxu0  ;;  %v2039_v38 = vpop.f32.mrb[20].mxu1  ;;  %v3349_v6 = vld [vmem:[%s4899_s19 + $0x18] sm:$0xff]  }
 0x794   :  { %v2076_v56 = vmax.f32 %v1966_v3, 0.0  ;;  %v2078_v49 = vmax.f32 %v2039_v38, 0.0  ;;  %v1968_v2 = vpop.f32.mrb[21].mxu0  ;;  %v2041_v42 = vpop.f32.mrb[21].mxu1 }
 0x795   :  { %v2077_v47 = vmax.f32 %v1968_v2, 0.0  ;;  %v2079_v62 = vmax.f32 %v2041_v42, 0.0  ;;  %v1970_v15 = vpop.f32.mrb[22].mxu0  ;;  %v2043_v63 = vpop.f32.mrb[22].mxu1  ;;  %2436 = vmatprep.mubr.bf16.mxu0 %v2133_v40  ;;  %2501 = vmatprep.mubr.bf16.mxu1 %v2135_v44 }
 0x796   :  { %v2080_v22 = vmax.f32 %v1970_v15, 0.0  ;;  %v2082_v55 = vmax.f32 %v2043_v63, 0.0  ;;  %v1972_v8 = vpop.f32.mrb[23].mxu0  ;;  %v2045_v51 = vpop.f32.mrb[23].mxu1  ;;  %2437 = vmatmul.mubr.bf16.vlgmr.msra.gmra.mrb[32].mxu0 %v2132_v7  ;;  %2502 = vmatmul.mubr.bf16.vlgmr.msra.gmra.mrb[32].mxu1 %v2134_v60  ;;  %v2108_v33 = vmul.f32 %v2076_v56, %v2076_v56  ;;  %v2110_v50 = vmul.f32 %v2078_v49, %v2078_v49 }
 0x797   :  { %v2081_v16 = vmax.f32 %v1972_v8, 0.0  ;;  %v2083_v17 = vmax.f32 %v2045_v51, 0.0  ;;  %3176 = vmatpush3.bf16.msra.mxu0 %v3346_v1  ;;  %3207 = vmatpush3.bf16.msra.mxu1 %v3346_v1  ;;  %v2109_v41 = vmul.f32 %v2077_v47, %v2077_v47  ;;  %v2111_v46 = vmul.f32 %v2079_v62, %v2079_v62  ;;  %v3350_v47 = vld [vmem:[%s4899_s19 + $0x20] sm:$0xff]  }
 0x798   :  { %v2112_v9 = vmul.f32 %v2080_v22, %v2080_v22  ;;  %v2114_v59 = vmul.f32 %v2082_v55, %v2082_v55  ;;  %3177 = vmatprep.subr.bf16.mxu0 %v3347_v25  ;;  %3200 = vmatprep.subr.bf16.mxu1 %v3347_v25 }
 0x799   :  { %v2113_v58 = vmul.f32 %v2081_v16, %v2081_v16  ;;  %v2115_v28 = vmul.f32 %v2083_v17, %v2083_v17 }
 0x79a   :  { %v2136_v53 = vpack.c.bf16 %v2112_v9, %v2108_v33  ;;  %v2138_v26 = vpack.c.bf16 %v2114_v59, %v2110_v50 }
 0x79b   :  { %v2137_v48 = vpack.c.bf16 %v2113_v58, %v2109_v41  ;;  %v2139_v39 = vpack.c.bf16 %v2115_v28, %v2111_v46  ;;  %3178 = vmatpush3.bf16.msra.mxu0 %v3347_v25  ;;  %3208 = vmatpush3.bf16.msra.mxu1 %v3347_v25  ;;  %v1976_v1 = vpop.f32.mrb[24].mxu0  ;;  %v2049_v13 = vpop.f32.mrb[24].mxu1  ;;  %v3351_v41 = vld [vmem:[%s4899_s19 + $0x28] sm:$0xff]  }
 0x79c   :  { %v2084_v32 = vmax.f32 %v1976_v1, 0.0  ;;  %v2086_v35 = vmax.f32 %v2049_v13, 0.0  ;;  %v1978_v0 = vpop.f32.mrb[25].mxu0  ;;  %v2051_v31 = vpop.f32.mrb[25].mxu1  ;;  %3179 = vmatprep.subr.bf16.mxu0 %v3348_v14  ;;  %3201 = vmatprep.subr.bf16.mxu1 %v3348_v14 }
 0x79d   :  { %v2085_v29 = vmax.f32 %v1978_v0, 0.0  ;;  %v2087_v45 = vmax.f32 %v2051_v31, 0.0  ;;  %v1980_v18 = vpop.f32.mrb[26].mxu0  ;;  %v2053_v7 = vpop.f32.mrb[26].mxu1  ;;  %2444 = vmatprep.mubr.bf16.mxu0 %v2137_v48  ;;  %2509 = vmatprep.mubr.bf16.mxu1 %v2139_v39 }
 0x79e   :  { %v2088_v60 = vmax.f32 %v1980_v18, 0.0  ;;  %v2090_v40 = vmax.f32 %v2053_v7, 0.0  ;;  %v1982_v44 = vpop.f32.mrb[27].mxu0  ;;  %v2055_v3 = vpop.f32.mrb[27].mxu1  ;;  %2445 = vmatmul.mubr.bf16.gmra.mrb[36].mxu0 %v2136_v53  ;;  %2510 = vmatmul.mubr.bf16.gmra.mrb[36].mxu1 %v2138_v26  ;;  %v2116_v38 = vmul.f32 %v2084_v32, %v2084_v32  ;;  %v2118_v2 = vmul.f32 %v2086_v35, %v2086_v35 }
 0x79f   :  { %v2089_v56 = vmax.f32 %v1982_v44, 0.0  ;;  %v2091_v49 = vmax.f32 %v2055_v3, 0.0  ;;  %3180 = vmatpush3.bf16.msra.mxu0 %v3348_v14  ;;  %3209 = vmatpush3.bf16.msra.mxu1 %v3348_v14  ;;  %v2117_v62 = vmul.f32 %v2085_v29, %v2085_v29  ;;  %v2119_v15 = vmul.f32 %v2087_v45, %v2087_v45  ;;  %v3352_v29 = vld [vmem:[%s4899_s19 + $0x30] sm:$0xff]  }
 0x7a0   :  { %v2120_v42 = vmul.f32 %v2088_v60, %v2088_v60  ;;  %v2122_v25 = vmul.f32 %v2090_v40, %v2090_v40  ;;  %3181 = vmatprep.subr.bf16.mxu0 %v3349_v6  ;;  %3202 = vmatprep.subr.bf16.mxu1 %v3349_v6 }
 0x7a1   :  { %v2121_v63 = vmul.f32 %v2089_v56, %v2089_v56  ;;  %v2123_v22 = vmul.f32 %v2091_v49, %v2091_v49  ;;  %v3353_v56 = vld [vmem:[%s4899_s19 + $0x38] sm:$0xff]   ;;  %s3886_s19 = smov [#allocation26]  }
 0x7a2   :  { %v2140_v55 = vpack.c.bf16 %v2120_v42, %v2116_v38  ;;  %v2142_v8 = vpack.c.bf16 %v2122_v25, %v2118_v2  ;;  %s2752_s11 = sshll.u32 %s3886_s19, 4  ;;  %s2753_s11 = int_to_ptr.vmem [resolvable:$true] %s2752_s11 }
 0x7a3   :  { %v2141_v51 = vpack.c.bf16 %v2121_v63, %v2117_v62  ;;  %v2143_v33 = vpack.c.bf16 %v2123_v22, %v2119_v15  ;;  %3182 = vmatpush3.bf16.msra.mxu0 %v3349_v6  ;;  %3210 = vmatpush3.bf16.msra.mxu1 %v3349_v6  ;;  %v1986_v16 = vpop.f32.mrb[28].mxu0  ;;  %v2059_v17 = vpop.f32.mrb[28].mxu1  ;;  %s3830_s8 = scalar_lea.vmem %s2753_s11, 512  ;;  %p3835_p7 = scmp.lt.s32.totalorder %s2753_s11, %s2753_s11 }
 0x7a4   :  { %v2092_v50 = vmax.f32 %v1986_v16, 0.0  ;;  %v2094_v9 = vmax.f32 %v2059_v17, 0.0  ;;  %v1988_v59 = vpop.f32.mrb[29].mxu0  ;;  %v2061_v14 = vpop.f32.mrb[29].mxu1  ;;  %3183 = vmatprep.subr.bf16.mxu0 %v3350_v47  ;;  %3203 = vmatprep.subr.bf16.mxu1 %v3350_v47  ;;  %p3831_p6 = scmp.ne.s32.totalorder %s2753_s11, %s3830_s8  ;;  %p3836_p8 = scmp.lt.s32.totalorder %s3830_s8, %s3830_s8 }
 0x7a5   :  { %v2093_v46 = vmax.f32 %v1988_v59, 0.0  ;;  %v2095_v58 = vmax.f32 %v2061_v14, 0.0  ;;  %v1990_v28 = vpop.f32.mrb[30].mxu0  ;;  %v2063_v53 = vpop.f32.mrb[30].mxu1  ;;  %2452 = vmatprep.mubr.bf16.mxu0 %v2141_v51  ;;  %2517 = vmatprep.mubr.bf16.mxu1 %v2143_v33 }
 0x7a6   :  { %v2096_v26 = vmax.f32 %v1990_v28, 0.0  ;;  %v2098_v48 = vmax.f32 %v2063_v53, 0.0  ;;  %v1992_v39 = vpop.f32.mrb[31].mxu0  ;;  %v2065_v1 = vpop.f32.mrb[31].mxu1  ;;  %2453 = vmatmul.mubr.bf16.gmra.mrb[40].mxu0 %v2140_v55  ;;  %2518 = vmatmul.mubr.bf16.gmra.mrb[40].mxu1 %v2142_v8  ;;  %v2124_v13 = vmul.f32 %v2092_v50, %v2092_v50  ;;  %v2126_v0 = vmul.f32 %v2094_v9, %v2094_v9  ;;  %p3837_p9 = por %p3836_p8, %p3835_p7 }
 0x7a7   :  { %v2097_v32 = vmax.f32 %v1992_v39, 0.0  ;;  %v2099_v35 = vmax.f32 %v2065_v1, 0.0  ;;  %3184 = vmatpush3.bf16.msra.mxu0 %v3350_v47  ;;  %3211 = vmatpush3.bf16.msra.mxu1 %v3350_v47  ;;  %v2125_v45 = vmul.f32 %v2093_v46, %v2093_v46  ;;  %v2127_v18 = vmul.f32 %v2095_v58, %v2095_v58 }
 0x7a8   :  { %v2128_v31 = vmul.f32 %v2096_v26, %v2096_v26  ;;  %v2130_v6 = vmul.f32 %v2098_v48, %v2098_v48  ;;  %3185 = vmatprep.subr.bf16.mxu0 %v3351_v41  ;;  %3204 = vmatprep.subr.bf16.mxu1 %v3351_v41  ;;  %p3838_p10 = pnand %p3837_p9, %p3831_p6 }
 0x7a9   :  { %v2129_v7 = vmul.f32 %v2097_v32, %v2097_v32  ;;  %v2131_v60 = vmul.f32 %v2099_v35, %v2099_v35 }
 0x7aa   :  { %v2144_v40 = vpack.c.bf16 %v2128_v31, %v2124_v13  ;;  %v2146_v44 = vpack.c.bf16 %v2130_v6, %v2126_v0 }
 0x7ab   :  { %v2145_v3 = vpack.c.bf16 %v2129_v7, %v2125_v45  ;;  %v2147_v38 = vpack.c.bf16 %v2131_v60, %v2127_v18  ;;  %3186 = vmatpush3.bf16.msra.mxu0 %v3351_v41  ;;  %3212 = vmatpush3.bf16.msra.mxu1 %v3351_v41 }
 0x7ac   :  { %3187 = vmatprep.subr.bf16.mxu0 %v3352_v29  ;;  %3205 = vmatprep.subr.bf16.mxu1 %v3352_v29 }
 0x7ad   :  { %2460 = vmatprep.mubr.bf16.mxu0 %v2145_v3  ;;  %2525 = vmatprep.mubr.bf16.mxu1 %v2147_v38 }
 0x7ae   :  { %2461 = vmatmul.mubr.bf16.gmra.mrb[44].mxu0 %v2144_v40  ;;  %2526 = vmatmul.mubr.bf16.gmra.mrb[44].mxu1 %v2146_v44 }
 0x7af   :  { %3188 = vmatpush3.bf16.msra.mxu0 %v3352_v29  ;;  %3213 = vmatpush3.bf16.msra.mxu1 %v3352_v29 }
 0x7b0   :  { %3191 = vmatprep.mubr.bf16.mxu0 %v2550_v54  ;;  %3195 = vmatprep.mubr.bf16.mxu1 %v2552_v11 }
 0x7b1   :  { %3189 = vmatprep.subr.bf16.mxu0 %v3353_v56  ;;  %3206 = vmatprep.subr.bf16.mxu1 %v3353_v56 }
 0x7b3   :  { %3190 = vmatpush3.bf16.msra.mxu0 %v3353_v56  ;;  %3214 = vmatpush3.bf16.msra.mxu1 %v3353_v56 }
 0x7b6   :  { %3192 = vmatmul.mubr.bf16.vlgmr.msra.gmra.mrb[48].mxu0 %v2551_v36  ;;  %3196 = vmatmul.mubr.bf16.vlgmr.msra.gmra.mrb[48].mxu1 %v2553_v37 }
 0x869   :  { %v3003_v49 = vpop.f32.mrb[32].mxu0  ;;  %v3043_v2 = vpop.f32.mrb[32].mxu1 }
 0x86a   :  { %v3004_v23 = vpop.f32.mrb[33].mxu0  ;;  %v3044_v12 = vpop.f32.mrb[33].mxu1 }
 0x86b   :  { %v3005_v54 = vadd.f32 %v3004_v23, %v3003_v49  ;;  %v3045_v42 = vadd.f32 %v3044_v12, %v3043_v2  ;;  %v3006_v5 = vpop.f32.mrb[34].mxu0  ;;  %v3046_v30 = vpop.f32.mrb[34].mxu1 }
 0x86c   :  { %v3007_v11 = vpop.f32.mrb[35].mxu0  ;;  %v3047_v25 = vpop.f32.mrb[35].mxu1 }
 0x86d   :  { %v4839_v47 = vadd.f32 %v3045_v42, %v3005_v54  ;;  %v3008_v62 = vadd.f32 %v3007_v11, %v3006_v5  ;;  %v3048_v15 = vadd.f32 %v3047_v25, %v3046_v30 }
 0x86f   :  { %v4841_v4 = vadd.f32 %v3048_v15, %v3008_v62 }
 0x871   :  { %v3009_v19 = vpop.f32.mrb[36].mxu0  ;;  %v3049_v36 = vpop.f32.mrb[36].mxu1 }
 0x872   :  { %v3010_v57 = vpop.f32.mrb[37].mxu0  ;;  %v3050_v34 = vpop.f32.mrb[37].mxu1 }
 0x873   :  { %v3011_v37 = vadd.f32 %v3010_v57, %v3009_v19  ;;  %v3051_v63 = vadd.f32 %v3050_v34, %v3049_v36  ;;  %v3012_v22 = vpop.f32.mrb[38].mxu0  ;;  %v3052_v55 = vpop.f32.mrb[38].mxu1 }
 0x874   :  { %v3013_v8 = vpop.f32.mrb[39].mxu0  ;;  %v3053_v51 = vpop.f32.mrb[39].mxu1 }
 0x875   :  { %v4843_v33 = vadd.f32 %v3051_v63, %v3011_v37  ;;  %v3014_v16 = vadd.f32 %v3013_v8, %v3012_v22  ;;  %v3054_v17 = vadd.f32 %v3053_v51, %v3052_v55 }
 0x877   :  { %v4845_v50 = vadd.f32 %v3054_v17, %v3014_v16 }
 0x879   :  { %v3015_v9 = vpop.f32.mrb[40].mxu0  ;;  %v3055_v59 = vpop.f32.mrb[40].mxu1 }
 0x87a   :  { %v3016_v14 = vpop.f32.mrb[41].mxu0  ;;  %v3056_v41 = vpop.f32.mrb[41].mxu1 }
 0x87b   :  { %v3017_v46 = vadd.f32 %v3016_v14, %v3015_v9  ;;  %v3057_v58 = vadd.f32 %v3056_v41, %v3055_v59  ;;  %v3018_v28 = vpop.f32.mrb[42].mxu0  ;;  %v3058_v53 = vpop.f32.mrb[42].mxu1 }
 0x87c   :  { %v3019_v26 = vpop.f32.mrb[43].mxu0  ;;  %v3059_v48 = vpop.f32.mrb[43].mxu1 }
 0x87d   :  { %v4847_v39 = vadd.f32 %v3057_v58, %v3017_v46  ;;  %v3020_v1 = vadd.f32 %v3019_v26, %v3018_v28  ;;  %v3060_v13 = vadd.f32 %v3059_v48, %v3058_v53 }
 0x87f   :  { %v4849_v32 = vadd.f32 %v3060_v13, %v3020_v1 }
 0x881   :  { %v3021_v35 = vpop.f32.mrb[44].mxu0  ;;  %v3061_v0 = vpop.f32.mrb[44].mxu1 }
 0x882   :  { %v3022_v31 = vpop.f32.mrb[45].mxu0  ;;  %v3062_v6 = vpop.f32.mrb[45].mxu1 }
 0x883   :  { %v3023_v29 = vadd.f32 %v3022_v31, %v3021_v35  ;;  %v3063_v45 = vadd.f32 %v3062_v6, %v3061_v0  ;;  %v3024_v18 = vpop.f32.mrb[46].mxu0  ;;  %v3064_v7 = vpop.f32.mrb[46].mxu1 }
 0x884   :  { %v3025_v60 = vpop.f32.mrb[47].mxu0  ;;  %v3065_v40 = vpop.f32.mrb[47].mxu1 }
 0x885   :  { %v2528_v44 = vadd.f32 %v3063_v45, %v3023_v29  ;;  %v3026_v3 = vadd.f32 %v3025_v60, %v3024_v18  ;;  %v3066_v38 = vadd.f32 %v3065_v40, %v3064_v7 }
 0x887   :  { %v2531_v56 = vadd.f32 %v3066_v38, %v3026_v3 }
 0x889   :  { %v3193_v49 = vpop.f32.mrb[48].mxu0  ;;  %v3197_v2 = vpop.f32.mrb[48].mxu1 }
 0x88a   :  { %v2891_v23 = vmul.f32 -1.442695, %v3193_v49  ;;  %v2895_v12 = vmul.f32 -1.442695, %v3197_v2  ;;  %v2636_v54 = vpop.f32.mrb[49].mxu0  ;;  %v2652_v42 = vpop.f32.mrb[49].mxu1 }
 0x88b   :  { %v2889_v5 = vmul.f32 -1.442695, %v2636_v54  ;;  %v2893_v30 = vmul.f32 -1.442695, %v2652_v42  ;;  %v3194_v11 = vpop.f32.mrb[50].mxu0  ;;  %v3198_v25 = vpop.f32.mrb[50].mxu1 }
 0x88c   :  { %3512 = vpow2.f32 %v2891_v23  ;;  %v2892_v62 = vmul.f32 -1.442695, %v3194_v11  ;;  %v2639_v15 = vpop.f32.mrb[51].mxu0  ;;  %v2655_v19 = vpop.f32.mrb[51].mxu1  ;;  %v2896_v36 = vmul.f32 -1.442695, %v3198_v25 }
 0x88d   :  { %3514 = vpow2.f32 %v2895_v12  ;;  %v2890_v57 = vmul.f32 -1.442695, %v2639_v15  ;;  %v2894_v34 = vmul.f32 -1.442695, %v2655_v19 }
 0x88e   :  { %3516 = vpow2.f32 %v2889_v5 }
 0x88f   :  { %3518 = vpow2.f32 %v2893_v30 }
 0x890   :  { %3520 = vpow2.f32 %v2892_v62 }
 0x891   :  { %3522 = vpow2.f32 %v2896_v36 }
 0x892   :  { %3524 = vpow2.f32 %v2890_v57 }
 0x893   :  { %3526 = vpow2.f32 %v2894_v34 }
 0x896   :  { %v3513_v37 = vpop.eup %3512 }
 0x897   :  { %v3515_v63 = vpop.eup %3514  ;;  %v2693_v22 = vadd.f32 1.0, %v3513_v37 }
 0x898   :  { %v3517_v55 = vpop.eup %3516  ;;  %v2697_v8 = vadd.f32 1.0, %v3515_v63 }
 0x899   :  { %v3519_v51 = vpop.eup %3518  ;;  %3528 = vrcp.f32 %v2693_v22  ;;  %v2691_v16 = vadd.f32 1.0, %v3517_v55 }
 0x89a   :  { %v3521_v17 = vpop.eup %3520  ;;  %3530 = vrcp.f32 %v2697_v8  ;;  %v2695_v9 = vadd.f32 1.0, %v3519_v51 }
 0x89b   :  { %v3523_v59 = vpop.eup %3522  ;;  %3532 = vrcp.f32 %v2691_v16  ;;  %v2694_v14 = vadd.f32 1.0, %v3521_v17 }
 0x89c   :  { %v3525_v41 = vpop.eup %3524  ;;  %3534 = vrcp.f32 %v2695_v9  ;;  %v2698_v46 = vadd.f32 1.0, %v3523_v59 }
 0x89d   :  { %v3527_v58 = vpop.eup %3526  ;;  %3536 = vrcp.f32 %v2694_v14  ;;  %v2692_v28 = vadd.f32 1.0, %v3525_v41 }
 0x89e   :  { %3538 = vrcp.f32 %v2698_v46  ;;  %v2696_v53 = vadd.f32 1.0, %v3527_v58 }
 0x89f   :  { %3540 = vrcp.f32 %v2692_v28 }
 0x8a0   :  { %3542 = vrcp.f32 %v2696_v53 }
 0x8a3   :  { %v3529_v26 = vpop.eup %3528 }
 0x8a4   :  { %v3531_v48 = vpop.eup %3530  ;;  %v2717_v1 = vmul.f32 %v3529_v26, %v4843_v33 }
 0x8a5   :  { %v3533_v13 = vpop.eup %3532  ;;  %v2721_v35 = vmul.f32 %v3531_v48, %v2528_v44 }
 0x8a6   :  { %v3535_v0 = vpop.eup %3534  ;;  %v2715_v31 = vmul.f32 %v3533_v13, %v4839_v47  ;;  %v2725_v38 = vadd.f32 %v2717_v1, %v4623_v61 }
 0x8a7   :  { %v3537_v6 = vpop.eup %3536  ;;  %v2719_v29 = vmul.f32 %v3535_v0, %v4847_v39  ;;  %v2729_v49 = vadd.f32 %v2721_v35, %v4639_v21 }
 0x8a8   :  { %v3539_v45 = vpop.eup %3538  ;;  %v2718_v18 = vmul.f32 %v3537_v6, %v4845_v50  ;;  %v2723_v39 = vadd.f32 %v2715_v31, %v4616_v43 }
 0x8a9   :  { %v3541_v7 = vpop.eup %3540  ;;  %v2722_v60 = vmul.f32 %v3539_v45, %v2531_v56  ;;  %v2727_v56 = vadd.f32 %v2719_v29, %v4632_v10 }
 0x8aa   :  { %v3543_v40 = vpop.eup %3542  ;;  %v2716_v3 = vmul.f32 %v3541_v7, %v4841_v4  ;;  %v2726_v33 = vadd.f32 %v2718_v18, %v4627_v20 }
 0x8ab   :  { %v2720_v44 = vmul.f32 %v3543_v40, %v4849_v32  ;;  %v2730_v47 = vadd.f32 %v2722_v60, %v4643_v27 }
 0x8ac   :  { %v2724_v2 = vadd.f32 %v2716_v3, %v4619_v24  ;;  %v2921_v50 = vpack.c.bf16 %v2726_v33, %v2725_v38 }
 0x8ad   :  { %v2728_v4 = vadd.f32 %v2720_v44, %v4635_v52  ;;  %v2931_v61 = vpack.c.bf16 %v2730_v47, %v2729_v49 }
 0x8ae   :  { %v2916_v23 = vpack.c.bf16 %v2724_v2, %v2723_v39  ;;  %2936 = vst [vmem:[#allocation26 + $0x8] sm:$0xff] %v2921_v50  }
 0x8af   :  { %v2926_v20 = vpack.c.bf16 %v2728_v4, %v2727_v56  ;;  %2938 = vst [vmem:[#allocation26 + $0x18] sm:$0xff] %v2931_v61  }
 0x8b0   :  { %2917 = vst [vmem:[#allocation26] sm:$0xff] %v2916_v23  }
 0x8b1   :  { %2937 = vst [vmem:[#allocation26 + $0x10] sm:$0xff] %v2926_v20  }
 0x8b2   :  { %3841 = shalt.err (!%p3838_p10)
}
 0x8b3   :  { %s3842_s15 = scalar_lea.hbm %s4901_s21, 512 }
 0x8b4   :  { %p3843_p11 = scmp.ne.s32.totalorder %s4901_s21, %s3842_s15  ;;  %p3846_p12 = scmp.lt.u32.totalorder %s3842_s15, %s4901_s21 }
 0x8b6   :  { %p3848_p13 = pnand %p3846_p12, %p3843_p11 }
 0x8b8   :  { %3851 = shalt.err (!%p3848_p13)
}
 0x8b9   :  { %2758 = dma.vmem_to_hbm [thread:$0]  %s2753_s11, 512, %s4901_s21, [#allocation7], %s3872_s27, %s3872_s27, %s3873_s30  }
 0x8ba   :  { %3866 = dma.done.wait [#allocation7], 512  }
 0x8bb   :  { %3867 = vsyncadd [#allocation7], 4294966784 }
 0x8bc   :  { %2762 = vsyncpa [#allocation6], 1 }
 0x8bd   :  { %2763 = vsyncpa [#allocation9], 1 }
 0x8be   :  { %2764 = vsyncpa [#allocation12], 1 }
 0x8bf   :  { %2765 = vsyncpa [#allocation15], 1 }
 0x8c0   :  { %2766 = vsyncpa [#allocation18], 1 }
 0x8c1   :  { %2767 = vsyncpa [#allocation21], 1 }
 0x8c2   :  { %2768 = vsyncpa [#allocation24], 1 }
 0x8c3   :  { %2769 = vsyncpa [#allocation7], 1 }

</bundles_post_ra>
